<compile_context>
chip_gen: v7x
topology: tpu7x:2x2x1
jax: 0.10.0
libtpu: 0.0.40
codegen_flags: <defaults>
</compile_context>

<pallas_src>
import functools

import jax
import jax.numpy as jnp
from jax.experimental import pallas as pl
from jax.experimental.pallas import tpu as pltpu


def _round_up(x, m):
    return (x + m - 1) // m * m


def _conv_pool_stats_kernel(xe_ref, xo_ref, w_ref, pooled_ref, sum_ref,
                            sumsq_ref, conv_e_ref, conv_o_ref, *,
                            rb, wp_pad, hp, wp):
    """Pass 1: in-kernel 5x5 conv + fused 2x2 max-pool + per-channel stats.

    xe_ref / xo_ref: (2*rb + 4, wp_pad + 2, Cin)  haloed input row tile, even /
                     odd input columns (compute dtype).
    w_ref:           (25, Cin, Cp)                per-tap weights (kh*5 + kw).
    pooled_ref:      (rb * wp_pad, Cp)            pooled conv output.
    sum_ref/sumsq_ref: (8, Cp) f32                per-batch resident partials.
    conv_e_ref/conv_o_ref: (2*rb*wp_pad, Cp) f32  conv accumulators (even/odd
                                                  output columns).
    """
    @pl.when(pl.program_id(1) == 0)
    def _init():
        sum_ref[...] = jnp.zeros_like(sum_ref)
        sumsq_ref[...] = jnp.zeros_like(sumsq_ref)

    nrows = 2 * rb                     # conv rows produced by this tile
    cin = xe_ref.shape[-1]
    cp = pooled_ref.shape[-1]

    # ---- Conv2d(5x5,'same'): 50 shifted accumulating MXU matmuls -----------
    # Output column 2q+p uses input column 2q + (p+kw); with the input pre-split
    # by column parity this is a *contiguous* slice of the (p+kw)%2 plane at
    # offset (p+kw)//2 -- no strided in-kernel loads, no HBM im2col.
    # (No conv bias: it cancels against the BatchNorm batch mean.)
    # TODO(synk): once production Cin/Cout make pass 1 MXU-bound, build the
    # im2col slab in VMEM (K = 25*Cin) and tile Cout in 256-wide columns.
    conv_e_ref[...] = jnp.zeros_like(conv_e_ref)
    conv_o_ref[...] = jnp.zeros_like(conv_o_ref)
    for p in range(2):                               # output-column parity
        dst = conv_e_ref if p == 0 else conv_o_ref
        for kh in range(5):
            for kw in range(5):
                src = xe_ref if (p + kw) % 2 == 0 else xo_ref
                s = (p + kw) // 2
                xs = src[kh:kh + nrows, s:s + wp_pad, :]       # (2rb, wp_pad, Cin)
                dst[...] += jnp.dot(
                    xs.reshape(nrows * wp_pad, cin), w_ref[kh * 5 + kw],
                    preferred_element_type=jnp.float32)

    # ---- MaxPool2d(2,2): vertical pair via outer-dim reshape, horizontal ----
    # pair via the even/odd conv buffers.
    ce = conv_e_ref[...].reshape(rb, 2, wp_pad, cp)
    co = conv_o_ref[...].reshape(rb, 2, wp_pad, cp)
    pooled = jnp.maximum(jnp.maximum(ce[:, 0], ce[:, 1]),
                         jnp.maximum(co[:, 0], co[:, 1]))      # (rb, wp_pad, Cp)

    # ---- mask padded pooled cols / rows out of the batch statistics --------
    q = jax.lax.broadcasted_iota(jnp.int32, (rb, wp_pad, 1), 1)
    pooled = jnp.where(q < wp, pooled, 0.0)
    pooled2 = pooled.reshape(rb * wp_pad, cp)
    row0 = pl.program_id(1) * rb
    nvalid = jnp.minimum(hp - row0, rb) * wp_pad     # valid rows in this tile
    ridx = jax.lax.broadcasted_iota(jnp.int32, (rb * wp_pad, 1), 0)
    pooled2 = jnp.where(ridx < nvalid, pooled2, 0.0)

    pooled_ref[...] = pooled2.astype(pooled_ref.dtype)
    # TODO(synk): switch to a Welford-style per-tile combine if channels with
    # very large means make E[x^2]-E[x]^2 cancellation-prone.
    sum_ref[...] = sum_ref[...] + jnp.sum(pooled2, axis=0, keepdims=True)
    sumsq_ref[...] = sumsq_ref[...] + jnp.sum(pooled2 * pooled2, axis=0,
                                              keepdims=True)


def _bn_relu_kernel(pooled_ref, scale_ref, shift_ref, o_ref):
    """Pass 2: folded BatchNorm (scale/shift) + ReLU; f32 math (v5e-safe)."""
    x = pooled_ref[...].astype(jnp.float32)
    o_ref[...] = jnp.maximum(x * scale_ref[...] + shift_ref[...],
                             0.0).astype(o_ref.dtype)


def down_forward(x_nchw, conv_w, conv_b, bn_gamma, bn_beta, *,
                 compute_dtype=jnp.bfloat16, out_dtype=jnp.float32,
                 row_tile=512, vmem_budget_bytes=40 * 1024 * 1024, eps=1e-5):
    """Down block forward: (B, Cin, H, W) f32 -> (B, Cout, H//2, W//2).

    conv_b is accepted for interface parity with nn.Conv2d but unused: a
    per-channel constant added before the max-pool cancels exactly against
    BatchNorm's batch-mean subtraction (training-mode statistics only).
    """
    del conv_b
    B, Cin, H, W = x_nchw.shape
    Cout = conv_w.shape[0]
    assert H % 2 == 0 and W % 2 == 0, "MaxPool2d(2,2) needs even H, W"
    Hp, Wp = H // 2, W // 2
    Cp = _round_up(Cout, 128)          # lane-dense MXU columns / unmasked stores
    Wp_pad = _round_up(Wp, 16)         # sublane-friendly for f32 and bf16 tiles
    cdt = jnp.dtype(compute_dtype)
    pooled_dtype = cdt                 # bf16 pooled intermediate in bf16 mode

    # ---- tile choice: target `row_tile` pooled rows, cap by a VMEM budget ---
    rb = max(1, min(Hp, row_tile // Wp_pad))

    def _footprint(rb_):
        x_tile = 2 * 2 * (2 * rb_ + 4) * _round_up(Wp_pad + 2, 16) * \
            _round_up(Cin, 128) * cdt.itemsize            # 2 planes, dbl-buffered
        w_b = 2 * 25 * _round_up(Cin, 16) * Cp * cdt.itemsize
        pooled_b = 2 * rb_ * Wp_pad * Cp * jnp.dtype(pooled_dtype).itemsize
        conv_bufs = 2 * (2 * rb_ * Wp_pad) * Cp * 4
        return x_tile + w_b + pooled_b + conv_bufs

    while rb > 1 and _footprint(rb) > vmem_budget_bytes:
        rb -= 1
    nrb = -(-Hp // rb)                 # ceil-div: pad rows, never shrink tiles
    Hp_pad = nrb * rb
    vmem_limit = int(min(56 * 1024 * 1024,
                         max(2 * _footprint(rb), 32 * 1024 * 1024)))

    # ---- cheap XLA glue (~1x input bytes): NHWC, halo row tiles, parity split
    x = jnp.transpose(x_nchw, (0, 2, 3, 1)).astype(cdt)        # (B, H, W, Cin)
    Hin = 2 * Hp_pad + 4
    Win = 2 * Wp_pad + 4
    x = jnp.pad(x, ((0, 0), (2, Hin - H - 2), (2, Win - W - 2), (0, 0)))
    x_even, x_odd = x[:, :, 0::2, :], x[:, :, 1::2, :]         # (B, Hin, Wp_pad+2, Cin)

    def _row_tiles(a):                 # overlapping (halo=4) row-block tiles
        t = jnp.stack([a[:, 2 * rb * j:2 * rb * j + 2 * rb + 4]
                       for j in range(nrb)], axis=1)
        return t.reshape(B * nrb, 2 * rb + 4, a.shape[2], Cin)

    xe_tiles, xo_tiles = _row_tiles(x_even), _row_tiles(x_odd)

    # PyTorch conv weight (Cout, Cin, 5, 5) -> (25, Cin, Cp), tap-major (kh,kw)
    w_taps = jnp.transpose(conv_w, (2, 3, 1, 0)).reshape(25, Cin, Cout)
    w_taps = jnp.pad(w_taps, ((0, 0), (0, 0), (0, Cp - Cout))).astype(cdt)

    kernel1 = functools.partial(_conv_pool_stats_kernel, rb=rb, wp_pad=Wp_pad,
                                hp=Hp, wp=Wp)

    # ---- pass 1: conv + pool + batch statistics (tiled, pipelined) ----------
    pooled, psum, psumsq = pl.pallas_call(
        kernel1,
        grid=(B, nrb),
        in_specs=[
            pl.BlockSpec((None, 2 * rb + 4, Wp_pad + 2, Cin),
                         lambda b, j: (b * nrb + j, 0, 0, 0)),
            pl.BlockSpec((None, 2 * rb + 4, Wp_pad + 2, Cin),
                         lambda b, j: (b * nrb + j, 0, 0, 0)),
            pl.BlockSpec((25, Cin, Cp), lambda b, j: (0, 0, 0)),
        ],
        out_specs=[
            pl.BlockSpec((rb * Wp_pad, Cp), lambda b, j: (b * nrb + j, 0)),
            pl.BlockSpec((None, 8, Cp), lambda b, j: (b, 0, 0)),   # per-b partials
            pl.BlockSpec((None, 8, Cp), lambda b, j: (b, 0, 0)),
        ],
        out_shape=[
            jax.ShapeDtypeStruct((B * Hp_pad * Wp_pad, Cp), pooled_dtype),
            jax.ShapeDtypeStruct((B, 8, Cp), jnp.float32),
            jax.ShapeDtypeStruct((B, 8, Cp), jnp.float32),
        ],
        scratch_shapes=[
            pltpu.VMEM((2 * rb * Wp_pad, Cp), jnp.float32),  # even-col conv acc
            pltpu.VMEM((2 * rb * Wp_pad, Cp), jnp.float32),  # odd-col conv acc
        ],
        compiler_params=pltpu.CompilerParams(
            dimension_semantics=("parallel", "arbitrary"),   # batch axis -> 2 TCs
            vmem_limit_bytes=vmem_limit),
    )(xe_tiles, xo_tiles, w_taps)

    # ---- fold batch mean/var + gamma/beta into one scale/shift (tiny, XLA) --
    n = jnp.float32(B * Hp * Wp)                        # real (unpadded) count
    mean = jnp.sum(psum[:, 0, :], axis=0) / n
    var = jnp.maximum(jnp.sum(psumsq[:, 0, :], axis=0) / n - mean * mean, 0.0)
    g = jnp.pad(bn_gamma.astype(jnp.float32), (0, Cp - Cout))
    bta = jnp.pad(bn_beta.astype(jnp.float32), (0, Cp - Cout))
    scale = (g * jax.lax.rsqrt(var + eps)).reshape(1, Cp)
    shift = (bta - mean * scale[0]).reshape(1, Cp)

    # ---- pass 2: folded BN + ReLU, one lane-dense elementwise pass ----------
    out_pad = pl.pallas_call(
        _bn_relu_kernel,
        grid=(B * nrb,),
        in_specs=[
            pl.BlockSpec((rb * Wp_pad, Cp), lambda i: (i, 0)),
            pl.BlockSpec((1, Cp), lambda i: (0, 0)),
            pl.BlockSpec((1, Cp), lambda i: (0, 0)),
        ],
        out_specs=pl.BlockSpec((rb * Wp_pad, Cp), lambda i: (i, 0)),
        out_shape=jax.ShapeDtypeStruct((B * Hp_pad * Wp_pad, Cp), out_dtype),
        compiler_params=pltpu.CompilerParams(
            dimension_semantics=("parallel",)),
    )(pooled, scale, shift)

    # slice off channel / spatial padding, back to NCHW
    out = out_pad[:, :Cout].reshape(B, Hp_pad, Wp_pad, Cout)[:, :Hp, :Wp, :]
    # TODO(synk): return NHWC directly when the downstream block accepts it to
    # drop this final XLA transpose (one extra read+write of the output).
    return jnp.transpose(out, (0, 3, 1, 2))


def down_reference(x_nchw, conv_w, conv_b, bn_gamma, bn_beta, eps=1e-5):
    conv = jax.lax.conv_general_dilated(
        x_nchw, conv_w, window_strides=(1, 1), padding=((2, 2), (2, 2)),
        dimension_numbers=("NCHW", "OIHW", "NCHW"),
    ) + conv_b[None, :, None, None]
    pooled = jax.lax.reduce_window(
        conv, -jnp.inf, jax.lax.max,
        window_dimensions=(1, 1, 2, 2), window_strides=(1, 1, 2, 2),
        padding="VALID")
    mean = pooled.mean(axis=(0, 2, 3), keepdims=True)
    var = ((pooled - mean) ** 2).mean(axis=(0, 2, 3), keepdims=True)
    normed = (pooled - mean) / jnp.sqrt(var + eps)
    out = normed * bn_gamma[None, :, None, None] + bn_beta[None, :, None, None]
    return jnp.maximum(out, 0.0)


if __name__ == "__main__":
    key = jax.random.PRNGKey(0)
    k_x, k_w, k_b = jax.random.split(key, 3)

    B, Cin, Cout, H, W = 2, 4, 8, 16, 16

    x = jax.random.normal(k_x, (B, Cin, H, W), dtype=jnp.float32)
    conv_w = 0.1 * jax.random.normal(k_w, (Cout, Cin, 5, 5), dtype=jnp.float32)
    conv_b = 0.05 * jax.random.normal(k_b, (Cout,), dtype=jnp.float32)
    bn_gamma = jnp.ones((Cout,), dtype=jnp.float32)   # PyTorch BN default init
    bn_beta = jnp.zeros((Cout,), dtype=jnp.float32)

    ref = down_reference(x, conv_w, conv_b, bn_gamma, bn_beta)

    # Exact-precision path (f32 operands); small row_tile exercises the
    # multi-row-block halo / resident-accumulator / masking code paths.
    out_f32 = down_forward(x, conv_w, conv_b, bn_gamma, bn_beta,
                           compute_dtype=jnp.float32, row_tile=32)
    out_f32 = jax.block_until_ready(out_f32)
    assert out_f32.shape == (B, Cout, H // 2, W // 2), out_f32.shape
    assert jnp.allclose(out_f32, ref, rtol=1e-4, atol=1e-4), float(
        jnp.max(jnp.abs(out_f32 - ref)))

    # Production-mode path: bf16 matmul operands + bf16 pooled intermediate
    # (f32 accumulation / statistics), default tile size.
    out_bf16 = down_forward(x, conv_w, conv_b, bn_gamma, bn_beta,
                            compute_dtype=jnp.bfloat16)
    out_bf16 = jax.block_until_ready(out_bf16)
    assert out_bf16.shape == (B, Cout, H // 2, W // 2), out_bf16.shape
    assert float(jnp.max(jnp.abs(out_bf16 - ref))) < 0.12, float(
        jnp.max(jnp.abs(out_bf16 - ref)))

    print("KERNEL_OK")
</pallas_src>

<mosaic_0001>
module attributes {stable_mosaic.version = 11 : i64} {
  func.func @_conv_pool_stats_kernel(%arg0: i32, %arg1: i32, %arg2: memref<1x8x18x4xf32, #tpu.memory_space<vmem>>, %arg3: memref<1x8x18x4xf32, #tpu.memory_space<vmem>>, %arg4: memref<25x4x128xf32, #tpu.memory_space<vmem>>, %arg5: memref<32x128xf32, #tpu.memory_space<vmem>>, %arg6: memref<1x8x128xf32, #tpu.memory_space<vmem>>, %arg7: memref<1x8x128xf32, #tpu.memory_space<vmem>>, %arg8: memref<64x128xf32, #tpu.memory_space<vmem>>, %arg9: memref<64x128xf32, #tpu.memory_space<vmem>>) attributes {dimension_semantics = [#tpu.dimension_semantics<parallel>, #tpu.dimension_semantics<arbitrary>], iteration_bounds = array<i64: 2, 4>, scalar_prefetch = 0 : i64, scratch_operands = 2 : i64, tpu.core_type = #tpu.core_type<tc>, window_params = [{transform_indices = @transform_0, window_bounds = array<i64: 1, 8, 18, 4>}, {transform_indices = @transform_1, window_bounds = array<i64: 1, 8, 18, 4>}, {pipeline_mode = #tpu.pipeline_mode<synchronous>, transform_indices = @transform_2, window_bounds = array<i64: 25, 4, 128>}, {transform_indices = @transform_3, window_bounds = array<i64: 32, 128>}, {transform_indices = @transform_4, window_bounds = array<i64: 1, 8, 128>}, {transform_indices = @transform_5, window_bounds = array<i64: 1, 8, 128>}]} {
    %c0_i32 = arith.constant 0 : i32
    %0 = arith.cmpi eq, %arg1, %c0_i32 : i32
    %1 = arith.extui %0 : i1 to i32
    %c0_i32_0 = arith.constant 0 : i32
    %2 = arith.cmpi ne, %1, %c0_i32_0 : i32
    scf.if %2 {
      %cst_605 = arith.constant 0.000000e+00 : f32
      %511 = vector.broadcast %cst_605 : f32 to vector<8x128xf32>
      %c0_606 = arith.constant 0 : index
      %c0_607 = arith.constant 0 : index
      %c0_608 = arith.constant 0 : index
      %512 = vector.load %arg6[%c0_606, %c0_607, %c0_608] : memref<1x8x128xf32, #tpu.memory_space<vmem>>, vector<1x8x128xf32>
      %513 = vector.shape_cast %512 : vector<1x8x128xf32> to vector<8x128xf32>
      %514 = vector.shape_cast %511 : vector<8x128xf32> to vector<1x8x128xf32>
      tpu.vector_store %arg6[%c0_606, %c0_607, %c0_608], %514 {strides = array<i32>} : memref<1x8x128xf32, #tpu.memory_space<vmem>>, vector<1x8x128xf32>,
      %cst_609 = arith.constant 0.000000e+00 : f32
      %515 = vector.broadcast %cst_609 : f32 to vector<8x128xf32>
      %c0_610 = arith.constant 0 : index
      %c0_611 = arith.constant 0 : index
      %c0_612 = arith.constant 0 : index
      %516 = vector.load %arg7[%c0_610, %c0_611, %c0_612] : memref<1x8x128xf32, #tpu.memory_space<vmem>>, vector<1x8x128xf32>
      %517 = vector.shape_cast %516 : vector<1x8x128xf32> to vector<8x128xf32>
      %518 = vector.shape_cast %515 : vector<8x128xf32> to vector<1x8x128xf32>
      tpu.vector_store %arg7[%c0_610, %c0_611, %c0_612], %518 {strides = array<i32>} : memref<1x8x128xf32, #tpu.memory_space<vmem>>, vector<1x8x128xf32>,
    } else {
    }
    %cst = arith.constant 0.000000e+00 : f32
    %3 = vector.broadcast %cst : f32 to vector<64x128xf32>
    %c0 = arith.constant 0 : index
    %c0_1 = arith.constant 0 : index
    %4 = vector.load %arg8[%c0, %c0_1] : memref<64x128xf32, #tpu.memory_space<vmem>>, vector<64x128xf32>
    tpu.vector_store %arg8[%c0, %c0_1], %3 {strides = array<i32>} : memref<64x128xf32, #tpu.memory_space<vmem>>, vector<64x128xf32>,
    %cst_2 = arith.constant 0.000000e+00 : f32
    %5 = vector.broadcast %cst_2 : f32 to vector<64x128xf32>
    %c0_3 = arith.constant 0 : index
    %c0_4 = arith.constant 0 : index
    %6 = vector.load %arg9[%c0_3, %c0_4] : memref<64x128xf32, #tpu.memory_space<vmem>>, vector<64x128xf32>
    tpu.vector_store %arg9[%c0_3, %c0_4], %5 {strides = array<i32>} : memref<64x128xf32, #tpu.memory_space<vmem>>, vector<64x128xf32>,
    %c0_5 = arith.constant 0 : index
    %c0_6 = arith.constant 0 : index
    %c0_7 = arith.constant 0 : index
    %c0_8 = arith.constant 0 : index
    %7 = vector.load %arg2[%c0_5, %c0_6, %c0_7, %c0_8] : memref<1x8x18x4xf32, #tpu.memory_space<vmem>>, vector<1x4x16x4xf32>
    %8 = vector.shape_cast %7 : vector<1x4x16x4xf32> to vector<4x16x4xf32>
    %c0_9 = arith.constant 0 : index
    %c0_10 = arith.constant 0 : index
    %9 = vector.load %arg8[%c0_9, %c0_10] : memref<64x128xf32, #tpu.memory_space<vmem>>, vector<64x128xf32>
    %10 = vector.shape_cast %8 : vector<4x16x4xf32> to vector<64x4xf32>
    %c0_11 = arith.constant 0 : index
    %c0_12 = arith.constant 0 : index
    %c0_13 = arith.constant 0 : index
    %11 = vector.load %arg4[%c0_11, %c0_12, %c0_13] : memref<25x4x128xf32, #tpu.memory_space<vmem>>, vector<1x4x128xf32>
    %12 = vector.shape_cast %11 : vector<1x4x128xf32> to vector<4x128xf32>
    %cst_14 = arith.constant dense<0.000000e+00> : vector<64x128xf32>
    %13 = tpu.matmul %10, %12, %cst_14 {dimension_numbers = #tpu.dot_dimension_numbers<[1], [0], [0], [1], [0, 0, 1, 1], [], []>} : vector<64x4xf32>, vector<4x128xf32>, vector<64x128xf32> -> vector<64x128xf32>
    %14 = arith.addf %9, %13 : vector<64x128xf32>
    %c0_15 = arith.constant 0 : index
    %c0_16 = arith.constant 0 : index
    %15 = vector.load %arg8[%c0_15, %c0_16] : memref<64x128xf32, #tpu.memory_space<vmem>>, vector<64x128xf32>
    tpu.vector_store %arg8[%c0_15, %c0_16], %14 {strides = array<i32>} : memref<64x128xf32, #tpu.memory_space<vmem>>, vector<64x128xf32>,
    %c0_17 = arith.constant 0 : index
    %c0_18 = arith.constant 0 : index
    %c0_19 = arith.constant 0 : index
    %c0_20 = arith.constant 0 : index
    %16 = vector.load %arg3[%c0_17, %c0_18, %c0_19, %c0_20] : memref<1x8x18x4xf32, #tpu.memory_space<vmem>>, vector<1x4x16x4xf32>
    %17 = vector.shape_cast %16 : vector<1x4x16x4xf32> to vector<4x16x4xf32>
    %c0_21 = arith.constant 0 : index
    %c0_22 = arith.constant 0 : index
    %18 = vector.load %arg8[%c0_21, %c0_22] : memref<64x128xf32, #tpu.memory_space<vmem>>, vector<64x128xf32>
    %19 = vector.shape_cast %17 : vector<4x16x4xf32> to vector<64x4xf32>
    %c1 = arith.constant 1 : index
    %c0_23 = arith.constant 0 : index
    %c0_24 = arith.constant 0 : index
    %20 = vector.load %arg4[%c1, %c0_23, %c0_24] : memref<25x4x128xf32, #tpu.memory_space<vmem>>, vector<1x4x128xf32>
    %21 = vector.shape_cast %20 : vector<1x4x128xf32> to vector<4x128xf32>
    %cst_25 = arith.constant dense<0.000000e+00> : vector<64x128xf32>
    %22 = tpu.matmul %19, %21, %cst_25 {dimension_numbers = #tpu.dot_dimension_numbers<[1], [0], [0], [1], [0, 0, 1, 1], [], []>} : vector<64x4xf32>, vector<4x128xf32>, vector<64x128xf32> -> vector<64x128xf32>
    %23 = arith.addf %18, %22 : vector<64x128xf32>
    %c0_26 = arith.constant 0 : index
    %c0_27 = arith.constant 0 : index
    %24 = vector.load %arg8[%c0_26, %c0_27] : memref<64x128xf32, #tpu.memory_space<vmem>>, vector<64x128xf32>
    tpu.vector_store %arg8[%c0_26, %c0_27], %23 {strides = array<i32>} : memref<64x128xf32, #tpu.memory_space<vmem>>, vector<64x128xf32>,
    %c0_28 = arith.constant 0 : index
    %c0_29 = arith.constant 0 : index
    %c1_30 = arith.constant 1 : index
    %c0_31 = arith.constant 0 : index
    %25 = vector.load %arg2[%c0_28, %c0_29, %c1_30, %c0_31] : memref<1x8x18x4xf32, #tpu.memory_space<vmem>>, vector<1x4x16x4xf32>
    %26 = vector.shape_cast %25 : vector<1x4x16x4xf32> to vector<4x16x4xf32>
    %c0_32 = arith.constant 0 : index
    %c0_33 = arith.constant 0 : index
    %27 = vector.load %arg8[%c0_32, %c0_33] : memref<64x128xf32, #tpu.memory_space<vmem>>, vector<64x128xf32>
    %28 = vector.shape_cast %26 : vector<4x16x4xf32> to vector<64x4xf32>
    %c2 = arith.constant 2 : index
    %c0_34 = arith.constant 0 : index
    %c0_35 = arith.constant 0 : index
    %29 = vector.load %arg4[%c2, %c0_34, %c0_35] : memref<25x4x128xf32, #tpu.memory_space<vmem>>, vector<1x4x128xf32>
    %30 = vector.shape_cast %29 : vector<1x4x128xf32> to vector<4x128xf32>
    %cst_36 = arith.constant dense<0.000000e+00> : vector<64x128xf32>
    %31 = tpu.matmul %28, %30, %cst_36 {dimension_numbers = #tpu.dot_dimension_numbers<[1], [0], [0], [1], [0, 0, 1, 1], [], []>} : vector<64x4xf32>, vector<4x128xf32>, vector<64x128xf32> -> vector<64x128xf32>
    %32 = arith.addf %27, %31 : vector<64x128xf32>
    %c0_37 = arith.constant 0 : index
    %c0_38 = arith.constant 0 : index
    %33 = vector.load %arg8[%c0_37, %c0_38] : memref<64x128xf32, #tpu.memory_space<vmem>>, vector<64x128xf32>
    tpu.vector_store %arg8[%c0_37, %c0_38], %32 {strides = array<i32>} : memref<64x128xf32, #tpu.memory_space<vmem>>, vector<64x128xf32>,
    %c0_39 = arith.constant 0 : index
    %c0_40 = arith.constant 0 : index
    %c1_41 = arith.constant 1 : index
    %c0_42 = arith.constant 0 : index
    %34 = vector.load %arg3[%c0_39, %c0_40, %c1_41, %c0_42] : memref<1x8x18x4xf32, #tpu.memory_space<vmem>>, vector<1x4x16x4xf32>
    %35 = vector.shape_cast %34 : vector<1x4x16x4xf32> to vector<4x16x4xf32>
    %c0_43 = arith.constant 0 : index
    %c0_44 = arith.constant 0 : index
    %36 = vector.load %arg8[%c0_43, %c0_44] : memref<64x128xf32, #tpu.memory_space<vmem>>, vector<64x128xf32>
    %37 = vector.shape_cast %35 : vector<4x16x4xf32> to vector<64x4xf32>
    %c3 = arith.constant 3 : index
    %c0_45 = arith.constant 0 : index
    %c0_46 = arith.constant 0 : index
    %38 = vector.load %arg4[%c3, %c0_45, %c0_46] : memref<25x4x128xf32, #tpu.memory_space<vmem>>, vector<1x4x128xf32>
    %39 = vector.shape_cast %38 : vector<1x4x128xf32> to vector<4x128xf32>
    %cst_47 = arith.constant dense<0.000000e+00> : vector<64x128xf32>
    %40 = tpu.matmul %37, %39, %cst_47 {dimension_numbers = #tpu.dot_dimension_numbers<[1], [0], [0], [1], [0, 0, 1, 1], [], []>} : vector<64x4xf32>, vector<4x128xf32>, vector<64x128xf32> -> vector<64x128xf32>
    %41 = arith.addf %36, %40 : vector<64x128xf32>
    %c0_48 = arith.constant 0 : index
    %c0_49 = arith.constant 0 : index
    %42 = vector.load %arg8[%c0_48, %c0_49] : memref<64x128xf32, #tpu.memory_space<vmem>>, vector<64x128xf32>
    tpu.vector_store %arg8[%c0_48, %c0_49], %41 {strides = array<i32>} : memref<64x128xf32, #tpu.memory_space<vmem>>, vector<64x128xf32>,
    %c0_50 = arith.constant 0 : index
    %c0_51 = arith.constant 0 : index
    %c2_52 = arith.constant 2 : index
    %c0_53 = arith.constant 0 : index
    %43 = vector.load %arg2[%c0_50, %c0_51, %c2_52, %c0_53] : memref<1x8x18x4xf32, #tpu.memory_space<vmem>>, vector<1x4x16x4xf32>
    %44 = vector.shape_cast %43 : vector<1x4x16x4xf32> to vector<4x16x4xf32>
    %c0_54 = arith.constant 0 : index
    %c0_55 = arith.constant 0 : index
    %45 = vector.load %arg8[%c0_54, %c0_55] : memref<64x128xf32, #tpu.memory_space<vmem>>, vector<64x128xf32>
    %46 = vector.shape_cast %44 : vector<4x16x4xf32> to vector<64x4xf32>
    %c4 = arith.constant 4 : index
    %c0_56 = arith.constant 0 : index
    %c0_57 = arith.constant 0 : index
    %47 = vector.load %arg4[%c4, %c0_56, %c0_57] : memref<25x4x128xf32, #tpu.memory_space<vmem>>, vector<1x4x128xf32>
    %48 = vector.shape_cast %47 : vector<1x4x128xf32> to vector<4x128xf32>
    %cst_58 = arith.constant dense<0.000000e+00> : vector<64x128xf32>
    %49 = tpu.matmul %46, %48, %cst_58 {dimension_numbers = #tpu.dot_dimension_numbers<[1], [0], [0], [1], [0, 0, 1, 1], [], []>} : vector<64x4xf32>, vector<4x128xf32>, vector<64x128xf32> -> vector<64x128xf32>
    %50 = arith.addf %45, %49 : vector<64x128xf32>
    %c0_59 = arith.constant 0 : index
    %c0_60 = arith.constant 0 : index
    %51 = vector.load %arg8[%c0_59, %c0_60] : memref<64x128xf32, #tpu.memory_space<vmem>>, vector<64x128xf32>
    tpu.vector_store %arg8[%c0_59, %c0_60], %50 {strides = array<i32>} : memref<64x128xf32, #tpu.memory_space<vmem>>, vector<64x128xf32>,
    %c0_61 = arith.constant 0 : index
    %c1_62 = arith.constant 1 : index
    %c0_63 = arith.constant 0 : index
    %c0_64 = arith.constant 0 : index
    %52 = vector.load %arg2[%c0_61, %c1_62, %c0_63, %c0_64] : memref<1x8x18x4xf32, #tpu.memory_space<vmem>>, vector<1x4x16x4xf32>
    %53 = vector.shape_cast %52 : vector<1x4x16x4xf32> to vector<4x16x4xf32>
    %c0_65 = arith.constant 0 : index
    %c0_66 = arith.constant 0 : index
    %54 = vector.load %arg8[%c0_65, %c0_66] : memref<64x128xf32, #tpu.memory_space<vmem>>, vector<64x128xf32>
    %55 = vector.shape_cast %53 : vector<4x16x4xf32> to vector<64x4xf32>
    %c5 = arith.constant 5 : index
    %c0_67 = arith.constant 0 : index
    %c0_68 = arith.constant 0 : index
    %56 = vector.load %arg4[%c5, %c0_67, %c0_68] : memref<25x4x128xf32, #tpu.memory_space<vmem>>, vector<1x4x128xf32>
    %57 = vector.shape_cast %56 : vector<1x4x128xf32> to vector<4x128xf32>
    %cst_69 = arith.constant dense<0.000000e+00> : vector<64x128xf32>
    %58 = tpu.matmul %55, %57, %cst_69 {dimension_numbers = #tpu.dot_dimension_numbers<[1], [0], [0], [1], [0, 0, 1, 1], [], []>} : vector<64x4xf32>, vector<4x128xf32>, vector<64x128xf32> -> vector<64x128xf32>
    %59 = arith.addf %54, %58 : vector<64x128xf32>
    %c0_70 = arith.constant 0 : index
    %c0_71 = arith.constant 0 : index
    %60 = vector.load %arg8[%c0_70, %c0_71] : memref<64x128xf32, #tpu.memory_space<vmem>>, vector<64x128xf32>
    tpu.vector_store %arg8[%c0_70, %c0_71], %59 {strides = array<i32>} : memref<64x128xf32, #tpu.memory_space<vmem>>, vector<64x128xf32>,
    %c0_72 = arith.constant 0 : index
    %c1_73 = arith.constant 1 : index
    %c0_74 = arith.constant 0 : index
    %c0_75 = arith.constant 0 : index
    %61 = vector.load %arg3[%c0_72, %c1_73, %c0_74, %c0_75] : memref<1x8x18x4xf32, #tpu.memory_space<vmem>>, vector<1x4x16x4xf32>
    %62 = vector.shape_cast %61 : vector<1x4x16x4xf32> to vector<4x16x4xf32>
    %c0_76 = arith.constant 0 : index
    %c0_77 = arith.constant 0 : index
    %63 = vector.load %arg8[%c0_76, %c0_77] : memref<64x128xf32, #tpu.memory_space<vmem>>, vector<64x128xf32>
    %64 = vector.shape_cast %62 : vector<4x16x4xf32> to vector<64x4xf32>
    %c6 = arith.constant 6 : index
    %c0_78 = arith.constant 0 : index
    %c0_79 = arith.constant 0 : index
    %65 = vector.load %arg4[%c6, %c0_78, %c0_79] : memref<25x4x128xf32, #tpu.memory_space<vmem>>, vector<1x4x128xf32>
    %66 = vector.shape_cast %65 : vector<1x4x128xf32> to vector<4x128xf32>
    %cst_80 = arith.constant dense<0.000000e+00> : vector<64x128xf32>
    %67 = tpu.matmul %64, %66, %cst_80 {dimension_numbers = #tpu.dot_dimension_numbers<[1], [0], [0], [1], [0, 0, 1, 1], [], []>} : vector<64x4xf32>, vector<4x128xf32>, vector<64x128xf32> -> vector<64x128xf32>
    %68 = arith.addf %63, %67 : vector<64x128xf32>
    %c0_81 = arith.constant 0 : index
    %c0_82 = arith.constant 0 : index
    %69 = vector.load %arg8[%c0_81, %c0_82] : memref<64x128xf32, #tpu.memory_space<vmem>>, vector<64x128xf32>
    tpu.vector_store %arg8[%c0_81, %c0_82], %68 {strides = array<i32>} : memref<64x128xf32, #tpu.memory_space<vmem>>, vector<64x128xf32>,
    %c0_83 = arith.constant 0 : index
    %c1_84 = arith.constant 1 : index
    %c1_85 = arith.constant 1 : index
    %c0_86 = arith.constant 0 : index
    %70 = vector.load %arg2[%c0_83, %c1_84, %c1_85, %c0_86] : memref<1x8x18x4xf32, #tpu.memory_space<vmem>>, vector<1x4x16x4xf32>
    %71 = vector.shape_cast %70 : vector<1x4x16x4xf32> to vector<4x16x4xf32>
    %c0_87 = arith.constant 0 : index
    %c0_88 = arith.constant 0 : index
    %72 = vector.load %arg8[%c0_87, %c0_88] : memref<64x128xf32, #tpu.memory_space<vmem>>, vector<64x128xf32>
    %73 = vector.shape_cast %71 : vector<4x16x4xf32> to vector<64x4xf32>
    %c7 = arith.constant 7 : index
    %c0_89 = arith.constant 0 : index
    %c0_90 = arith.constant 0 : index
    %74 = vector.load %arg4[%c7, %c0_89, %c0_90] : memref<25x4x128xf32, #tpu.memory_space<vmem>>, vector<1x4x128xf32>
    %75 = vector.shape_cast %74 : vector<1x4x128xf32> to vector<4x128xf32>
    %cst_91 = arith.constant dense<0.000000e+00> : vector<64x128xf32>
    %76 = tpu.matmul %73, %75, %cst_91 {dimension_numbers = #tpu.dot_dimension_numbers<[1], [0], [0], [1], [0, 0, 1, 1], [], []>} : vector<64x4xf32>, vector<4x128xf32>, vector<64x128xf32> -> vector<64x128xf32>
    %77 = arith.addf %72, %76 : vector<64x128xf32>
    %c0_92 = arith.constant 0 : index
    %c0_93 = arith.constant 0 : index
    %78 = vector.load %arg8[%c0_92, %c0_93] : memref<64x128xf32, #tpu.memory_space<vmem>>, vector<64x128xf32>
    tpu.vector_store %arg8[%c0_92, %c0_93], %77 {strides = array<i32>} : memref<64x128xf32, #tpu.memory_space<vmem>>, vector<64x128xf32>,
    %c0_94 = arith.constant 0 : index
    %c1_95 = arith.constant 1 : index
    %c1_96 = arith.constant 1 : index
    %c0_97 = arith.constant 0 : index
    %79 = vector.load %arg3[%c0_94, %c1_95, %c1_96, %c0_97] : memref<1x8x18x4xf32, #tpu.memory_space<vmem>>, vector<1x4x16x4xf32>
    %80 = vector.shape_cast %79 : vector<1x4x16x4xf32> to vector<4x16x4xf32>
    %c0_98 = arith.constant 0 : index
    %c0_99 = arith.constant 0 : index
    %81 = vector.load %arg8[%c0_98, %c0_99] : memref<64x128xf32, #tpu.memory_space<vmem>>, vector<64x128xf32>
    %82 = vector.shape_cast %80 : vector<4x16x4xf32> to vector<64x4xf32>
    %c8 = arith.constant 8 : index
    %c0_100 = arith.constant 0 : index
    %c0_101 = arith.constant 0 : index
    %83 = vector.load %arg4[%c8, %c0_100, %c0_101] : memref<25x4x128xf32, #tpu.memory_space<vmem>>, vector<1x4x128xf32>
    %84 = vector.shape_cast %83 : vector<1x4x128xf32> to vector<4x128xf32>
    %cst_102 = arith.constant dense<0.000000e+00> : vector<64x128xf32>
    %85 = tpu.matmul %82, %84, %cst_102 {dimension_numbers = #tpu.dot_dimension_numbers<[1], [0], [0], [1], [0, 0, 1, 1], [], []>} : vector<64x4xf32>, vector<4x128xf32>, vector<64x128xf32> -> vector<64x128xf32>
    %86 = arith.addf %81, %85 : vector<64x128xf32>
    %c0_103 = arith.constant 0 : index
    %c0_104 = arith.constant 0 : index
    %87 = vector.load %arg8[%c0_103, %c0_104] : memref<64x128xf32, #tpu.memory_space<vmem>>, vector<64x128xf32>
    tpu.vector_store %arg8[%c0_103, %c0_104], %86 {strides = array<i32>} : memref<64x128xf32, #tpu.memory_space<vmem>>, vector<64x128xf32>,
    %c0_105 = arith.constant 0 : index
    %c1_106 = arith.constant 1 : index
    %c2_107 = arith.constant 2 : index
    %c0_108 = arith.constant 0 : index
    %88 = vector.load %arg2[%c0_105, %c1_106, %c2_107, %c0_108] : memref<1x8x18x4xf32, #tpu.memory_space<vmem>>, vector<1x4x16x4xf32>
    %89 = vector.shape_cast %88 : vector<1x4x16x4xf32> to vector<4x16x4xf32>
    %c0_109 = arith.constant 0 : index
    %c0_110 = arith.constant 0 : index
    %90 = vector.load %arg8[%c0_109, %c0_110] : memref<64x128xf32, #tpu.memory_space<vmem>>, vector<64x128xf32>
    %91 = vector.shape_cast %89 : vector<4x16x4xf32> to vector<64x4xf32>
    %c9 = arith.constant 9 : index
    %c0_111 = arith.constant 0 : index
    %c0_112 = arith.constant 0 : index
    %92 = vector.load %arg4[%c9, %c0_111, %c0_112] : memref<25x4x128xf32, #tpu.memory_space<vmem>>, vector<1x4x128xf32>
    %93 = vector.shape_cast %92 : vector<1x4x128xf32> to vector<4x128xf32>
    %cst_113 = arith.constant dense<0.000000e+00> : vector<64x128xf32>
    %94 = tpu.matmul %91, %93, %cst_113 {dimension_numbers = #tpu.dot_dimension_numbers<[1], [0], [0], [1], [0, 0, 1, 1], [], []>} : vector<64x4xf32>, vector<4x128xf32>, vector<64x128xf32> -> vector<64x128xf32>
    %95 = arith.addf %90, %94 : vector<64x128xf32>
    %c0_114 = arith.constant 0 : index
    %c0_115 = arith.constant 0 : index
    %96 = vector.load %arg8[%c0_114, %c0_115] : memref<64x128xf32, #tpu.memory_space<vmem>>, vector<64x128xf32>
    tpu.vector_store %arg8[%c0_114, %c0_115], %95 {strides = array<i32>} : memref<64x128xf32, #tpu.memory_space<vmem>>, vector<64x128xf32>,
    %c0_116 = arith.constant 0 : index
    %c2_117 = arith.constant 2 : index
    %c0_118 = arith.constant 0 : index
    %c0_119 = arith.constant 0 : index
    %97 = vector.load %arg2[%c0_116, %c2_117, %c0_118, %c0_119] : memref<1x8x18x4xf32, #tpu.memory_space<vmem>>, vector<1x4x16x4xf32>
    %98 = vector.shape_cast %97 : vector<1x4x16x4xf32> to vector<4x16x4xf32>
    %c0_120 = arith.constant 0 : index
    %c0_121 = arith.constant 0 : index
    %99 = vector.load %arg8[%c0_120, %c0_121] : memref<64x128xf32, #tpu.memory_space<vmem>>, vector<64x128xf32>
    %100 = vector.shape_cast %98 : vector<4x16x4xf32> to vector<64x4xf32>
    %c10 = arith.constant 10 : index
    %c0_122 = arith.constant 0 : index
    %c0_123 = arith.constant 0 : index
    %101 = vector.load %arg4[%c10, %c0_122, %c0_123] : memref<25x4x128xf32, #tpu.memory_space<vmem>>, vector<1x4x128xf32>
    %102 = vector.shape_cast %101 : vector<1x4x128xf32> to vector<4x128xf32>
    %cst_124 = arith.constant dense<0.000000e+00> : vector<64x128xf32>
    %103 = tpu.matmul %100, %102, %cst_124 {dimension_numbers = #tpu.dot_dimension_numbers<[1], [0], [0], [1], [0, 0, 1, 1], [], []>} : vector<64x4xf32>, vector<4x128xf32>, vector<64x128xf32> -> vector<64x128xf32>
    %104 = arith.addf %99, %103 : vector<64x128xf32>
    %c0_125 = arith.constant 0 : index
    %c0_126 = arith.constant 0 : index
    %105 = vector.load %arg8[%c0_125, %c0_126] : memref<64x128xf32, #tpu.memory_space<vmem>>, vector<64x128xf32>
    tpu.vector_store %arg8[%c0_125, %c0_126], %104 {strides = array<i32>} : memref<64x128xf32, #tpu.memory_space<vmem>>, vector<64x128xf32>,
    %c0_127 = arith.constant 0 : index
    %c2_128 = arith.constant 2 : index
    %c0_129 = arith.constant 0 : index
    %c0_130 = arith.constant 0 : index
    %106 = vector.load %arg3[%c0_127, %c2_128, %c0_129, %c0_130] : memref<1x8x18x4xf32, #tpu.memory_space<vmem>>, vector<1x4x16x4xf32>
    %107 = vector.shape_cast %106 : vector<1x4x16x4xf32> to vector<4x16x4xf32>
    %c0_131 = arith.constant 0 : index
    %c0_132 = arith.constant 0 : index
    %108 = vector.load %arg8[%c0_131, %c0_132] : memref<64x128xf32, #tpu.memory_space<vmem>>, vector<64x128xf32>
    %109 = vector.shape_cast %107 : vector<4x16x4xf32> to vector<64x4xf32>
    %c11 = arith.constant 11 : index
    %c0_133 = arith.constant 0 : index
    %c0_134 = arith.constant 0 : index
    %110 = vector.load %arg4[%c11, %c0_133, %c0_134] : memref<25x4x128xf32, #tpu.memory_space<vmem>>, vector<1x4x128xf32>
    %111 = vector.shape_cast %110 : vector<1x4x128xf32> to vector<4x128xf32>
    %cst_135 = arith.constant dense<0.000000e+00> : vector<64x128xf32>
    %112 = tpu.matmul %109, %111, %cst_135 {dimension_numbers = #tpu.dot_dimension_numbers<[1], [0], [0], [1], [0, 0, 1, 1], [], []>} : vector<64x4xf32>, vector<4x128xf32>, vector<64x128xf32> -> vector<64x128xf32>
    %113 = arith.addf %108, %112 : vector<64x128xf32>
    %c0_136 = arith.constant 0 : index
    %c0_137 = arith.constant 0 : index
    %114 = vector.load %arg8[%c0_136, %c0_137] : memref<64x128xf32, #tpu.memory_space<vmem>>, vector<64x128xf32>
    tpu.vector_store %arg8[%c0_136, %c0_137], %113 {strides = array<i32>} : memref<64x128xf32, #tpu.memory_space<vmem>>, vector<64x128xf32>,
    %c0_138 = arith.constant 0 : index
    %c2_139 = arith.constant 2 : index
    %c1_140 = arith.constant 1 : index
    %c0_141 = arith.constant 0 : index
    %115 = vector.load %arg2[%c0_138, %c2_139, %c1_140, %c0_141] : memref<1x8x18x4xf32, #tpu.memory_space<vmem>>, vector<1x4x16x4xf32>
    %116 = vector.shape_cast %115 : vector<1x4x16x4xf32> to vector<4x16x4xf32>
    %c0_142 = arith.constant 0 : index
    %c0_143 = arith.constant 0 : index
    %117 = vector.load %arg8[%c0_142, %c0_143] : memref<64x128xf32, #tpu.memory_space<vmem>>, vector<64x128xf32>
    %118 = vector.shape_cast %116 : vector<4x16x4xf32> to vector<64x4xf32>
    %c12 = arith.constant 12 : index
    %c0_144 = arith.constant 0 : index
    %c0_145 = arith.constant 0 : index
    %119 = vector.load %arg4[%c12, %c0_144, %c0_145] : memref<25x4x128xf32, #tpu.memory_space<vmem>>, vector<1x4x128xf32>
    %120 = vector.shape_cast %119 : vector<1x4x128xf32> to vector<4x128xf32>
    %cst_146 = arith.constant dense<0.000000e+00> : vector<64x128xf32>
    %121 = tpu.matmul %118, %120, %cst_146 {dimension_numbers = #tpu.dot_dimension_numbers<[1], [0], [0], [1], [0, 0, 1, 1], [], []>} : vector<64x4xf32>, vector<4x128xf32>, vector<64x128xf32> -> vector<64x128xf32>
    %122 = arith.addf %117, %121 : vector<64x128xf32>
    %c0_147 = arith.constant 0 : index
    %c0_148 = arith.constant 0 : index
    %123 = vector.load %arg8[%c0_147, %c0_148] : memref<64x128xf32, #tpu.memory_space<vmem>>, vector<64x128xf32>
    tpu.vector_store %arg8[%c0_147, %c0_148], %122 {strides = array<i32>} : memref<64x128xf32, #tpu.memory_space<vmem>>, vector<64x128xf32>,
    %c0_149 = arith.constant 0 : index
    %c2_150 = arith.constant 2 : index
    %c1_151 = arith.constant 1 : index
    %c0_152 = arith.constant 0 : index
    %124 = vector.load %arg3[%c0_149, %c2_150, %c1_151, %c0_152] : memref<1x8x18x4xf32, #tpu.memory_space<vmem>>, vector<1x4x16x4xf32>
    %125 = vector.shape_cast %124 : vector<1x4x16x4xf32> to vector<4x16x4xf32>
    %c0_153 = arith.constant 0 : index
    %c0_154 = arith.constant 0 : index
    %126 = vector.load %arg8[%c0_153, %c0_154] : memref<64x128xf32, #tpu.memory_space<vmem>>, vector<64x128xf32>
    %127 = vector.shape_cast %125 : vector<4x16x4xf32> to vector<64x4xf32>
    %c13 = arith.constant 13 : index
    %c0_155 = arith.constant 0 : index
    %c0_156 = arith.constant 0 : index
    %128 = vector.load %arg4[%c13, %c0_155, %c0_156] : memref<25x4x128xf32, #tpu.memory_space<vmem>>, vector<1x4x128xf32>
    %129 = vector.shape_cast %128 : vector<1x4x128xf32> to vector<4x128xf32>
    %cst_157 = arith.constant dense<0.000000e+00> : vector<64x128xf32>
    %130 = tpu.matmul %127, %129, %cst_157 {dimension_numbers = #tpu.dot_dimension_numbers<[1], [0], [0], [1], [0, 0, 1, 1], [], []>} : vector<64x4xf32>, vector<4x128xf32>, vector<64x128xf32> -> vector<64x128xf32>
    %131 = arith.addf %126, %130 : vector<64x128xf32>
    %c0_158 = arith.constant 0 : index
    %c0_159 = arith.constant 0 : index
    %132 = vector.load %arg8[%c0_158, %c0_159] : memref<64x128xf32, #tpu.memory_space<vmem>>, vector<64x128xf32>
    tpu.vector_store %arg8[%c0_158, %c0_159], %131 {strides = array<i32>} : memref<64x128xf32, #tpu.memory_space<vmem>>, vector<64x128xf32>,
    %c0_160 = arith.constant 0 : index
    %c2_161 = arith.constant 2 : index
    %c2_162 = arith.constant 2 : index
    %c0_163 = arith.constant 0 : index
    %133 = vector.load %arg2[%c0_160, %c2_161, %c2_162, %c0_163] : memref<1x8x18x4xf32, #tpu.memory_space<vmem>>, vector<1x4x16x4xf32>
    %134 = vector.shape_cast %133 : vector<1x4x16x4xf32> to vector<4x16x4xf32>
    %c0_164 = arith.constant 0 : index
    %c0_165 = arith.constant 0 : index
    %135 = vector.load %arg8[%c0_164, %c0_165] : memref<64x128xf32, #tpu.memory_space<vmem>>, vector<64x128xf32>
    %136 = vector.shape_cast %134 : vector<4x16x4xf32> to vector<64x4xf32>
    %c14 = arith.constant 14 : index
    %c0_166 = arith.constant 0 : index
    %c0_167 = arith.constant 0 : index
    %137 = vector.load %arg4[%c14, %c0_166, %c0_167] : memref<25x4x128xf32, #tpu.memory_space<vmem>>, vector<1x4x128xf32>
    %138 = vector.shape_cast %137 : vector<1x4x128xf32> to vector<4x128xf32>
    %cst_168 = arith.constant dense<0.000000e+00> : vector<64x128xf32>
    %139 = tpu.matmul %136, %138, %cst_168 {dimension_numbers = #tpu.dot_dimension_numbers<[1], [0], [0], [1], [0, 0, 1, 1], [], []>} : vector<64x4xf32>, vector<4x128xf32>, vector<64x128xf32> -> vector<64x128xf32>
    %140 = arith.addf %135, %139 : vector<64x128xf32>
    %c0_169 = arith.constant 0 : index
    %c0_170 = arith.constant 0 : index
    %141 = vector.load %arg8[%c0_169, %c0_170] : memref<64x128xf32, #tpu.memory_space<vmem>>, vector<64x128xf32>
    tpu.vector_store %arg8[%c0_169, %c0_170], %140 {strides = array<i32>} : memref<64x128xf32, #tpu.memory_space<vmem>>, vector<64x128xf32>,
    %c0_171 = arith.constant 0 : index
    %c3_172 = arith.constant 3 : index
    %c0_173 = arith.constant 0 : index
    %c0_174 = arith.constant 0 : index
    %142 = vector.load %arg2[%c0_171, %c3_172, %c0_173, %c0_174] : memref<1x8x18x4xf32, #tpu.memory_space<vmem>>, vector<1x4x16x4xf32>
    %143 = vector.shape_cast %142 : vector<1x4x16x4xf32> to vector<4x16x4xf32>
    %c0_175 = arith.constant 0 : index
    %c0_176 = arith.constant 0 : index
    %144 = vector.load %arg8[%c0_175, %c0_176] : memref<64x128xf32, #tpu.memory_space<vmem>>, vector<64x128xf32>
    %145 = vector.shape_cast %143 : vector<4x16x4xf32> to vector<64x4xf32>
    %c15 = arith.constant 15 : index
    %c0_177 = arith.constant 0 : index
    %c0_178 = arith.constant 0 : index
    %146 = vector.load %arg4[%c15, %c0_177, %c0_178] : memref<25x4x128xf32, #tpu.memory_space<vmem>>, vector<1x4x128xf32>
    %147 = vector.shape_cast %146 : vector<1x4x128xf32> to vector<4x128xf32>
    %cst_179 = arith.constant dense<0.000000e+00> : vector<64x128xf32>
    %148 = tpu.matmul %145, %147, %cst_179 {dimension_numbers = #tpu.dot_dimension_numbers<[1], [0], [0], [1], [0, 0, 1, 1], [], []>} : vector<64x4xf32>, vector<4x128xf32>, vector<64x128xf32> -> vector<64x128xf32>
    %149 = arith.addf %144, %148 : vector<64x128xf32>
    %c0_180 = arith.constant 0 : index
    %c0_181 = arith.constant 0 : index
    %150 = vector.load %arg8[%c0_180, %c0_181] : memref<64x128xf32, #tpu.memory_space<vmem>>, vector<64x128xf32>
    tpu.vector_store %arg8[%c0_180, %c0_181], %149 {strides = array<i32>} : memref<64x128xf32, #tpu.memory_space<vmem>>, vector<64x128xf32>,
    %c0_182 = arith.constant 0 : index
    %c3_183 = arith.constant 3 : index
    %c0_184 = arith.constant 0 : index
    %c0_185 = arith.constant 0 : index
    %151 = vector.load %arg3[%c0_182, %c3_183, %c0_184, %c0_185] : memref<1x8x18x4xf32, #tpu.memory_space<vmem>>, vector<1x4x16x4xf32>
    %152 = vector.shape_cast %151 : vector<1x4x16x4xf32> to vector<4x16x4xf32>
    %c0_186 = arith.constant 0 : index
    %c0_187 = arith.constant 0 : index
    %153 = vector.load %arg8[%c0_186, %c0_187] : memref<64x128xf32, #tpu.memory_space<vmem>>, vector<64x128xf32>
    %154 = vector.shape_cast %152 : vector<4x16x4xf32> to vector<64x4xf32>
    %c16 = arith.constant 16 : index
    %c0_188 = arith.constant 0 : index
    %c0_189 = arith.constant 0 : index
    %155 = vector.load %arg4[%c16, %c0_188, %c0_189] : memref<25x4x128xf32, #tpu.memory_space<vmem>>, vector<1x4x128xf32>
    %156 = vector.shape_cast %155 : vector<1x4x128xf32> to vector<4x128xf32>
    %cst_190 = arith.constant dense<0.000000e+00> : vector<64x128xf32>
    %157 = tpu.matmul %154, %156, %cst_190 {dimension_numbers = #tpu.dot_dimension_numbers<[1], [0], [0], [1], [0, 0, 1, 1], [], []>} : vector<64x4xf32>, vector<4x128xf32>, vector<64x128xf32> -> vector<64x128xf32>
    %158 = arith.addf %153, %157 : vector<64x128xf32>
    %c0_191 = arith.constant 0 : index
    %c0_192 = arith.constant 0 : index
    %159 = vector.load %arg8[%c0_191, %c0_192] : memref<64x128xf32, #tpu.memory_space<vmem>>, vector<64x128xf32>
    tpu.vector_store %arg8[%c0_191, %c0_192], %158 {strides = array<i32>} : memref<64x128xf32, #tpu.memory_space<vmem>>, vector<64x128xf32>,
    %c0_193 = arith.constant 0 : index
    %c3_194 = arith.constant 3 : index
    %c1_195 = arith.constant 1 : index
    %c0_196 = arith.constant 0 : index
    %160 = vector.load %arg2[%c0_193, %c3_194, %c1_195, %c0_196] : memref<1x8x18x4xf32, #tpu.memory_space<vmem>>, vector<1x4x16x4xf32>
    %161 = vector.shape_cast %160 : vector<1x4x16x4xf32> to vector<4x16x4xf32>
    %c0_197 = arith.constant 0 : index
    %c0_198 = arith.constant 0 : index
    %162 = vector.load %arg8[%c0_197, %c0_198] : memref<64x128xf32, #tpu.memory_space<vmem>>, vector<64x128xf32>
    %163 = vector.shape_cast %161 : vector<4x16x4xf32> to vector<64x4xf32>
    %c17 = arith.constant 17 : index
    %c0_199 = arith.constant 0 : index
    %c0_200 = arith.constant 0 : index
    %164 = vector.load %arg4[%c17, %c0_199, %c0_200] : memref<25x4x128xf32, #tpu.memory_space<vmem>>, vector<1x4x128xf32>
    %165 = vector.shape_cast %164 : vector<1x4x128xf32> to vector<4x128xf32>
    %cst_201 = arith.constant dense<0.000000e+00> : vector<64x128xf32>
    %166 = tpu.matmul %163, %165, %cst_201 {dimension_numbers = #tpu.dot_dimension_numbers<[1], [0], [0], [1], [0, 0, 1, 1], [], []>} : vector<64x4xf32>, vector<4x128xf32>, vector<64x128xf32> -> vector<64x128xf32>
    %167 = arith.addf %162, %166 : vector<64x128xf32>
    %c0_202 = arith.constant 0 : index
    %c0_203 = arith.constant 0 : index
    %168 = vector.load %arg8[%c0_202, %c0_203] : memref<64x128xf32, #tpu.memory_space<vmem>>, vector<64x128xf32>
    tpu.vector_store %arg8[%c0_202, %c0_203], %167 {strides = array<i32>} : memref<64x128xf32, #tpu.memory_space<vmem>>, vector<64x128xf32>,
    %c0_204 = arith.constant 0 : index
    %c3_205 = arith.constant 3 : index
    %c1_206 = arith.constant 1 : index
    %c0_207 = arith.constant 0 : index
    %169 = vector.load %arg3[%c0_204, %c3_205, %c1_206, %c0_207] : memref<1x8x18x4xf32, #tpu.memory_space<vmem>>, vector<1x4x16x4xf32>
    %170 = vector.shape_cast %169 : vector<1x4x16x4xf32> to vector<4x16x4xf32>
    %c0_208 = arith.constant 0 : index
    %c0_209 = arith.constant 0 : index
    %171 = vector.load %arg8[%c0_208, %c0_209] : memref<64x128xf32, #tpu.memory_space<vmem>>, vector<64x128xf32>
    %172 = vector.shape_cast %170 : vector<4x16x4xf32> to vector<64x4xf32>
    %c18 = arith.constant 18 : index
    %c0_210 = arith.constant 0 : index
    %c0_211 = arith.constant 0 : index
    %173 = vector.load %arg4[%c18, %c0_210, %c0_211] : memref<25x4x128xf32, #tpu.memory_space<vmem>>, vector<1x4x128xf32>
    %174 = vector.shape_cast %173 : vector<1x4x128xf32> to vector<4x128xf32>
    %cst_212 = arith.constant dense<0.000000e+00> : vector<64x128xf32>
    %175 = tpu.matmul %172, %174, %cst_212 {dimension_numbers = #tpu.dot_dimension_numbers<[1], [0], [0], [1], [0, 0, 1, 1], [], []>} : vector<64x4xf32>, vector<4x128xf32>, vector<64x128xf32> -> vector<64x128xf32>
    %176 = arith.addf %171, %175 : vector<64x128xf32>
    %c0_213 = arith.constant 0 : index
    %c0_214 = arith.constant 0 : index
    %177 = vector.load %arg8[%c0_213, %c0_214] : memref<64x128xf32, #tpu.memory_space<vmem>>, vector<64x128xf32>
    tpu.vector_store %arg8[%c0_213, %c0_214], %176 {strides = array<i32>} : memref<64x128xf32, #tpu.memory_space<vmem>>, vector<64x128xf32>,
    %c0_215 = arith.constant 0 : index
    %c3_216 = arith.constant 3 : index
    %c2_217 = arith.constant 2 : index
    %c0_218 = arith.constant 0 : index
    %178 = vector.load %arg2[%c0_215, %c3_216, %c2_217, %c0_218] : memref<1x8x18x4xf32, #tpu.memory_space<vmem>>, vector<1x4x16x4xf32>
    %179 = vector.shape_cast %178 : vector<1x4x16x4xf32> to vector<4x16x4xf32>
    %c0_219 = arith.constant 0 : index
    %c0_220 = arith.constant 0 : index
    %180 = vector.load %arg8[%c0_219, %c0_220] : memref<64x128xf32, #tpu.memory_space<vmem>>, vector<64x128xf32>
    %181 = vector.shape_cast %179 : vector<4x16x4xf32> to vector<64x4xf32>
    %c19 = arith.constant 19 : index
    %c0_221 = arith.constant 0 : index
    %c0_222 = arith.constant 0 : index
    %182 = vector.load %arg4[%c19, %c0_221, %c0_222] : memref<25x4x128xf32, #tpu.memory_space<vmem>>, vector<1x4x128xf32>
    %183 = vector.shape_cast %182 : vector<1x4x128xf32> to vector<4x128xf32>
    %cst_223 = arith.constant dense<0.000000e+00> : vector<64x128xf32>
    %184 = tpu.matmul %181, %183, %cst_223 {dimension_numbers = #tpu.dot_dimension_numbers<[1], [0], [0], [1], [0, 0, 1, 1], [], []>} : vector<64x4xf32>, vector<4x128xf32>, vector<64x128xf32> -> vector<64x128xf32>
    %185 = arith.addf %180, %184 : vector<64x128xf32>
    %c0_224 = arith.constant 0 : index
    %c0_225 = arith.constant 0 : index
    %186 = vector.load %arg8[%c0_224, %c0_225] : memref<64x128xf32, #tpu.memory_space<vmem>>, vector<64x128xf32>
    tpu.vector_store %arg8[%c0_224, %c0_225], %185 {strides = array<i32>} : memref<64x128xf32, #tpu.memory_space<vmem>>, vector<64x128xf32>,
    %c0_226 = arith.constant 0 : index
    %c4_227 = arith.constant 4 : index
    %c0_228 = arith.constant 0 : index
    %c0_229 = arith.constant 0 : index
    %187 = vector.load %arg2[%c0_226, %c4_227, %c0_228, %c0_229] : memref<1x8x18x4xf32, #tpu.memory_space<vmem>>, vector<1x4x16x4xf32>
    %188 = vector.shape_cast %187 : vector<1x4x16x4xf32> to vector<4x16x4xf32>
    %c0_230 = arith.constant 0 : index
    %c0_231 = arith.constant 0 : index
    %189 = vector.load %arg8[%c0_230, %c0_231] : memref<64x128xf32, #tpu.memory_space<vmem>>, vector<64x128xf32>
    %190 = vector.shape_cast %188 : vector<4x16x4xf32> to vector<64x4xf32>
    %c20 = arith.constant 20 : index
    %c0_232 = arith.constant 0 : index
    %c0_233 = arith.constant 0 : index
    %191 = vector.load %arg4[%c20, %c0_232, %c0_233] : memref<25x4x128xf32, #tpu.memory_space<vmem>>, vector<1x4x128xf32>
    %192 = vector.shape_cast %191 : vector<1x4x128xf32> to vector<4x128xf32>
    %cst_234 = arith.constant dense<0.000000e+00> : vector<64x128xf32>
    %193 = tpu.matmul %190, %192, %cst_234 {dimension_numbers = #tpu.dot_dimension_numbers<[1], [0], [0], [1], [0, 0, 1, 1], [], []>} : vector<64x4xf32>, vector<4x128xf32>, vector<64x128xf32> -> vector<64x128xf32>
    %194 = arith.addf %189, %193 : vector<64x128xf32>
    %c0_235 = arith.constant 0 : index
    %c0_236 = arith.constant 0 : index
    %195 = vector.load %arg8[%c0_235, %c0_236] : memref<64x128xf32, #tpu.memory_space<vmem>>, vector<64x128xf32>
    tpu.vector_store %arg8[%c0_235, %c0_236], %194 {strides = array<i32>} : memref<64x128xf32, #tpu.memory_space<vmem>>, vector<64x128xf32>,
    %c0_237 = arith.constant 0 : index
    %c4_238 = arith.constant 4 : index
    %c0_239 = arith.constant 0 : index
    %c0_240 = arith.constant 0 : index
    %196 = vector.load %arg3[%c0_237, %c4_238, %c0_239, %c0_240] : memref<1x8x18x4xf32, #tpu.memory_space<vmem>>, vector<1x4x16x4xf32>
    %197 = vector.shape_cast %196 : vector<1x4x16x4xf32> to vector<4x16x4xf32>
    %c0_241 = arith.constant 0 : index
    %c0_242 = arith.constant 0 : index
    %198 = vector.load %arg8[%c0_241, %c0_242] : memref<64x128xf32, #tpu.memory_space<vmem>>, vector<64x128xf32>
    %199 = vector.shape_cast %197 : vector<4x16x4xf32> to vector<64x4xf32>
    %c21 = arith.constant 21 : index
    %c0_243 = arith.constant 0 : index
    %c0_244 = arith.constant 0 : index
    %200 = vector.load %arg4[%c21, %c0_243, %c0_244] : memref<25x4x128xf32, #tpu.memory_space<vmem>>, vector<1x4x128xf32>
    %201 = vector.shape_cast %200 : vector<1x4x128xf32> to vector<4x128xf32>
    %cst_245 = arith.constant dense<0.000000e+00> : vector<64x128xf32>
    %202 = tpu.matmul %199, %201, %cst_245 {dimension_numbers = #tpu.dot_dimension_numbers<[1], [0], [0], [1], [0, 0, 1, 1], [], []>} : vector<64x4xf32>, vector<4x128xf32>, vector<64x128xf32> -> vector<64x128xf32>
    %203 = arith.addf %198, %202 : vector<64x128xf32>
    %c0_246 = arith.constant 0 : index
    %c0_247 = arith.constant 0 : index
    %204 = vector.load %arg8[%c0_246, %c0_247] : memref<64x128xf32, #tpu.memory_space<vmem>>, vector<64x128xf32>
    tpu.vector_store %arg8[%c0_246, %c0_247], %203 {strides = array<i32>} : memref<64x128xf32, #tpu.memory_space<vmem>>, vector<64x128xf32>,
    %c0_248 = arith.constant 0 : index
    %c4_249 = arith.constant 4 : index
    %c1_250 = arith.constant 1 : index
    %c0_251 = arith.constant 0 : index
    %205 = vector.load %arg2[%c0_248, %c4_249, %c1_250, %c0_251] : memref<1x8x18x4xf32, #tpu.memory_space<vmem>>, vector<1x4x16x4xf32>
    %206 = vector.shape_cast %205 : vector<1x4x16x4xf32> to vector<4x16x4xf32>
    %c0_252 = arith.constant 0 : index
    %c0_253 = arith.constant 0 : index
    %207 = vector.load %arg8[%c0_252, %c0_253] : memref<64x128xf32, #tpu.memory_space<vmem>>, vector<64x128xf32>
    %208 = vector.shape_cast %206 : vector<4x16x4xf32> to vector<64x4xf32>
    %c22 = arith.constant 22 : index
    %c0_254 = arith.constant 0 : index
    %c0_255 = arith.constant 0 : index
    %209 = vector.load %arg4[%c22, %c0_254, %c0_255] : memref<25x4x128xf32, #tpu.memory_space<vmem>>, vector<1x4x128xf32>
    %210 = vector.shape_cast %209 : vector<1x4x128xf32> to vector<4x128xf32>
    %cst_256 = arith.constant dense<0.000000e+00> : vector<64x128xf32>
    %211 = tpu.matmul %208, %210, %cst_256 {dimension_numbers = #tpu.dot_dimension_numbers<[1], [0], [0], [1], [0, 0, 1, 1], [], []>} : vector<64x4xf32>, vector<4x128xf32>, vector<64x128xf32> -> vector<64x128xf32>
    %212 = arith.addf %207, %211 : vector<64x128xf32>
    %c0_257 = arith.constant 0 : index
    %c0_258 = arith.constant 0 : index
    %213 = vector.load %arg8[%c0_257, %c0_258] : memref<64x128xf32, #tpu.memory_space<vmem>>, vector<64x128xf32>
    tpu.vector_store %arg8[%c0_257, %c0_258], %212 {strides = array<i32>} : memref<64x128xf32, #tpu.memory_space<vmem>>, vector<64x128xf32>,
    %c0_259 = arith.constant 0 : index
    %c4_260 = arith.constant 4 : index
    %c1_261 = arith.constant 1 : index
    %c0_262 = arith.constant 0 : index
    %214 = vector.load %arg3[%c0_259, %c4_260, %c1_261, %c0_262] : memref<1x8x18x4xf32, #tpu.memory_space<vmem>>, vector<1x4x16x4xf32>
    %215 = vector.shape_cast %214 : vector<1x4x16x4xf32> to vector<4x16x4xf32>
    %c0_263 = arith.constant 0 : index
    %c0_264 = arith.constant 0 : index
    %216 = vector.load %arg8[%c0_263, %c0_264] : memref<64x128xf32, #tpu.memory_space<vmem>>, vector<64x128xf32>
    %217 = vector.shape_cast %215 : vector<4x16x4xf32> to vector<64x4xf32>
    %c23 = arith.constant 23 : index
    %c0_265 = arith.constant 0 : index
    %c0_266 = arith.constant 0 : index
    %218 = vector.load %arg4[%c23, %c0_265, %c0_266] : memref<25x4x128xf32, #tpu.memory_space<vmem>>, vector<1x4x128xf32>
    %219 = vector.shape_cast %218 : vector<1x4x128xf32> to vector<4x128xf32>
    %cst_267 = arith.constant dense<0.000000e+00> : vector<64x128xf32>
    %220 = tpu.matmul %217, %219, %cst_267 {dimension_numbers = #tpu.dot_dimension_numbers<[1], [0], [0], [1], [0, 0, 1, 1], [], []>} : vector<64x4xf32>, vector<4x128xf32>, vector<64x128xf32> -> vector<64x128xf32>
    %221 = arith.addf %216, %220 : vector<64x128xf32>
    %c0_268 = arith.constant 0 : index
    %c0_269 = arith.constant 0 : index
    %222 = vector.load %arg8[%c0_268, %c0_269] : memref<64x128xf32, #tpu.memory_space<vmem>>, vector<64x128xf32>
    tpu.vector_store %arg8[%c0_268, %c0_269], %221 {strides = array<i32>} : memref<64x128xf32, #tpu.memory_space<vmem>>, vector<64x128xf32>,
    %c0_270 = arith.constant 0 : index
    %c4_271 = arith.constant 4 : index
    %c2_272 = arith.constant 2 : index
    %c0_273 = arith.constant 0 : index
    %223 = vector.load %arg2[%c0_270, %c4_271, %c2_272, %c0_273] : memref<1x8x18x4xf32, #tpu.memory_space<vmem>>, vector<1x4x16x4xf32>
    %224 = vector.shape_cast %223 : vector<1x4x16x4xf32> to vector<4x16x4xf32>
    %c0_274 = arith.constant 0 : index
    %c0_275 = arith.constant 0 : index
    %225 = vector.load %arg8[%c0_274, %c0_275] : memref<64x128xf32, #tpu.memory_space<vmem>>, vector<64x128xf32>
    %226 = vector.shape_cast %224 : vector<4x16x4xf32> to vector<64x4xf32>
    %c24 = arith.constant 24 : index
    %c0_276 = arith.constant 0 : index
    %c0_277 = arith.constant 0 : index
    %227 = vector.load %arg4[%c24, %c0_276, %c0_277] : memref<25x4x128xf32, #tpu.memory_space<vmem>>, vector<1x4x128xf32>
    %228 = vector.shape_cast %227 : vector<1x4x128xf32> to vector<4x128xf32>
    %cst_278 = arith.constant dense<0.000000e+00> : vector<64x128xf32>
    %229 = tpu.matmul %226, %228, %cst_278 {dimension_numbers = #tpu.dot_dimension_numbers<[1], [0], [0], [1], [0, 0, 1, 1], [], []>} : vector<64x4xf32>, vector<4x128xf32>, vector<64x128xf32> -> vector<64x128xf32>
    %230 = arith.addf %225, %229 : vector<64x128xf32>
    %c0_279 = arith.constant 0 : index
    %c0_280 = arith.constant 0 : index
    %231 = vector.load %arg8[%c0_279, %c0_280] : memref<64x128xf32, #tpu.memory_space<vmem>>, vector<64x128xf32>
    tpu.vector_store %arg8[%c0_279, %c0_280], %230 {strides = array<i32>} : memref<64x128xf32, #tpu.memory_space<vmem>>, vector<64x128xf32>,
    %c0_281 = arith.constant 0 : index
    %c0_282 = arith.constant 0 : index
    %c0_283 = arith.constant 0 : index
    %c0_284 = arith.constant 0 : index
    %232 = vector.load %arg3[%c0_281, %c0_282, %c0_283, %c0_284] : memref<1x8x18x4xf32, #tpu.memory_space<vmem>>, vector<1x4x16x4xf32>
    %233 = vector.shape_cast %232 : vector<1x4x16x4xf32> to vector<4x16x4xf32>
    %c0_285 = arith.constant 0 : index
    %c0_286 = arith.constant 0 : index
    %234 = vector.load %arg9[%c0_285, %c0_286] : memref<64x128xf32, #tpu.memory_space<vmem>>, vector<64x128xf32>
    %235 = vector.shape_cast %233 : vector<4x16x4xf32> to vector<64x4xf32>
    %c0_287 = arith.constant 0 : index
    %c0_288 = arith.constant 0 : index
    %c0_289 = arith.constant 0 : index
    %236 = vector.load %arg4[%c0_287, %c0_288, %c0_289] : memref<25x4x128xf32, #tpu.memory_space<vmem>>, vector<1x4x128xf32>
    %237 = vector.shape_cast %236 : vector<1x4x128xf32> to vector<4x128xf32>
    %cst_290 = arith.constant dense<0.000000e+00> : vector<64x128xf32>
    %238 = tpu.matmul %235, %237, %cst_290 {dimension_numbers = #tpu.dot_dimension_numbers<[1], [0], [0], [1], [0, 0, 1, 1], [], []>} : vector<64x4xf32>, vector<4x128xf32>, vector<64x128xf32> -> vector<64x128xf32>
    %239 = arith.addf %234, %238 : vector<64x128xf32>
    %c0_291 = arith.constant 0 : index
    %c0_292 = arith.constant 0 : index
    %240 = vector.load %arg9[%c0_291, %c0_292] : memref<64x128xf32, #tpu.memory_space<vmem>>, vector<64x128xf32>
    tpu.vector_store %arg9[%c0_291, %c0_292], %239 {strides = array<i32>} : memref<64x128xf32, #tpu.memory_space<vmem>>, vector<64x128xf32>,
    %c0_293 = arith.constant 0 : index
    %c0_294 = arith.constant 0 : index
    %c1_295 = arith.constant 1 : index
    %c0_296 = arith.constant 0 : index
    %241 = vector.load %arg2[%c0_293, %c0_294, %c1_295, %c0_296] : memref<1x8x18x4xf32, #tpu.memory_space<vmem>>, vector<1x4x16x4xf32>
    %242 = vector.shape_cast %241 : vector<1x4x16x4xf32> to vector<4x16x4xf32>
    %c0_297 = arith.constant 0 : index
    %c0_298 = arith.constant 0 : index
    %243 = vector.load %arg9[%c0_297, %c0_298] : memref<64x128xf32, #tpu.memory_space<vmem>>, vector<64x128xf32>
    %244 = vector.shape_cast %242 : vector<4x16x4xf32> to vector<64x4xf32>
    %c1_299 = arith.constant 1 : index
    %c0_300 = arith.constant 0 : index
    %c0_301 = arith.constant 0 : index
    %245 = vector.load %arg4[%c1_299, %c0_300, %c0_301] : memref<25x4x128xf32, #tpu.memory_space<vmem>>, vector<1x4x128xf32>
    %246 = vector.shape_cast %245 : vector<1x4x128xf32> to vector<4x128xf32>
    %cst_302 = arith.constant dense<0.000000e+00> : vector<64x128xf32>
    %247 = tpu.matmul %244, %246, %cst_302 {dimension_numbers = #tpu.dot_dimension_numbers<[1], [0], [0], [1], [0, 0, 1, 1], [], []>} : vector<64x4xf32>, vector<4x128xf32>, vector<64x128xf32> -> vector<64x128xf32>
    %248 = arith.addf %243, %247 : vector<64x128xf32>
    %c0_303 = arith.constant 0 : index
    %c0_304 = arith.constant 0 : index
    %249 = vector.load %arg9[%c0_303, %c0_304] : memref<64x128xf32, #tpu.memory_space<vmem>>, vector<64x128xf32>
    tpu.vector_store %arg9[%c0_303, %c0_304], %248 {strides = array<i32>} : memref<64x128xf32, #tpu.memory_space<vmem>>, vector<64x128xf32>,
    %c0_305 = arith.constant 0 : index
    %c0_306 = arith.constant 0 : index
    %c1_307 = arith.constant 1 : index
    %c0_308 = arith.constant 0 : index
    %250 = vector.load %arg3[%c0_305, %c0_306, %c1_307, %c0_308] : memref<1x8x18x4xf32, #tpu.memory_space<vmem>>, vector<1x4x16x4xf32>
    %251 = vector.shape_cast %250 : vector<1x4x16x4xf32> to vector<4x16x4xf32>
    %c0_309 = arith.constant 0 : index
    %c0_310 = arith.constant 0 : index
    %252 = vector.load %arg9[%c0_309, %c0_310] : memref<64x128xf32, #tpu.memory_space<vmem>>, vector<64x128xf32>
    %253 = vector.shape_cast %251 : vector<4x16x4xf32> to vector<64x4xf32>
    %c2_311 = arith.constant 2 : index
    %c0_312 = arith.constant 0 : index
    %c0_313 = arith.constant 0 : index
    %254 = vector.load %arg4[%c2_311, %c0_312, %c0_313] : memref<25x4x128xf32, #tpu.memory_space<vmem>>, vector<1x4x128xf32>
    %255 = vector.shape_cast %254 : vector<1x4x128xf32> to vector<4x128xf32>
    %cst_314 = arith.constant dense<0.000000e+00> : vector<64x128xf32>
    %256 = tpu.matmul %253, %255, %cst_314 {dimension_numbers = #tpu.dot_dimension_numbers<[1], [0], [0], [1], [0, 0, 1, 1], [], []>} : vector<64x4xf32>, vector<4x128xf32>, vector<64x128xf32> -> vector<64x128xf32>
    %257 = arith.addf %252, %256 : vector<64x128xf32>
    %c0_315 = arith.constant 0 : index
    %c0_316 = arith.constant 0 : index
    %258 = vector.load %arg9[%c0_315, %c0_316] : memref<64x128xf32, #tpu.memory_space<vmem>>, vector<64x128xf32>
    tpu.vector_store %arg9[%c0_315, %c0_316], %257 {strides = array<i32>} : memref<64x128xf32, #tpu.memory_space<vmem>>, vector<64x128xf32>,
    %c0_317 = arith.constant 0 : index
    %c0_318 = arith.constant 0 : index
    %c2_319 = arith.constant 2 : index
    %c0_320 = arith.constant 0 : index
    %259 = vector.load %arg2[%c0_317, %c0_318, %c2_319, %c0_320] : memref<1x8x18x4xf32, #tpu.memory_space<vmem>>, vector<1x4x16x4xf32>
    %260 = vector.shape_cast %259 : vector<1x4x16x4xf32> to vector<4x16x4xf32>
    %c0_321 = arith.constant 0 : index
    %c0_322 = arith.constant 0 : index
    %261 = vector.load %arg9[%c0_321, %c0_322] : memref<64x128xf32, #tpu.memory_space<vmem>>, vector<64x128xf32>
    %262 = vector.shape_cast %260 : vector<4x16x4xf32> to vector<64x4xf32>
    %c3_323 = arith.constant 3 : index
    %c0_324 = arith.constant 0 : index
    %c0_325 = arith.constant 0 : index
    %263 = vector.load %arg4[%c3_323, %c0_324, %c0_325] : memref<25x4x128xf32, #tpu.memory_space<vmem>>, vector<1x4x128xf32>
    %264 = vector.shape_cast %263 : vector<1x4x128xf32> to vector<4x128xf32>
    %cst_326 = arith.constant dense<0.000000e+00> : vector<64x128xf32>
    %265 = tpu.matmul %262, %264, %cst_326 {dimension_numbers = #tpu.dot_dimension_numbers<[1], [0], [0], [1], [0, 0, 1, 1], [], []>} : vector<64x4xf32>, vector<4x128xf32>, vector<64x128xf32> -> vector<64x128xf32>
    %266 = arith.addf %261, %265 : vector<64x128xf32>
    %c0_327 = arith.constant 0 : index
    %c0_328 = arith.constant 0 : index
    %267 = vector.load %arg9[%c0_327, %c0_328] : memref<64x128xf32, #tpu.memory_space<vmem>>, vector<64x128xf32>
    tpu.vector_store %arg9[%c0_327, %c0_328], %266 {strides = array<i32>} : memref<64x128xf32, #tpu.memory_space<vmem>>, vector<64x128xf32>,
    %c0_329 = arith.constant 0 : index
    %c0_330 = arith.constant 0 : index
    %c2_331 = arith.constant 2 : index
    %c0_332 = arith.constant 0 : index
    %268 = vector.load %arg3[%c0_329, %c0_330, %c2_331, %c0_332] : memref<1x8x18x4xf32, #tpu.memory_space<vmem>>, vector<1x4x16x4xf32>
    %269 = vector.shape_cast %268 : vector<1x4x16x4xf32> to vector<4x16x4xf32>
    %c0_333 = arith.constant 0 : index
    %c0_334 = arith.constant 0 : index
    %270 = vector.load %arg9[%c0_333, %c0_334] : memref<64x128xf32, #tpu.memory_space<vmem>>, vector<64x128xf32>
    %271 = vector.shape_cast %269 : vector<4x16x4xf32> to vector<64x4xf32>
    %c4_335 = arith.constant 4 : index
    %c0_336 = arith.constant 0 : index
    %c0_337 = arith.constant 0 : index
    %272 = vector.load %arg4[%c4_335, %c0_336, %c0_337] : memref<25x4x128xf32, #tpu.memory_space<vmem>>, vector<1x4x128xf32>
    %273 = vector.shape_cast %272 : vector<1x4x128xf32> to vector<4x128xf32>
    %cst_338 = arith.constant dense<0.000000e+00> : vector<64x128xf32>
    %274 = tpu.matmul %271, %273, %cst_338 {dimension_numbers = #tpu.dot_dimension_numbers<[1], [0], [0], [1], [0, 0, 1, 1], [], []>} : vector<64x4xf32>, vector<4x128xf32>, vector<64x128xf32> -> vector<64x128xf32>
    %275 = arith.addf %270, %274 : vector<64x128xf32>
    %c0_339 = arith.constant 0 : index
    %c0_340 = arith.constant 0 : index
    %276 = vector.load %arg9[%c0_339, %c0_340] : memref<64x128xf32, #tpu.memory_space<vmem>>, vector<64x128xf32>
    tpu.vector_store %arg9[%c0_339, %c0_340], %275 {strides = array<i32>} : memref<64x128xf32, #tpu.memory_space<vmem>>, vector<64x128xf32>,
    %c0_341 = arith.constant 0 : index
    %c1_342 = arith.constant 1 : index
    %c0_343 = arith.constant 0 : index
    %c0_344 = arith.constant 0 : index
    %277 = vector.load %arg3[%c0_341, %c1_342, %c0_343, %c0_344] : memref<1x8x18x4xf32, #tpu.memory_space<vmem>>, vector<1x4x16x4xf32>
    %278 = vector.shape_cast %277 : vector<1x4x16x4xf32> to vector<4x16x4xf32>
    %c0_345 = arith.constant 0 : index
    %c0_346 = arith.constant 0 : index
    %279 = vector.load %arg9[%c0_345, %c0_346] : memref<64x128xf32, #tpu.memory_space<vmem>>, vector<64x128xf32>
    %280 = vector.shape_cast %278 : vector<4x16x4xf32> to vector<64x4xf32>
    %c5_347 = arith.constant 5 : index
    %c0_348 = arith.constant 0 : index
    %c0_349 = arith.constant 0 : index
    %281 = vector.load %arg4[%c5_347, %c0_348, %c0_349] : memref<25x4x128xf32, #tpu.memory_space<vmem>>, vector<1x4x128xf32>
    %282 = vector.shape_cast %281 : vector<1x4x128xf32> to vector<4x128xf32>
    %cst_350 = arith.constant dense<0.000000e+00> : vector<64x128xf32>
    %283 = tpu.matmul %280, %282, %cst_350 {dimension_numbers = #tpu.dot_dimension_numbers<[1], [0], [0], [1], [0, 0, 1, 1], [], []>} : vector<64x4xf32>, vector<4x128xf32>, vector<64x128xf32> -> vector<64x128xf32>
    %284 = arith.addf %279, %283 : vector<64x128xf32>
    %c0_351 = arith.constant 0 : index
    %c0_352 = arith.constant 0 : index
    %285 = vector.load %arg9[%c0_351, %c0_352] : memref<64x128xf32, #tpu.memory_space<vmem>>, vector<64x128xf32>
    tpu.vector_store %arg9[%c0_351, %c0_352], %284 {strides = array<i32>} : memref<64x128xf32, #tpu.memory_space<vmem>>, vector<64x128xf32>,
    %c0_353 = arith.constant 0 : index
    %c1_354 = arith.constant 1 : index
    %c1_355 = arith.constant 1 : index
    %c0_356 = arith.constant 0 : index
    %286 = vector.load %arg2[%c0_353, %c1_354, %c1_355, %c0_356] : memref<1x8x18x4xf32, #tpu.memory_space<vmem>>, vector<1x4x16x4xf32>
    %287 = vector.shape_cast %286 : vector<1x4x16x4xf32> to vector<4x16x4xf32>
    %c0_357 = arith.constant 0 : index
    %c0_358 = arith.constant 0 : index
    %288 = vector.load %arg9[%c0_357, %c0_358] : memref<64x128xf32, #tpu.memory_space<vmem>>, vector<64x128xf32>
    %289 = vector.shape_cast %287 : vector<4x16x4xf32> to vector<64x4xf32>
    %c6_359 = arith.constant 6 : index
    %c0_360 = arith.constant 0 : index
    %c0_361 = arith.constant 0 : index
    %290 = vector.load %arg4[%c6_359, %c0_360, %c0_361] : memref<25x4x128xf32, #tpu.memory_space<vmem>>, vector<1x4x128xf32>
    %291 = vector.shape_cast %290 : vector<1x4x128xf32> to vector<4x128xf32>
    %cst_362 = arith.constant dense<0.000000e+00> : vector<64x128xf32>
    %292 = tpu.matmul %289, %291, %cst_362 {dimension_numbers = #tpu.dot_dimension_numbers<[1], [0], [0], [1], [0, 0, 1, 1], [], []>} : vector<64x4xf32>, vector<4x128xf32>, vector<64x128xf32> -> vector<64x128xf32>
    %293 = arith.addf %288, %292 : vector<64x128xf32>
    %c0_363 = arith.constant 0 : index
    %c0_364 = arith.constant 0 : index
    %294 = vector.load %arg9[%c0_363, %c0_364] : memref<64x128xf32, #tpu.memory_space<vmem>>, vector<64x128xf32>
    tpu.vector_store %arg9[%c0_363, %c0_364], %293 {strides = array<i32>} : memref<64x128xf32, #tpu.memory_space<vmem>>, vector<64x128xf32>,
    %c0_365 = arith.constant 0 : index
    %c1_366 = arith.constant 1 : index
    %c1_367 = arith.constant 1 : index
    %c0_368 = arith.constant 0 : index
    %295 = vector.load %arg3[%c0_365, %c1_366, %c1_367, %c0_368] : memref<1x8x18x4xf32, #tpu.memory_space<vmem>>, vector<1x4x16x4xf32>
    %296 = vector.shape_cast %295 : vector<1x4x16x4xf32> to vector<4x16x4xf32>
    %c0_369 = arith.constant 0 : index
    %c0_370 = arith.constant 0 : index
    %297 = vector.load %arg9[%c0_369, %c0_370] : memref<64x128xf32, #tpu.memory_space<vmem>>, vector<64x128xf32>
    %298 = vector.shape_cast %296 : vector<4x16x4xf32> to vector<64x4xf32>
    %c7_371 = arith.constant 7 : index
    %c0_372 = arith.constant 0 : index
    %c0_373 = arith.constant 0 : index
    %299 = vector.load %arg4[%c7_371, %c0_372, %c0_373] : memref<25x4x128xf32, #tpu.memory_space<vmem>>, vector<1x4x128xf32>
    %300 = vector.shape_cast %299 : vector<1x4x128xf32> to vector<4x128xf32>
    %cst_374 = arith.constant dense<0.000000e+00> : vector<64x128xf32>
    %301 = tpu.matmul %298, %300, %cst_374 {dimension_numbers = #tpu.dot_dimension_numbers<[1], [0], [0], [1], [0, 0, 1, 1], [], []>} : vector<64x4xf32>, vector<4x128xf32>, vector<64x128xf32> -> vector<64x128xf32>
    %302 = arith.addf %297, %301 : vector<64x128xf32>
    %c0_375 = arith.constant 0 : index
    %c0_376 = arith.constant 0 : index
    %303 = vector.load %arg9[%c0_375, %c0_376] : memref<64x128xf32, #tpu.memory_space<vmem>>, vector<64x128xf32>
    tpu.vector_store %arg9[%c0_375, %c0_376], %302 {strides = array<i32>} : memref<64x128xf32, #tpu.memory_space<vmem>>, vector<64x128xf32>,
    %c0_377 = arith.constant 0 : index
    %c1_378 = arith.constant 1 : index
    %c2_379 = arith.constant 2 : index
    %c0_380 = arith.constant 0 : index
    %304 = vector.load %arg2[%c0_377, %c1_378, %c2_379, %c0_380] : memref<1x8x18x4xf32, #tpu.memory_space<vmem>>, vector<1x4x16x4xf32>
    %305 = vector.shape_cast %304 : vector<1x4x16x4xf32> to vector<4x16x4xf32>
    %c0_381 = arith.constant 0 : index
    %c0_382 = arith.constant 0 : index
    %306 = vector.load %arg9[%c0_381, %c0_382] : memref<64x128xf32, #tpu.memory_space<vmem>>, vector<64x128xf32>
    %307 = vector.shape_cast %305 : vector<4x16x4xf32> to vector<64x4xf32>
    %c8_383 = arith.constant 8 : index
    %c0_384 = arith.constant 0 : index
    %c0_385 = arith.constant 0 : index
    %308 = vector.load %arg4[%c8_383, %c0_384, %c0_385] : memref<25x4x128xf32, #tpu.memory_space<vmem>>, vector<1x4x128xf32>
    %309 = vector.shape_cast %308 : vector<1x4x128xf32> to vector<4x128xf32>
    %cst_386 = arith.constant dense<0.000000e+00> : vector<64x128xf32>
    %310 = tpu.matmul %307, %309, %cst_386 {dimension_numbers = #tpu.dot_dimension_numbers<[1], [0], [0], [1], [0, 0, 1, 1], [], []>} : vector<64x4xf32>, vector<4x128xf32>, vector<64x128xf32> -> vector<64x128xf32>
    %311 = arith.addf %306, %310 : vector<64x128xf32>
    %c0_387 = arith.constant 0 : index
    %c0_388 = arith.constant 0 : index
    %312 = vector.load %arg9[%c0_387, %c0_388] : memref<64x128xf32, #tpu.memory_space<vmem>>, vector<64x128xf32>
    tpu.vector_store %arg9[%c0_387, %c0_388], %311 {strides = array<i32>} : memref<64x128xf32, #tpu.memory_space<vmem>>, vector<64x128xf32>,
    %c0_389 = arith.constant 0 : index
    %c1_390 = arith.constant 1 : index
    %c2_391 = arith.constant 2 : index
    %c0_392 = arith.constant 0 : index
    %313 = vector.load %arg3[%c0_389, %c1_390, %c2_391, %c0_392] : memref<1x8x18x4xf32, #tpu.memory_space<vmem>>, vector<1x4x16x4xf32>
    %314 = vector.shape_cast %313 : vector<1x4x16x4xf32> to vector<4x16x4xf32>
    %c0_393 = arith.constant 0 : index
    %c0_394 = arith.constant 0 : index
    %315 = vector.load %arg9[%c0_393, %c0_394] : memref<64x128xf32, #tpu.memory_space<vmem>>, vector<64x128xf32>
    %316 = vector.shape_cast %314 : vector<4x16x4xf32> to vector<64x4xf32>
    %c9_395 = arith.constant 9 : index
    %c0_396 = arith.constant 0 : index
    %c0_397 = arith.constant 0 : index
    %317 = vector.load %arg4[%c9_395, %c0_396, %c0_397] : memref<25x4x128xf32, #tpu.memory_space<vmem>>, vector<1x4x128xf32>
    %318 = vector.shape_cast %317 : vector<1x4x128xf32> to vector<4x128xf32>
    %cst_398 = arith.constant dense<0.000000e+00> : vector<64x128xf32>
    %319 = tpu.matmul %316, %318, %cst_398 {dimension_numbers = #tpu.dot_dimension_numbers<[1], [0], [0], [1], [0, 0, 1, 1], [], []>} : vector<64x4xf32>, vector<4x128xf32>, vector<64x128xf32> -> vector<64x128xf32>
    %320 = arith.addf %315, %319 : vector<64x128xf32>
    %c0_399 = arith.constant 0 : index
    %c0_400 = arith.constant 0 : index
    %321 = vector.load %arg9[%c0_399, %c0_400] : memref<64x128xf32, #tpu.memory_space<vmem>>, vector<64x128xf32>
    tpu.vector_store %arg9[%c0_399, %c0_400], %320 {strides = array<i32>} : memref<64x128xf32, #tpu.memory_space<vmem>>, vector<64x128xf32>,
    %c0_401 = arith.constant 0 : index
    %c2_402 = arith.constant 2 : index
    %c0_403 = arith.constant 0 : index
    %c0_404 = arith.constant 0 : index
    %322 = vector.load %arg3[%c0_401, %c2_402, %c0_403, %c0_404] : memref<1x8x18x4xf32, #tpu.memory_space<vmem>>, vector<1x4x16x4xf32>
    %323 = vector.shape_cast %322 : vector<1x4x16x4xf32> to vector<4x16x4xf32>
    %c0_405 = arith.constant 0 : index
    %c0_406 = arith.constant 0 : index
    %324 = vector.load %arg9[%c0_405, %c0_406] : memref<64x128xf32, #tpu.memory_space<vmem>>, vector<64x128xf32>
    %325 = vector.shape_cast %323 : vector<4x16x4xf32> to vector<64x4xf32>
    %c10_407 = arith.constant 10 : index
    %c0_408 = arith.constant 0 : index
    %c0_409 = arith.constant 0 : index
    %326 = vector.load %arg4[%c10_407, %c0_408, %c0_409] : memref<25x4x128xf32, #tpu.memory_space<vmem>>, vector<1x4x128xf32>
    %327 = vector.shape_cast %326 : vector<1x4x128xf32> to vector<4x128xf32>
    %cst_410 = arith.constant dense<0.000000e+00> : vector<64x128xf32>
    %328 = tpu.matmul %325, %327, %cst_410 {dimension_numbers = #tpu.dot_dimension_numbers<[1], [0], [0], [1], [0, 0, 1, 1], [], []>} : vector<64x4xf32>, vector<4x128xf32>, vector<64x128xf32> -> vector<64x128xf32>
    %329 = arith.addf %324, %328 : vector<64x128xf32>
    %c0_411 = arith.constant 0 : index
    %c0_412 = arith.constant 0 : index
    %330 = vector.load %arg9[%c0_411, %c0_412] : memref<64x128xf32, #tpu.memory_space<vmem>>, vector<64x128xf32>
    tpu.vector_store %arg9[%c0_411, %c0_412], %329 {strides = array<i32>} : memref<64x128xf32, #tpu.memory_space<vmem>>, vector<64x128xf32>,
    %c0_413 = arith.constant 0 : index
    %c2_414 = arith.constant 2 : index
    %c1_415 = arith.constant 1 : index
    %c0_416 = arith.constant 0 : index
    %331 = vector.load %arg2[%c0_413, %c2_414, %c1_415, %c0_416] : memref<1x8x18x4xf32, #tpu.memory_space<vmem>>, vector<1x4x16x4xf32>
    %332 = vector.shape_cast %331 : vector<1x4x16x4xf32> to vector<4x16x4xf32>
    %c0_417 = arith.constant 0 : index
    %c0_418 = arith.constant 0 : index
    %333 = vector.load %arg9[%c0_417, %c0_418] : memref<64x128xf32, #tpu.memory_space<vmem>>, vector<64x128xf32>
    %334 = vector.shape_cast %332 : vector<4x16x4xf32> to vector<64x4xf32>
    %c11_419 = arith.constant 11 : index
    %c0_420 = arith.constant 0 : index
    %c0_421 = arith.constant 0 : index
    %335 = vector.load %arg4[%c11_419, %c0_420, %c0_421] : memref<25x4x128xf32, #tpu.memory_space<vmem>>, vector<1x4x128xf32>
    %336 = vector.shape_cast %335 : vector<1x4x128xf32> to vector<4x128xf32>
    %cst_422 = arith.constant dense<0.000000e+00> : vector<64x128xf32>
    %337 = tpu.matmul %334, %336, %cst_422 {dimension_numbers = #tpu.dot_dimension_numbers<[1], [0], [0], [1], [0, 0, 1, 1], [], []>} : vector<64x4xf32>, vector<4x128xf32>, vector<64x128xf32> -> vector<64x128xf32>
    %338 = arith.addf %333, %337 : vector<64x128xf32>
    %c0_423 = arith.constant 0 : index
    %c0_424 = arith.constant 0 : index
    %339 = vector.load %arg9[%c0_423, %c0_424] : memref<64x128xf32, #tpu.memory_space<vmem>>, vector<64x128xf32>
    tpu.vector_store %arg9[%c0_423, %c0_424], %338 {strides = array<i32>} : memref<64x128xf32, #tpu.memory_space<vmem>>, vector<64x128xf32>,
    %c0_425 = arith.constant 0 : index
    %c2_426 = arith.constant 2 : index
    %c1_427 = arith.constant 1 : index
    %c0_428 = arith.constant 0 : index
    %340 = vector.load %arg3[%c0_425, %c2_426, %c1_427, %c0_428] : memref<1x8x18x4xf32, #tpu.memory_space<vmem>>, vector<1x4x16x4xf32>
    %341 = vector.shape_cast %340 : vector<1x4x16x4xf32> to vector<4x16x4xf32>
    %c0_429 = arith.constant 0 : index
    %c0_430 = arith.constant 0 : index
    %342 = vector.load %arg9[%c0_429, %c0_430] : memref<64x128xf32, #tpu.memory_space<vmem>>, vector<64x128xf32>
    %343 = vector.shape_cast %341 : vector<4x16x4xf32> to vector<64x4xf32>
    %c12_431 = arith.constant 12 : index
    %c0_432 = arith.constant 0 : index
    %c0_433 = arith.constant 0 : index
    %344 = vector.load %arg4[%c12_431, %c0_432, %c0_433] : memref<25x4x128xf32, #tpu.memory_space<vmem>>, vector<1x4x128xf32>
    %345 = vector.shape_cast %344 : vector<1x4x128xf32> to vector<4x128xf32>
    %cst_434 = arith.constant dense<0.000000e+00> : vector<64x128xf32>
    %346 = tpu.matmul %343, %345, %cst_434 {dimension_numbers = #tpu.dot_dimension_numbers<[1], [0], [0], [1], [0, 0, 1, 1], [], []>} : vector<64x4xf32>, vector<4x128xf32>, vector<64x128xf32> -> vector<64x128xf32>
    %347 = arith.addf %342, %346 : vector<64x128xf32>
    %c0_435 = arith.constant 0 : index
    %c0_436 = arith.constant 0 : index
    %348 = vector.load %arg9[%c0_435, %c0_436] : memref<64x128xf32, #tpu.memory_space<vmem>>, vector<64x128xf32>
    tpu.vector_store %arg9[%c0_435, %c0_436], %347 {strides = array<i32>} : memref<64x128xf32, #tpu.memory_space<vmem>>, vector<64x128xf32>,
    %c0_437 = arith.constant 0 : index
    %c2_438 = arith.constant 2 : index
    %c2_439 = arith.constant 2 : index
    %c0_440 = arith.constant 0 : index
    %349 = vector.load %arg2[%c0_437, %c2_438, %c2_439, %c0_440] : memref<1x8x18x4xf32, #tpu.memory_space<vmem>>, vector<1x4x16x4xf32>
    %350 = vector.shape_cast %349 : vector<1x4x16x4xf32> to vector<4x16x4xf32>
    %c0_441 = arith.constant 0 : index
    %c0_442 = arith.constant 0 : index
    %351 = vector.load %arg9[%c0_441, %c0_442] : memref<64x128xf32, #tpu.memory_space<vmem>>, vector<64x128xf32>
    %352 = vector.shape_cast %350 : vector<4x16x4xf32> to vector<64x4xf32>
    %c13_443 = arith.constant 13 : index
    %c0_444 = arith.constant 0 : index
    %c0_445 = arith.constant 0 : index
    %353 = vector.load %arg4[%c13_443, %c0_444, %c0_445] : memref<25x4x128xf32, #tpu.memory_space<vmem>>, vector<1x4x128xf32>
    %354 = vector.shape_cast %353 : vector<1x4x128xf32> to vector<4x128xf32>
    %cst_446 = arith.constant dense<0.000000e+00> : vector<64x128xf32>
    %355 = tpu.matmul %352, %354, %cst_446 {dimension_numbers = #tpu.dot_dimension_numbers<[1], [0], [0], [1], [0, 0, 1, 1], [], []>} : vector<64x4xf32>, vector<4x128xf32>, vector<64x128xf32> -> vector<64x128xf32>
    %356 = arith.addf %351, %355 : vector<64x128xf32>
    %c0_447 = arith.constant 0 : index
    %c0_448 = arith.constant 0 : index
    %357 = vector.load %arg9[%c0_447, %c0_448] : memref<64x128xf32, #tpu.memory_space<vmem>>, vector<64x128xf32>
    tpu.vector_store %arg9[%c0_447, %c0_448], %356 {strides = array<i32>} : memref<64x128xf32, #tpu.memory_space<vmem>>, vector<64x128xf32>,
    %c0_449 = arith.constant 0 : index
    %c2_450 = arith.constant 2 : index
    %c2_451 = arith.constant 2 : index
    %c0_452 = arith.constant 0 : index
    %358 = vector.load %arg3[%c0_449, %c2_450, %c2_451, %c0_452] : memref<1x8x18x4xf32, #tpu.memory_space<vmem>>, vector<1x4x16x4xf32>
    %359 = vector.shape_cast %358 : vector<1x4x16x4xf32> to vector<4x16x4xf32>
    %c0_453 = arith.constant 0 : index
    %c0_454 = arith.constant 0 : index
    %360 = vector.load %arg9[%c0_453, %c0_454] : memref<64x128xf32, #tpu.memory_space<vmem>>, vector<64x128xf32>
    %361 = vector.shape_cast %359 : vector<4x16x4xf32> to vector<64x4xf32>
    %c14_455 = arith.constant 14 : index
    %c0_456 = arith.constant 0 : index
    %c0_457 = arith.constant 0 : index
    %362 = vector.load %arg4[%c14_455, %c0_456, %c0_457] : memref<25x4x128xf32, #tpu.memory_space<vmem>>, vector<1x4x128xf32>
    %363 = vector.shape_cast %362 : vector<1x4x128xf32> to vector<4x128xf32>
    %cst_458 = arith.constant dense<0.000000e+00> : vector<64x128xf32>
    %364 = tpu.matmul %361, %363, %cst_458 {dimension_numbers = #tpu.dot_dimension_numbers<[1], [0], [0], [1], [0, 0, 1, 1], [], []>} : vector<64x4xf32>, vector<4x128xf32>, vector<64x128xf32> -> vector<64x128xf32>
    %365 = arith.addf %360, %364 : vector<64x128xf32>
    %c0_459 = arith.constant 0 : index
    %c0_460 = arith.constant 0 : index
    %366 = vector.load %arg9[%c0_459, %c0_460] : memref<64x128xf32, #tpu.memory_space<vmem>>, vector<64x128xf32>
    tpu.vector_store %arg9[%c0_459, %c0_460], %365 {strides = array<i32>} : memref<64x128xf32, #tpu.memory_space<vmem>>, vector<64x128xf32>,
    %c0_461 = arith.constant 0 : index
    %c3_462 = arith.constant 3 : index
    %c0_463 = arith.constant 0 : index
    %c0_464 = arith.constant 0 : index
    %367 = vector.load %arg3[%c0_461, %c3_462, %c0_463, %c0_464] : memref<1x8x18x4xf32, #tpu.memory_space<vmem>>, vector<1x4x16x4xf32>
    %368 = vector.shape_cast %367 : vector<1x4x16x4xf32> to vector<4x16x4xf32>
    %c0_465 = arith.constant 0 : index
    %c0_466 = arith.constant 0 : index
    %369 = vector.load %arg9[%c0_465, %c0_466] : memref<64x128xf32, #tpu.memory_space<vmem>>, vector<64x128xf32>
    %370 = vector.shape_cast %368 : vector<4x16x4xf32> to vector<64x4xf32>
    %c15_467 = arith.constant 15 : index
    %c0_468 = arith.constant 0 : index
    %c0_469 = arith.constant 0 : index
    %371 = vector.load %arg4[%c15_467, %c0_468, %c0_469] : memref<25x4x128xf32, #tpu.memory_space<vmem>>, vector<1x4x128xf32>
    %372 = vector.shape_cast %371 : vector<1x4x128xf32> to vector<4x128xf32>
    %cst_470 = arith.constant dense<0.000000e+00> : vector<64x128xf32>
    %373 = tpu.matmul %370, %372, %cst_470 {dimension_numbers = #tpu.dot_dimension_numbers<[1], [0], [0], [1], [0, 0, 1, 1], [], []>} : vector<64x4xf32>, vector<4x128xf32>, vector<64x128xf32> -> vector<64x128xf32>
    %374 = arith.addf %369, %373 : vector<64x128xf32>
    %c0_471 = arith.constant 0 : index
    %c0_472 = arith.constant 0 : index
    %375 = vector.load %arg9[%c0_471, %c0_472] : memref<64x128xf32, #tpu.memory_space<vmem>>, vector<64x128xf32>
    tpu.vector_store %arg9[%c0_471, %c0_472], %374 {strides = array<i32>} : memref<64x128xf32, #tpu.memory_space<vmem>>, vector<64x128xf32>,
    %c0_473 = arith.constant 0 : index
    %c3_474 = arith.constant 3 : index
    %c1_475 = arith.constant 1 : index
    %c0_476 = arith.constant 0 : index
    %376 = vector.load %arg2[%c0_473, %c3_474, %c1_475, %c0_476] : memref<1x8x18x4xf32, #tpu.memory_space<vmem>>, vector<1x4x16x4xf32>
    %377 = vector.shape_cast %376 : vector<1x4x16x4xf32> to vector<4x16x4xf32>
    %c0_477 = arith.constant 0 : index
    %c0_478 = arith.constant 0 : index
    %378 = vector.load %arg9[%c0_477, %c0_478] : memref<64x128xf32, #tpu.memory_space<vmem>>, vector<64x128xf32>
    %379 = vector.shape_cast %377 : vector<4x16x4xf32> to vector<64x4xf32>
    %c16_479 = arith.constant 16 : index
    %c0_480 = arith.constant 0 : index
    %c0_481 = arith.constant 0 : index
    %380 = vector.load %arg4[%c16_479, %c0_480, %c0_481] : memref<25x4x128xf32, #tpu.memory_space<vmem>>, vector<1x4x128xf32>
    %381 = vector.shape_cast %380 : vector<1x4x128xf32> to vector<4x128xf32>
    %cst_482 = arith.constant dense<0.000000e+00> : vector<64x128xf32>
    %382 = tpu.matmul %379, %381, %cst_482 {dimension_numbers = #tpu.dot_dimension_numbers<[1], [0], [0], [1], [0, 0, 1, 1], [], []>} : vector<64x4xf32>, vector<4x128xf32>, vector<64x128xf32> -> vector<64x128xf32>
    %383 = arith.addf %378, %382 : vector<64x128xf32>
    %c0_483 = arith.constant 0 : index
    %c0_484 = arith.constant 0 : index
    %384 = vector.load %arg9[%c0_483, %c0_484] : memref<64x128xf32, #tpu.memory_space<vmem>>, vector<64x128xf32>
    tpu.vector_store %arg9[%c0_483, %c0_484], %383 {strides = array<i32>} : memref<64x128xf32, #tpu.memory_space<vmem>>, vector<64x128xf32>,
    %c0_485 = arith.constant 0 : index
    %c3_486 = arith.constant 3 : index
    %c1_487 = arith.constant 1 : index
    %c0_488 = arith.constant 0 : index
    %385 = vector.load %arg3[%c0_485, %c3_486, %c1_487, %c0_488] : memref<1x8x18x4xf32, #tpu.memory_space<vmem>>, vector<1x4x16x4xf32>
    %386 = vector.shape_cast %385 : vector<1x4x16x4xf32> to vector<4x16x4xf32>
    %c0_489 = arith.constant 0 : index
    %c0_490 = arith.constant 0 : index
    %387 = vector.load %arg9[%c0_489, %c0_490] : memref<64x128xf32, #tpu.memory_space<vmem>>, vector<64x128xf32>
    %388 = vector.shape_cast %386 : vector<4x16x4xf32> to vector<64x4xf32>
    %c17_491 = arith.constant 17 : index
    %c0_492 = arith.constant 0 : index
    %c0_493 = arith.constant 0 : index
    %389 = vector.load %arg4[%c17_491, %c0_492, %c0_493] : memref<25x4x128xf32, #tpu.memory_space<vmem>>, vector<1x4x128xf32>
    %390 = vector.shape_cast %389 : vector<1x4x128xf32> to vector<4x128xf32>
    %cst_494 = arith.constant dense<0.000000e+00> : vector<64x128xf32>
    %391 = tpu.matmul %388, %390, %cst_494 {dimension_numbers = #tpu.dot_dimension_numbers<[1], [0], [0], [1], [0, 0, 1, 1], [], []>} : vector<64x4xf32>, vector<4x128xf32>, vector<64x128xf32> -> vector<64x128xf32>
    %392 = arith.addf %387, %391 : vector<64x128xf32>
    %c0_495 = arith.constant 0 : index
    %c0_496 = arith.constant 0 : index
    %393 = vector.load %arg9[%c0_495, %c0_496] : memref<64x128xf32, #tpu.memory_space<vmem>>, vector<64x128xf32>
    tpu.vector_store %arg9[%c0_495, %c0_496], %392 {strides = array<i32>} : memref<64x128xf32, #tpu.memory_space<vmem>>, vector<64x128xf32>,
    %c0_497 = arith.constant 0 : index
    %c3_498 = arith.constant 3 : index
    %c2_499 = arith.constant 2 : index
    %c0_500 = arith.constant 0 : index
    %394 = vector.load %arg2[%c0_497, %c3_498, %c2_499, %c0_500] : memref<1x8x18x4xf32, #tpu.memory_space<vmem>>, vector<1x4x16x4xf32>
    %395 = vector.shape_cast %394 : vector<1x4x16x4xf32> to vector<4x16x4xf32>
    %c0_501 = arith.constant 0 : index
    %c0_502 = arith.constant 0 : index
    %396 = vector.load %arg9[%c0_501, %c0_502] : memref<64x128xf32, #tpu.memory_space<vmem>>, vector<64x128xf32>
    %397 = vector.shape_cast %395 : vector<4x16x4xf32> to vector<64x4xf32>
    %c18_503 = arith.constant 18 : index
    %c0_504 = arith.constant 0 : index
    %c0_505 = arith.constant 0 : index
    %398 = vector.load %arg4[%c18_503, %c0_504, %c0_505] : memref<25x4x128xf32, #tpu.memory_space<vmem>>, vector<1x4x128xf32>
    %399 = vector.shape_cast %398 : vector<1x4x128xf32> to vector<4x128xf32>
    %cst_506 = arith.constant dense<0.000000e+00> : vector<64x128xf32>
    %400 = tpu.matmul %397, %399, %cst_506 {dimension_numbers = #tpu.dot_dimension_numbers<[1], [0], [0], [1], [0, 0, 1, 1], [], []>} : vector<64x4xf32>, vector<4x128xf32>, vector<64x128xf32> -> vector<64x128xf32>
    %401 = arith.addf %396, %400 : vector<64x128xf32>
    %c0_507 = arith.constant 0 : index
    %c0_508 = arith.constant 0 : index
    %402 = vector.load %arg9[%c0_507, %c0_508] : memref<64x128xf32, #tpu.memory_space<vmem>>, vector<64x128xf32>
    tpu.vector_store %arg9[%c0_507, %c0_508], %401 {strides = array<i32>} : memref<64x128xf32, #tpu.memory_space<vmem>>, vector<64x128xf32>,
    %c0_509 = arith.constant 0 : index
    %c3_510 = arith.constant 3 : index
    %c2_511 = arith.constant 2 : index
    %c0_512 = arith.constant 0 : index
    %403 = vector.load %arg3[%c0_509, %c3_510, %c2_511, %c0_512] : memref<1x8x18x4xf32, #tpu.memory_space<vmem>>, vector<1x4x16x4xf32>
    %404 = vector.shape_cast %403 : vector<1x4x16x4xf32> to vector<4x16x4xf32>
    %c0_513 = arith.constant 0 : index
    %c0_514 = arith.constant 0 : index
    %405 = vector.load %arg9[%c0_513, %c0_514] : memref<64x128xf32, #tpu.memory_space<vmem>>, vector<64x128xf32>
    %406 = vector.shape_cast %404 : vector<4x16x4xf32> to vector<64x4xf32>
    %c19_515 = arith.constant 19 : index
    %c0_516 = arith.constant 0 : index
    %c0_517 = arith.constant 0 : index
    %407 = vector.load %arg4[%c19_515, %c0_516, %c0_517] : memref<25x4x128xf32, #tpu.memory_space<vmem>>, vector<1x4x128xf32>
    %408 = vector.shape_cast %407 : vector<1x4x128xf32> to vector<4x128xf32>
    %cst_518 = arith.constant dense<0.000000e+00> : vector<64x128xf32>
    %409 = tpu.matmul %406, %408, %cst_518 {dimension_numbers = #tpu.dot_dimension_numbers<[1], [0], [0], [1], [0, 0, 1, 1], [], []>} : vector<64x4xf32>, vector<4x128xf32>, vector<64x128xf32> -> vector<64x128xf32>
    %410 = arith.addf %405, %409 : vector<64x128xf32>
    %c0_519 = arith.constant 0 : index
    %c0_520 = arith.constant 0 : index
    %411 = vector.load %arg9[%c0_519, %c0_520] : memref<64x128xf32, #tpu.memory_space<vmem>>, vector<64x128xf32>
    tpu.vector_store %arg9[%c0_519, %c0_520], %410 {strides = array<i32>} : memref<64x128xf32, #tpu.memory_space<vmem>>, vector<64x128xf32>,
    %c0_521 = arith.constant 0 : index
    %c4_522 = arith.constant 4 : index
    %c0_523 = arith.constant 0 : index
    %c0_524 = arith.constant 0 : index
    %412 = vector.load %arg3[%c0_521, %c4_522, %c0_523, %c0_524] : memref<1x8x18x4xf32, #tpu.memory_space<vmem>>, vector<1x4x16x4xf32>
    %413 = vector.shape_cast %412 : vector<1x4x16x4xf32> to vector<4x16x4xf32>
    %c0_525 = arith.constant 0 : index
    %c0_526 = arith.constant 0 : index
    %414 = vector.load %arg9[%c0_525, %c0_526] : memref<64x128xf32, #tpu.memory_space<vmem>>, vector<64x128xf32>
    %415 = vector.shape_cast %413 : vector<4x16x4xf32> to vector<64x4xf32>
    %c20_527 = arith.constant 20 : index
    %c0_528 = arith.constant 0 : index
    %c0_529 = arith.constant 0 : index
    %416 = vector.load %arg4[%c20_527, %c0_528, %c0_529] : memref<25x4x128xf32, #tpu.memory_space<vmem>>, vector<1x4x128xf32>
    %417 = vector.shape_cast %416 : vector<1x4x128xf32> to vector<4x128xf32>
    %cst_530 = arith.constant dense<0.000000e+00> : vector<64x128xf32>
    %418 = tpu.matmul %415, %417, %cst_530 {dimension_numbers = #tpu.dot_dimension_numbers<[1], [0], [0], [1], [0, 0, 1, 1], [], []>} : vector<64x4xf32>, vector<4x128xf32>, vector<64x128xf32> -> vector<64x128xf32>
    %419 = arith.addf %414, %418 : vector<64x128xf32>
    %c0_531 = arith.constant 0 : index
    %c0_532 = arith.constant 0 : index
    %420 = vector.load %arg9[%c0_531, %c0_532] : memref<64x128xf32, #tpu.memory_space<vmem>>, vector<64x128xf32>
    tpu.vector_store %arg9[%c0_531, %c0_532], %419 {strides = array<i32>} : memref<64x128xf32, #tpu.memory_space<vmem>>, vector<64x128xf32>,
    %c0_533 = arith.constant 0 : index
    %c4_534 = arith.constant 4 : index
    %c1_535 = arith.constant 1 : index
    %c0_536 = arith.constant 0 : index
    %421 = vector.load %arg2[%c0_533, %c4_534, %c1_535, %c0_536] : memref<1x8x18x4xf32, #tpu.memory_space<vmem>>, vector<1x4x16x4xf32>
    %422 = vector.shape_cast %421 : vector<1x4x16x4xf32> to vector<4x16x4xf32>
    %c0_537 = arith.constant 0 : index
    %c0_538 = arith.constant 0 : index
    %423 = vector.load %arg9[%c0_537, %c0_538] : memref<64x128xf32, #tpu.memory_space<vmem>>, vector<64x128xf32>
    %424 = vector.shape_cast %422 : vector<4x16x4xf32> to vector<64x4xf32>
    %c21_539 = arith.constant 21 : index
    %c0_540 = arith.constant 0 : index
    %c0_541 = arith.constant 0 : index
    %425 = vector.load %arg4[%c21_539, %c0_540, %c0_541] : memref<25x4x128xf32, #tpu.memory_space<vmem>>, vector<1x4x128xf32>
    %426 = vector.shape_cast %425 : vector<1x4x128xf32> to vector<4x128xf32>
    %cst_542 = arith.constant dense<0.000000e+00> : vector<64x128xf32>
    %427 = tpu.matmul %424, %426, %cst_542 {dimension_numbers = #tpu.dot_dimension_numbers<[1], [0], [0], [1], [0, 0, 1, 1], [], []>} : vector<64x4xf32>, vector<4x128xf32>, vector<64x128xf32> -> vector<64x128xf32>
    %428 = arith.addf %423, %427 : vector<64x128xf32>
    %c0_543 = arith.constant 0 : index
    %c0_544 = arith.constant 0 : index
    %429 = vector.load %arg9[%c0_543, %c0_544] : memref<64x128xf32, #tpu.memory_space<vmem>>, vector<64x128xf32>
    tpu.vector_store %arg9[%c0_543, %c0_544], %428 {strides = array<i32>} : memref<64x128xf32, #tpu.memory_space<vmem>>, vector<64x128xf32>,
    %c0_545 = arith.constant 0 : index
    %c4_546 = arith.constant 4 : index
    %c1_547 = arith.constant 1 : index
    %c0_548 = arith.constant 0 : index
    %430 = vector.load %arg3[%c0_545, %c4_546, %c1_547, %c0_548] : memref<1x8x18x4xf32, #tpu.memory_space<vmem>>, vector<1x4x16x4xf32>
    %431 = vector.shape_cast %430 : vector<1x4x16x4xf32> to vector<4x16x4xf32>
    %c0_549 = arith.constant 0 : index
    %c0_550 = arith.constant 0 : index
    %432 = vector.load %arg9[%c0_549, %c0_550] : memref<64x128xf32, #tpu.memory_space<vmem>>, vector<64x128xf32>
    %433 = vector.shape_cast %431 : vector<4x16x4xf32> to vector<64x4xf32>
    %c22_551 = arith.constant 22 : index
    %c0_552 = arith.constant 0 : index
    %c0_553 = arith.constant 0 : index
    %434 = vector.load %arg4[%c22_551, %c0_552, %c0_553] : memref<25x4x128xf32, #tpu.memory_space<vmem>>, vector<1x4x128xf32>
    %435 = vector.shape_cast %434 : vector<1x4x128xf32> to vector<4x128xf32>
    %cst_554 = arith.constant dense<0.000000e+00> : vector<64x128xf32>
    %436 = tpu.matmul %433, %435, %cst_554 {dimension_numbers = #tpu.dot_dimension_numbers<[1], [0], [0], [1], [0, 0, 1, 1], [], []>} : vector<64x4xf32>, vector<4x128xf32>, vector<64x128xf32> -> vector<64x128xf32>
    %437 = arith.addf %432, %436 : vector<64x128xf32>
    %c0_555 = arith.constant 0 : index
    %c0_556 = arith.constant 0 : index
    %438 = vector.load %arg9[%c0_555, %c0_556] : memref<64x128xf32, #tpu.memory_space<vmem>>, vector<64x128xf32>
    tpu.vector_store %arg9[%c0_555, %c0_556], %437 {strides = array<i32>} : memref<64x128xf32, #tpu.memory_space<vmem>>, vector<64x128xf32>,
    %c0_557 = arith.constant 0 : index
    %c4_558 = arith.constant 4 : index
    %c2_559 = arith.constant 2 : index
    %c0_560 = arith.constant 0 : index
    %439 = vector.load %arg2[%c0_557, %c4_558, %c2_559, %c0_560] : memref<1x8x18x4xf32, #tpu.memory_space<vmem>>, vector<1x4x16x4xf32>
    %440 = vector.shape_cast %439 : vector<1x4x16x4xf32> to vector<4x16x4xf32>
    %c0_561 = arith.constant 0 : index
    %c0_562 = arith.constant 0 : index
    %441 = vector.load %arg9[%c0_561, %c0_562] : memref<64x128xf32, #tpu.memory_space<vmem>>, vector<64x128xf32>
    %442 = vector.shape_cast %440 : vector<4x16x4xf32> to vector<64x4xf32>
    %c23_563 = arith.constant 23 : index
    %c0_564 = arith.constant 0 : index
    %c0_565 = arith.constant 0 : index
    %443 = vector.load %arg4[%c23_563, %c0_564, %c0_565] : memref<25x4x128xf32, #tpu.memory_space<vmem>>, vector<1x4x128xf32>
    %444 = vector.shape_cast %443 : vector<1x4x128xf32> to vector<4x128xf32>
    %cst_566 = arith.constant dense<0.000000e+00> : vector<64x128xf32>
    %445 = tpu.matmul %442, %444, %cst_566 {dimension_numbers = #tpu.dot_dimension_numbers<[1], [0], [0], [1], [0, 0, 1, 1], [], []>} : vector<64x4xf32>, vector<4x128xf32>, vector<64x128xf32> -> vector<64x128xf32>
    %446 = arith.addf %441, %445 : vector<64x128xf32>
    %c0_567 = arith.constant 0 : index
    %c0_568 = arith.constant 0 : index
    %447 = vector.load %arg9[%c0_567, %c0_568] : memref<64x128xf32, #tpu.memory_space<vmem>>, vector<64x128xf32>
    tpu.vector_store %arg9[%c0_567, %c0_568], %446 {strides = array<i32>} : memref<64x128xf32, #tpu.memory_space<vmem>>, vector<64x128xf32>,
    %c0_569 = arith.constant 0 : index
    %c4_570 = arith.constant 4 : index
    %c2_571 = arith.constant 2 : index
    %c0_572 = arith.constant 0 : index
    %448 = vector.load %arg3[%c0_569, %c4_570, %c2_571, %c0_572] : memref<1x8x18x4xf32, #tpu.memory_space<vmem>>, vector<1x4x16x4xf32>
    %449 = vector.shape_cast %448 : vector<1x4x16x4xf32> to vector<4x16x4xf32>
    %c0_573 = arith.constant 0 : index
    %c0_574 = arith.constant 0 : index
    %450 = vector.load %arg9[%c0_573, %c0_574] : memref<64x128xf32, #tpu.memory_space<vmem>>, vector<64x128xf32>
    %451 = vector.shape_cast %449 : vector<4x16x4xf32> to vector<64x4xf32>
    %c24_575 = arith.constant 24 : index
    %c0_576 = arith.constant 0 : index
    %c0_577 = arith.constant 0 : index
    %452 = vector.load %arg4[%c24_575, %c0_576, %c0_577] : memref<25x4x128xf32, #tpu.memory_space<vmem>>, vector<1x4x128xf32>
    %453 = vector.shape_cast %452 : vector<1x4x128xf32> to vector<4x128xf32>
    %cst_578 = arith.constant dense<0.000000e+00> : vector<64x128xf32>
    %454 = tpu.matmul %451, %453, %cst_578 {dimension_numbers = #tpu.dot_dimension_numbers<[1], [0], [0], [1], [0, 0, 1, 1], [], []>} : vector<64x4xf32>, vector<4x128xf32>, vector<64x128xf32> -> vector<64x128xf32>
    %455 = arith.addf %450, %454 : vector<64x128xf32>
    %c0_579 = arith.constant 0 : index
    %c0_580 = arith.constant 0 : index
    %456 = vector.load %arg9[%c0_579, %c0_580] : memref<64x128xf32, #tpu.memory_space<vmem>>, vector<64x128xf32>
    tpu.vector_store %arg9[%c0_579, %c0_580], %455 {strides = array<i32>} : memref<64x128xf32, #tpu.memory_space<vmem>>, vector<64x128xf32>,
    %c0_581 = arith.constant 0 : index
    %c0_582 = arith.constant 0 : index
    %457 = vector.load %arg8[%c0_581, %c0_582] : memref<64x128xf32, #tpu.memory_space<vmem>>, vector<64x128xf32>
    %458 = vector.shape_cast %457 : vector<64x128xf32> to vector<2x2x16x128xf32>
    %c0_583 = arith.constant 0 : index
    %c0_584 = arith.constant 0 : index
    %459 = vector.load %arg9[%c0_583, %c0_584] : memref<64x128xf32, #tpu.memory_space<vmem>>, vector<64x128xf32>
    %460 = vector.shape_cast %459 : vector<64x128xf32> to vector<2x2x16x128xf32>
    %461 = vector.extract_strided_slice %458 {offsets = [0, 0, 0, 0], sizes = [2, 1, 16, 128], strides = [1, 1, 1, 1]} : vector<2x2x16x128xf32> to vector<2x1x16x128xf32>
    %462 = vector.shape_cast %461 : vector<2x1x16x128xf32> to vector<2x16x128xf32>
    %463 = vector.extract_strided_slice %458 {offsets = [0, 1, 0, 0], sizes = [2, 1, 16, 128], strides = [1, 1, 1, 1]} : vector<2x2x16x128xf32> to vector<2x1x16x128xf32>
    %464 = vector.shape_cast %463 : vector<2x1x16x128xf32> to vector<2x16x128xf32>
    %465 = arith.maximumf %462, %464 : vector<2x16x128xf32>
    %466 = vector.extract_strided_slice %460 {offsets = [0, 0, 0, 0], sizes = [2, 1, 16, 128], strides = [1, 1, 1, 1]} : vector<2x2x16x128xf32> to vector<2x1x16x128xf32>
    %467 = vector.shape_cast %466 : vector<2x1x16x128xf32> to vector<2x16x128xf32>
    %468 = vector.extract_strided_slice %460 {offsets = [0, 1, 0, 0], sizes = [2, 1, 16, 128], strides = [1, 1, 1, 1]} : vector<2x2x16x128xf32> to vector<2x1x16x128xf32>
    %469 = vector.shape_cast %468 : vector<2x1x16x128xf32> to vector<2x16x128xf32>
    %470 = arith.maximumf %467, %469 : vector<2x16x128xf32>
    %471 = arith.maximumf %465, %470 : vector<2x16x128xf32>
    %472 = tpu.iota {dimensions = array<i32: 1>} : vector<2x16x1xi32>
    %c8_i32 = arith.constant 8 : i32
    %473 = vector.broadcast %c8_i32 : i32 to vector<2x16x1xi32>
    %474 = arith.cmpi slt, %472, %473 : vector<2x16x1xi32>
    %cst_585 = arith.constant 0.000000e+00 : f32
    %475 = vector.shape_cast %474 : vector<2x16x1xi1> to vector<2x16x1xi1>
    %476 = vector.broadcast %475 : vector<2x16x1xi1> to vector<2x16x128xi1>
    %477 = vector.broadcast %cst_585 : f32 to vector<2x16x128xf32>
    %478 = arith.select %476, %471, %477 : vector<2x16x128xi1>, vector<2x16x128xf32>
    %479 = vector.shape_cast %478 : vector<2x16x128xf32> to vector<32x128xf32>
    %c2_i32 = arith.constant 2 : i32
    %480 = arith.muli %arg1, %c2_i32 : i32
    %c8_i32_586 = arith.constant 8 : i32
    %481 = arith.subi %c8_i32_586, %480 : i32
    %c2_i32_587 = arith.constant 2 : i32
    %482 = arith.minsi %481, %c2_i32_587 : i32
    %c16_i32 = arith.constant 16 : i32
    %483 = arith.muli %482, %c16_i32 : i32
    %484 = tpu.iota {dimensions = array<i32: 0>} : vector<32x1xi32>
    %485 = vector.broadcast %483 : i32 to vector<32x1xi32>
    %486 = arith.cmpi slt, %484, %485 : vector<32x1xi32>
    %cst_588 = arith.constant 0.000000e+00 : f32
    %487 = vector.shape_cast %486 : vector<32x1xi1> to vector<32x1xi1>
    %488 = vector.broadcast %487 : vector<32x1xi1> to vector<32x128xi1>
    %489 = vector.broadcast %cst_588 : f32 to vector<32x128xf32>
    %490 = arith.select %488, %479, %489 : vector<32x128xi1>, vector<32x128xf32>
    %c0_589 = arith.constant 0 : index
    %c0_590 = arith.constant 0 : index
    %491 = vector.load %arg5[%c0_589, %c0_590] : memref<32x128xf32, #tpu.memory_space<vmem>>, vector<32x128xf32>
    tpu.vector_store %arg5[%c0_589, %c0_590], %490 {strides = array<i32>} : memref<32x128xf32, #tpu.memory_space<vmem>>, vector<32x128xf32>,
    %c0_591 = arith.constant 0 : index
    %c0_592 = arith.constant 0 : index
    %c0_593 = arith.constant 0 : index
    %492 = vector.load %arg6[%c0_591, %c0_592, %c0_593] : memref<1x8x128xf32, #tpu.memory_space<vmem>>, vector<1x8x128xf32>
    %493 = vector.shape_cast %492 : vector<1x8x128xf32> to vector<8x128xf32>
    %cst_594 = arith.constant dense<0.000000e+00> : vector<128xf32>
    %494 = vector.multi_reduction <add>, %490, %cst_594 [0] : vector<32x128xf32> to vector<128xf32>
    %495 = vector.shape_cast %494 : vector<128xf32> to vector<1x128xf32>
    %496 = vector.broadcast %495 : vector<1x128xf32> to vector<8x128xf32>
    %497 = arith.addf %493, %496 : vector<8x128xf32>
    %c0_595 = arith.constant 0 : index
    %c0_596 = arith.constant 0 : index
    %c0_597 = arith.constant 0 : index
    %498 = vector.load %arg6[%c0_595, %c0_596, %c0_597] : memref<1x8x128xf32, #tpu.memory_space<vmem>>, vector<1x8x128xf32>
    %499 = vector.shape_cast %498 : vector<1x8x128xf32> to vector<8x128xf32>
    %500 = vector.shape_cast %497 : vector<8x128xf32> to vector<1x8x128xf32>
    tpu.vector_store %arg6[%c0_595, %c0_596, %c0_597], %500 {strides = array<i32>} : memref<1x8x128xf32, #tpu.memory_space<vmem>>, vector<1x8x128xf32>,
    %c0_598 = arith.constant 0 : index
    %c0_599 = arith.constant 0 : index
    %c0_600 = arith.constant 0 : index
    %501 = vector.load %arg7[%c0_598, %c0_599, %c0_600] : memref<1x8x128xf32, #tpu.memory_space<vmem>>, vector<1x8x128xf32>
    %502 = vector.shape_cast %501 : vector<1x8x128xf32> to vector<8x128xf32>
    %503 = arith.mulf %490, %490 : vector<32x128xf32>
    %cst_601 = arith.constant dense<0.000000e+00> : vector<128xf32>
    %504 = vector.multi_reduction <add>, %503, %cst_601 [0] : vector<32x128xf32> to vector<128xf32>
    %505 = vector.shape_cast %504 : vector<128xf32> to vector<1x128xf32>
    %506 = vector.broadcast %505 : vector<1x128xf32> to vector<8x128xf32>
    %507 = arith.addf %502, %506 : vector<8x128xf32>
    %c0_602 = arith.constant 0 : index
    %c0_603 = arith.constant 0 : index
    %c0_604 = arith.constant 0 : index
    %508 = vector.load %arg7[%c0_602, %c0_603, %c0_604] : memref<1x8x128xf32, #tpu.memory_space<vmem>>, vector<1x8x128xf32>
    %509 = vector.shape_cast %508 : vector<1x8x128xf32> to vector<8x128xf32>
    %510 = vector.shape_cast %507 : vector<8x128xf32> to vector<1x8x128xf32>
    tpu.vector_store %arg7[%c0_602, %c0_603, %c0_604], %510 {strides = array<i32>} : memref<1x8x128xf32, #tpu.memory_space<vmem>>, vector<1x8x128xf32>,
    return
  }
  func.func @transform_0(%arg0: i32, %arg1: i32) -> (i32, i32, i32, i32) {
    %c4_i32 = arith.constant 4 : i32
    %0 = arith.muli %arg0, %c4_i32 : i32
    %1 = arith.addi %0, %arg1 : i32
    %c0_i32 = arith.constant 0 : i32
    %c0_i32_0 = arith.constant 0 : i32
    %c0_i32_1 = arith.constant 0 : i32
    %c0_i32_2 = arith.constant 0 : i32
    return %1, %c0_i32, %c0_i32_0, %c0_i32_1 : i32, i32, i32, i32
  }
  func.func @transform_1(%arg0: i32, %arg1: i32) -> (i32, i32, i32, i32) {
    %c4_i32 = arith.constant 4 : i32
    %0 = arith.muli %arg0, %c4_i32 : i32
    %1 = arith.addi %0, %arg1 : i32
    %c0_i32 = arith.constant 0 : i32
    %c0_i32_0 = arith.constant 0 : i32
    %c0_i32_1 = arith.constant 0 : i32
    %c0_i32_2 = arith.constant 0 : i32
    return %1, %c0_i32, %c0_i32_0, %c0_i32_1 : i32, i32, i32, i32
  }
  func.func @transform_2(%arg0: i32, %arg1: i32) -> (i32, i32, i32) {
    %c0_i32 = arith.constant 0 : i32
    %c0_i32_0 = arith.constant 0 : i32
    %c0_i32_1 = arith.constant 0 : i32
    %c0_i32_2 = arith.constant 0 : i32
    return %c0_i32, %c0_i32_0, %c0_i32_1 : i32, i32, i32
  }
  func.func @transform_3(%arg0: i32, %arg1: i32) -> (i32, i32) {
    %c4_i32 = arith.constant 4 : i32
    %0 = arith.muli %arg0, %c4_i32 : i32
    %1 = arith.addi %0, %arg1 : i32
    %c0_i32 = arith.constant 0 : i32
    %c0_i32_0 = arith.constant 0 : i32
    return %1, %c0_i32 : i32, i32
  }
  func.func @transform_4(%arg0: i32, %arg1: i32) -> (i32, i32, i32) {
    %c0_i32 = arith.constant 0 : i32
    %c0_i32_0 = arith.constant 0 : i32
    %c0_i32_1 = arith.constant 0 : i32
    return %arg0, %c0_i32, %c0_i32_0 : i32, i32, i32
  }
  func.func @transform_5(%arg0: i32, %arg1: i32) -> (i32, i32, i32) {
    %c0_i32 = arith.constant 0 : i32
    %c0_i32_0 = arith.constant 0 : i32
    %c0_i32_1 = arith.constant 0 : i32
    return %arg0, %c0_i32, %c0_i32_0 : i32, i32, i32
  }
}

</mosaic_0001>

<bundles_post_ra>
// kernel: tpu_custom_call.1
= control target key start
LH: loop header
LB: loop body
LE: loop exit
PB: predicated region body
PF: predicated region fallthrough
CT: control target
= control target key end

     0   :  { %11 = vsyncpa [#allocation5], 0  ;;  %s13162_s0 = inlined_call_operand.vmem [shape: f32[8,8,18,4], index: 0, kind: input, shape index: {}]   ;;  %s13163_s1 = inlined_call_operand.vmem [shape: f32[8,8,18,4], index: 1, kind: input, shape index: {}]   ;;  %s13164_s2 = inlined_call_operand.vmem [shape: f32[25,4,128], index: 2, kind: input, shape index: {}]   ;;  %s13165_s3 = inlined_call_operand.hbm [shape: f32[256,128], index: 3, kind: output, shape index: {0}]   ;;  %s13166_s4 = inlined_call_operand.hbm [shape: f32[2,8,128], index: 4, kind: output, shape index: {1}]   ;;  %s13167_s5 = inlined_call_operand.hbm [shape: f32[2,8,128], index: 5, kind: output, shape index: {2}]  }
   0x1   :  { %13 = vsyncpa [#allocation5 + $0x1], 0 }
   0x2   :  { %14 = vsyncpa [#allocation7], 0 }
   0x3   :  { %16 = vsyncpa [#allocation7 + $0x1], 0  ;;  %s11622_s18 = smov 0   ;;  %s11624_s19 = smov 0  }
   0x4   :  { %s11626_s20 = smov 0   ;;  %s11628_s21 = smov 0  }
   0x5   :  { %s11630_s22 = smov 0   ;;  %s11632_s23 = smov 0  }
   0x6   :  { %s11634_s24 = smov 0   ;;  %s11636_s25 = smov 0  }
   0x7   :  { %s11638_s26 = smov 0   ;;  %s11640_s27 = smov 0  }
   0x8   :  { %s11642_s28 = smov 0  }
   0x9 LB: > { %13177 = sst [smem:[#allocation11_spill]] %s11555_s21  ;;  %s13169_s29 = sadd.s32 4294967295, %s11583_s28   ;;  %s11583_s28 = sphi %s11642_s28, %s22_s28   ;;  %s11579_s27 = sphi %s11640_s27, %s13199_s27   ;;  %s11575_s26 = sphi %s11638_s26, %s13198_s26   ;;  %s11571_s25 = sphi %s11636_s25, %s13197_s25   ;;  %s11567_s24 = sphi %s11634_s24, %s13196_s24   ;;  %s11563_s23 = sphi %s11632_s23, %s13205_s23   ;;  %s11559_s22 = sphi %s11630_s22, %s13204_s22   ;;  %s11555_s21 = sphi %s11628_s21, %s13203_s21   ;;  %s11551_s20 = sphi %s11626_s20, %s13202_s20   ;;  %s11547_s19 = sphi %s11624_s19, %s13201_s19   ;;  %s11543_s18 = sphi %s11622_s18, %s13200_s18  }
   0xa   : > { %13178 = sst [smem:[#allocation12_spill]] %s11575_s26  ;;  %s13168_s30 = sadd.s32 4294967294, %s11583_s28  }
   0xb   : > { %13179 = sst [smem:[#allocation13_spill]] %s11579_s27  ;;  %s31_s6 = sadd.s32 1, %s11575_s26 }
   0xc   : > { %s34_s7 = sadd.s32 1, %s11579_s27  ;;  %p32_p0 = scmp.ge.s32.totalorder %s31_s6, 4 }
   0xd   : > { %s8917_s8 = sshll.u32 %s11579_s27, 2  ;;  %s126_s10 = sadd.s32 1, %s11563_s23 }
   0xe   : > { %s120_s9 = sadd.s32 %s11575_s26, %s8917_s8  ;;  %s13207_s6 = smov (%p32_p0, %s31_s6), 0 }
   0xf   : > { %13180 = sst [smem:[#allocation14_spill]] %s13207_s6  ;;  %s13209_s7 = smov (!%p32_p0, %s34_s7), %s11579_s27 }
  0x10   : > { %p136_p1 = scmp.ne.s32.totalorder %s11563_s23, %s11559_s22  ;;  %p11691_p2 = scmp.eq.s32.totalorder %s13169_s29, 7 }
  0x11   : > { %p36_p3 = scmp.ge.s32.totalorder %s13209_s7, 2  ;;  %p142_p4 = scmp.ne.s32.totalorder %s11559_s22, %s11555_s21 }
  0x12   : > { %p11699_p5 = por %p11691_p2, %p136_p1  ;;  %p11705_p6 = scmp.eq.s32.totalorder %s13168_s30, 7 }
  0x13   : > { %s13211_s7 = smov (%p36_p3, %s13209_s7), 0  ;;  %s152_s15 = sadd.s32 1, %s11551_s20 }
  0x14   : > { %13184 = sst [smem:[#allocation15_spill]] %s13211_s7  ;;  %p11713_p7 = por %p11705_p6, %p142_p4 }
  0x15   : > { %s8918_s16 = sshll.u32 %s13211_s7, 2  ;;  %s149_s17 = ssub.s32 %s11579_s27, %s13211_s7 }
  0x16   : > { %s13185_s14 = scalar_select %p11713_p7, 1, 0 }
  0x17   : > { %s122_s8 = sadd.s32 %s8918_s16, %s13207_s6  ;;  %p150_p8 = scmp.eq.s32.totalorder %s149_s17, 0 }
  0x18   : > { %13186 = sst [smem:[#allocation16_spill]] %s13185_s14  ;;  %s123_s30 = ssub.s32 %s120_s9, %s122_s8 }
  0x19   : > { %p162_p9 = scmp.ne.s32.totalorder %s11551_s20, %s11547_s19  ;;  %p124_p10 = scmp.eq.s32.totalorder %s123_s30, 0 }
  0x1a   : > { %p168_p11 = scmp.ne.s32.totalorder %s11547_s19, %s11543_s18  ;;  %p8921_p0 = scmp.ge.s32.totalorder %s11583_s28, 1 }
  0x1b   : > { %s11727_s29 = scalar_select %p150_p8, %s11551_s20, %s152_s15  }
  0x1c   : > { %s11730_s26 = scalar_select %p124_p10, %s11563_s23, %s126_s10  }
  0x1d   : > { %p11734_p12 = por %p162_p9, %p11691_p2  ;;  %p11740_p13 = por %p168_p11, %p11705_p6 }
  0x1e   : > { %13187 = sst [smem:[#allocation17_spill]] %s11730_s26  ;;  %p240_p1 = scmp.lt.s32.totalorder %s11583_s28, 9 }
  0x20   : > { %p241_p3 = pnand %p8921_p0, %p240_p1 }
  0x21   : > { %s13176_s18 = sand.u32 (!%p241_p3), 1, %s11559_s22   ;;  %s277_s30 = sand.u32 (!%p241_p3), 1, %s11547_s19  }
  0x22   : > { %244 = sbr.rel (%p241_p3) target bundleno = 731 (0x2db), region = 32  ;;  %s8922_s9 = sshll.u32 (!%p241_p3), %s13176_s18, 5 }
  0x23   : > { %s8923_s10 = sshll.u32 (!%p241_p3), %s277_s30, 3  ;;  %s8925_s11 = sshll.u32 (!%p241_p3), %s11571_s25, 2 }
  0x24   : > { %s11752_s13 = sadd.s32 (!%p241_p3), %s11567_s24, %s8925_s11  ;;  %s11766_s18 = scalar_lea.vmem (!%p241_p3), [#allocation4], %s8922_s9 }
  0x25   : > { %p289_p2 = scmp.lt.s32.totalorder (!%p241_p3), %s11752_s13, 7  ;;  %s11768_s30 = scalar_lea.vmem (!%p241_p3), [#allocation6], %s8923_s10 }
  0x26   : > { %s11770_s11 = scalar_lea.vmem (!%p241_p3), [#allocation8], %s8923_s10  ;;  %p8929_p4 = scmp.ne.s32.totalorder (!%p241_p3), %s11567_s24, 0 }
  0x29   : > { %s290_s15 = scalar_select %p289_p2, %s11752_s13, 7 }
  0x2a   : > { %311 = sbr.rel (%p8929_p4) target bundleno = 49 (0x31), region = 36  ;;  %v11585_v0 = vmov (!%p8929_p4), 0.0  }
  0x2b   : > { %s11295_s16 = smul.u32 192, %s290_s15  ;;  %312 = vst [vmem:[%s11768_s30] sm:$0xff] (!%p8929_p4), %v11585_v0  ;;  %313 = vst [vmem:[%s11770_s11] sm:$0xff] (!%p8929_p4), %v11585_v0 }
  0x2d   : > { %s11759_s7 = scalar_lea.vmem %s13162_s0, %s11295_s16  ;;  %s11764_s26 = scalar_lea.vmem %s13163_s1, %s11295_s16 }
  0x31 PF: > { %v346_v1 = vld [vmem:[%s13164_s2] sm:$0xf]  ;;  %vm372_vm0 = vcmask 1043456   ;;  %vm347_vm1 = vcmask 31744   ;;  %v331_v5 = vld [vmem:[%s11759_s7 + $0x8] sm:$0xff]  ;;  %v11800_v9 = vld [vmem:[%s11759_s7 + $0x18] sm:$0xff] }
  0x32   : > { %v4505_v2 = vld [vmem:[%s13164_s2] sm:$0xf]  ;;  %10211 = vmatprep.subr.msk.mxu0 %vm372_vm0, %v346_v1  ;;  %v8939_v6 = vld [vmem:[%s13164_s2 + $0x4] sm:$0xf]  ;;  %v4490_v7 = vld [vmem:[%s11764_s26 + $0x8] sm:$0xff]  ;;  %s11587_s6 = smov [#allocation4]  }
  0x33   : > { %v330_v3 = vld [vmem:[%s11759_s7] sm:$0xff]  ;;  %10561 = vmatprep.subr.msk.mxu1 %vm372_vm0, %v4505_v2  ;;  %10212 = vmatpush3.msk.msra.mxu0 %vm372_vm0, %v346_v1  ;;  %v11803_v10 = vld [vmem:[%s11764_s26 + $0x18] sm:$0xff]  ;;  %v11816_v13 = vld [vmem:[%s11759_s7 + $0x30] sm:$0xff] }
  0x34   : > { %v4489_v4 = vld [vmem:[%s11764_s26] sm:$0xff]  ;;  %10213 = vmatprep.mubr.msk.f32.mxu0 %vm347_vm1, %v330_v3  ;;  %10562 = vmatpush3.msk.msra.mxu1 %vm372_vm0, %v4505_v2  ;;  %v11823_v14 = vld [vmem:[%s11764_s26 + $0x30] sm:$0xff]  ;;  %v8949_v15 = vld [vmem:[%s13164_s2 + $0x8] sm:$0xf] }
  0x35   : > { %v9348_v8 = vld [vmem:[%s13164_s2 + $0x4] sm:$0xf]  ;;  %10563 = vmatprep.mubr.msk.f32.mxu1 %vm347_vm1, %v4489_v4  ;;  %10214 = vmatmul.mubr.msk.f32.vlgmr.msra.gmra.mrb[0].mxu0 %vm347_vm1, %v331_v5  ;;  %v9358_v16 = vld [vmem:[%s13164_s2 + $0x8] sm:$0xf]  ;;  %v11839_v17 = vld [vmem:[%s11759_s7 + $0x38] sm:$0xff] }
  0x36   : > { %10225 = vmatprep.subr.msk.mxu0 %vm372_vm0, %v8939_v6  ;;  %10564 = vmatmul.mubr.msk.f32.vlgmr.msra.gmra.mrb[0].mxu1 %vm347_vm1, %v4490_v7  ;;  %v11808_v11 = vld [vmem:[%s11759_s7 + $0x20] sm:$0xff]  ;;  %v11844_v18 = vld [vmem:[%s11764_s26 + $0x38] sm:$0xff]  ;;  %v11847_v19 = vld [vmem:[%s11759_s7 + $0x48] sm:$0xff] }
  0x37   : > { %10575 = vmatprep.subr.msk.mxu1 %vm372_vm0, %v9348_v8  ;;  %10226 = vmatpush3.msk.msra.mxu0 %vm372_vm0, %v8939_v6  ;;  %v11813_v12 = vld [vmem:[%s11764_s26 + $0x20] sm:$0xff]  ;;  %v11851_v20 = vld [vmem:[%s11764_s26 + $0x48] sm:$0xff]  ;;  %v11860_v21 = vld [vmem:[%s11759_s7 + $0x50] sm:$0xff] }
  0x38   : > { %10576 = vmatpush3.msk.msra.mxu1 %vm372_vm0, %v9348_v8  ;;  %10216 = vmatprep.mubr.msk.f32.mxu0 %vm347_vm1, %v11800_v9  ;;  %v11865_v22 = vld [vmem:[%s11764_s26 + $0x50] sm:$0xff]  ;;  %v4654_v23 = vld [vmem:[%s11759_s7 + $0x1] sm:$0xff]  ;;  %v11877_v25 = vld [vmem:[%s11759_s7 + $0x19] sm:$0xff] }
  0x39   : > { %10566 = vmatprep.mubr.msk.f32.mxu1 %vm347_vm1, %v11803_v10  ;;  %10217 = vmatmul.mubr.msk.f32.gmra.mrb[2].mxu0 %vm347_vm1, %v11808_v11  ;;  %v4655_v24 = vld [vmem:[%s11759_s7 + $0x9] sm:$0xff]  ;;  %v11891_v28 = vld [vmem:[%s11759_s7 + $0x21] sm:$0xff]  ;;  %v11896_v29 = vld [vmem:[%s11759_s7 + $0x31] sm:$0xff] }
  0x3a   : > { %10239 = vmatprep.subr.msk.mxu0 %vm372_vm0, %v8949_v15  ;;  %10567 = vmatmul.mubr.msk.f32.gmra.mrb[2].mxu1 %vm347_vm1, %v11813_v12  ;;  %v8959_v26 = vld [vmem:[%s13164_s2 + $0xc] sm:$0xf]  ;;  %v11909_v30 = vld [vmem:[%s11759_s7 + $0x39] sm:$0xff]  ;;  %v11923_v32 = vld [vmem:[%s11759_s7 + $0x51] sm:$0xff] }
  0x3b   : > { %10219 = vmatprep.mubr.msk.f32.mxu0 %vm347_vm1, %v11816_v13  ;;  %10569 = vmatprep.mubr.msk.f32.mxu1 %vm347_vm1, %v11823_v14  ;;  %v9368_v27 = vld [vmem:[%s13164_s2 + $0xc] sm:$0xf]  ;;  %v4819_v33 = vld [vmem:[%s11764_s26 + $0x1] sm:$0xff]  ;;  %v11935_v35 = vld [vmem:[%s11764_s26 + $0x19] sm:$0xff] }
  0x3c   : > { %10589 = vmatprep.subr.msk.mxu1 %vm372_vm0, %v9358_v16  ;;  %v11912_v31 = vld [vmem:[%s11759_s7 + $0x49] sm:$0xff]  ;;  %v11949_v38 = vld [vmem:[%s11764_s26 + $0x21] sm:$0xff]  ;;  %v11954_v39 = vld [vmem:[%s11764_s26 + $0x31] sm:$0xff] }
  0x3d   : > { %10220 = vmatmul.mubr.msk.f32.gmra.mrb[4].mxu0 %vm347_vm1, %v11839_v17  ;;  %v4820_v34 = vld [vmem:[%s11764_s26 + $0x9] sm:$0xff]  ;;  %v11967_v40 = vld [vmem:[%s11764_s26 + $0x39] sm:$0xff]  ;;  %v11981_v42 = vld [vmem:[%s11764_s26 + $0x51] sm:$0xff] }
  0x3e   : > { %10570 = vmatmul.mubr.msk.f32.gmra.mrb[4].mxu1 %vm347_vm1, %v11844_v18  ;;  %10222 = vmatprep.mubr.msk.f32.mxu0 %vm347_vm1, %v11847_v19  ;;  %v8969_v36 = vld [vmem:[%s13164_s2 + $0x10] sm:$0xf]  ;;  %v4984_v43 = vld [vmem:[%s11759_s7 + $0x2] sm:$0xff]  ;;  %v11993_v45 = vld [vmem:[%s11759_s7 + $0x1a] sm:$0xff] }
  0x3f   : > { %10572 = vmatprep.mubr.msk.f32.mxu1 %vm347_vm1, %v11851_v20  ;;  %v9378_v37 = vld [vmem:[%s13164_s2 + $0x10] sm:$0xf]  ;;  %v8987_v46 = vld [vmem:[%s13164_s2 + $0x14] sm:$0xf]  ;;  %v12007_v48 = vld [vmem:[%s11759_s7 + $0x22] sm:$0xff] }
  0x40   : > { %v11970_v41 = vld [vmem:[%s11764_s26 + $0x49] sm:$0xff]  ;;  %v9396_v47 = vld [vmem:[%s13164_s2 + $0x14] sm:$0xf]  ;;  %v12025_v50 = vld [vmem:[%s11759_s7 + $0x3a] sm:$0xff] }
  0x41   : > { %10223 = vmatmul.mubr.msk.f32.gmra.mrb[6].mxu0 %vm347_vm1, %v11860_v21  ;;  %v4985_v44 = vld [vmem:[%s11759_s7 + $0xa] sm:$0xff]  ;;  %v12012_v49 = vld [vmem:[%s11759_s7 + $0x32] sm:$0xff]  ;;  %v5149_v53 = vld [vmem:[%s11764_s26 + $0x2] sm:$0xff] }
  0x42   : > { %10573 = vmatmul.mubr.msk.f32.gmra.mrb[6].mxu1 %vm347_vm1, %v11865_v22  ;;  %10227 = vmatprep.mubr.msk.f32.mxu0 %vm347_vm1, %v4489_v4  ;;  %v12028_v51 = vld [vmem:[%s11759_s7 + $0x4a] sm:$0xff]  ;;  %v12039_v52 = vld [vmem:[%s11759_s7 + $0x52] sm:$0xff]  ;;  %v12051_v55 = vld [vmem:[%s11764_s26 + $0x1a] sm:$0xff] }
  0x43   : > { %10577 = vmatprep.mubr.msk.f32.mxu1 %vm347_vm1, %v4654_v23  ;;  %v5150_v54 = vld [vmem:[%s11764_s26 + $0xa] sm:$0xff]  ;;  %v9005_v56 = vld [vmem:[%s13164_s2 + $0x18] sm:$0xf]  ;;  %v12065_v58 = vld [vmem:[%s11764_s26 + $0x22] sm:$0xff] }
  0x44   : > { %v9414_v57 = vld [vmem:[%s13164_s2 + $0x18] sm:$0xf]  ;;  %v12086_v61 = vld [vmem:[%s11764_s26 + $0x4a] sm:$0xff]  ;;  %v9023_v63 = vld [vmem:[%s13164_s2 + $0x1c] sm:$0xf] }
  0x45   : > { %10228 = vmatmul.mubr.msk.f32.vlgmr.msra.gmra.mrb[0].mxu0 %vm347_vm1, %v4490_v7  ;;  %v12070_v59 = vld [vmem:[%s11764_s26 + $0x32] sm:$0xff]  ;;  %v12083_v60 = vld [vmem:[%s11764_s26 + $0x3a] sm:$0xff]  ;;  %v12146_v3 = vld [vmem:[%s11759_s7 + $0x68] sm:$0xff] }
  0x46   : > { %10578 = vmatmul.mubr.msk.f32.vlgmr.msra.gmra.mrb[0].mxu1 %vm347_vm1, %v4655_v24  ;;  %10240 = vmatpush3.msk.msra.mxu0 %vm372_vm0, %v8949_v15  ;;  %v12097_v62 = vld [vmem:[%s11764_s26 + $0x52] sm:$0xff]  ;;  %v9432_v0 = vld [vmem:[%s13164_s2 + $0x1c] sm:$0xf]  ;;  %v12134_v1 = vld [vmem:[%s11759_s7 + $0x60] sm:$0xff] }
  0x47   : > { %10590 = vmatpush3.msk.msra.mxu1 %vm372_vm0, %v9358_v16  ;;  %10230 = vmatprep.mubr.msk.f32.mxu0 %vm347_vm1, %v11803_v10  ;;  %v12137_v2 = vld [vmem:[%s11764_s26 + $0x60] sm:$0xff]  ;;  %v12151_v4 = vld [vmem:[%s11764_s26 + $0x68] sm:$0xff] }
  0x48   : > { %10580 = vmatprep.mubr.msk.f32.mxu1 %vm347_vm1, %v11877_v25  ;;  %10253 = vmatprep.subr.msk.mxu0 %vm372_vm0, %v8959_v26  ;;  %v9041_v5 = vld [vmem:[%s13164_s2 + $0x20] sm:$0xf]  ;;  %v12199_v8 = vld [vmem:[%s11759_s7 + $0x69] sm:$0xff] }
  0x49   : > { %10231 = vmatmul.mubr.msk.f32.gmra.mrb[2].mxu0 %vm347_vm1, %v11813_v12  ;;  %10603 = vmatprep.subr.msk.mxu1 %vm372_vm0, %v9368_v27  ;;  %v9450_v6 = vld [vmem:[%s13164_s2 + $0x20] sm:$0xf]  ;;  %v9077_v15 = vld [vmem:[%s13164_s2 + $0x28] sm:$0xf] }
  0x4a   : > { %10581 = vmatmul.mubr.msk.f32.gmra.mrb[2].mxu1 %vm347_vm1, %v11891_v28  ;;  %10233 = vmatprep.mubr.msk.f32.mxu0 %vm347_vm1, %v11823_v14  ;;  %v12188_v7 = vld [vmem:[%s11759_s7 + $0x61] sm:$0xff] }
  0x4b   : > { %10583 = vmatprep.mubr.msk.f32.mxu1 %vm347_vm1, %v11896_v29  ;;  %v9486_v16 = vld [vmem:[%s13164_s2 + $0x28] sm:$0xf] }
  0x4d   : > { %10234 = vmatmul.mubr.msk.f32.gmra.mrb[4].mxu0 %vm347_vm1, %v11844_v18 }
  0x4e   : > { %10584 = vmatmul.mubr.msk.f32.gmra.mrb[4].mxu1 %vm347_vm1, %v11909_v30  ;;  %10236 = vmatprep.mubr.msk.f32.mxu0 %vm347_vm1, %v11851_v20 }
  0x4f   : > { %10586 = vmatprep.mubr.msk.f32.mxu1 %vm347_vm1, %v11912_v31 }
  0x51   : > { %10237 = vmatmul.mubr.msk.f32.gmra.mrb[6].mxu0 %vm347_vm1, %v11865_v22 }
  0x52   : > { %10587 = vmatmul.mubr.msk.f32.gmra.mrb[6].mxu1 %vm347_vm1, %v11923_v32  ;;  %10241 = vmatprep.mubr.msk.f32.mxu0 %vm347_vm1, %v4654_v23  ;;  %v12284_v23 = vld [vmem:[%s11759_s7 + $0x62] sm:$0xff] }
  0x53   : > { %10591 = vmatprep.mubr.msk.f32.mxu1 %vm347_vm1, %v4819_v33 }
  0x55   : > { %10242 = vmatmul.mubr.msk.f32.vlgmr.msra.gmra.mrb[0].mxu0 %vm347_vm1, %v4655_v24  ;;  %v12295_v24 = vld [vmem:[%s11759_s7 + $0x6a] sm:$0xff] }
  0x56   : > { %10592 = vmatmul.mubr.msk.f32.vlgmr.msra.gmra.mrb[0].mxu1 %vm347_vm1, %v4820_v34  ;;  %10254 = vmatpush3.msk.msra.mxu0 %vm372_vm0, %v8959_v26  ;;  %v9504_v26 = vld [vmem:[%s13164_s2 + $0x2c] sm:$0xf] }
  0x57   : > { %10604 = vmatpush3.msk.msra.mxu1 %vm372_vm0, %v9368_v27  ;;  %10244 = vmatprep.mubr.msk.f32.mxu0 %vm347_vm1, %v11877_v25  ;;  %v12332_v27 = vld [vmem:[%s11764_s26 + $0x62] sm:$0xff] }
  0x58   : > { %10594 = vmatprep.mubr.msk.f32.mxu1 %vm347_vm1, %v11935_v35  ;;  %10267 = vmatprep.subr.msk.mxu0 %vm372_vm0, %v8969_v36 }
  0x59   : > { %10245 = vmatmul.mubr.msk.f32.gmra.mrb[2].mxu0 %vm347_vm1, %v11891_v28  ;;  %10617 = vmatprep.subr.msk.mxu1 %vm372_vm0, %v9378_v37 }
  0x5a   : > { %10595 = vmatmul.mubr.msk.f32.gmra.mrb[2].mxu1 %vm347_vm1, %v11949_v38  ;;  %10247 = vmatprep.mubr.msk.f32.mxu0 %vm347_vm1, %v11896_v29 }
  0x5b   : > { %10597 = vmatprep.mubr.msk.f32.mxu1 %vm347_vm1, %v11954_v39 }
  0x5d   : > { %10248 = vmatmul.mubr.msk.f32.gmra.mrb[4].mxu0 %vm347_vm1, %v11909_v30 }
  0x5e   : > { %10598 = vmatmul.mubr.msk.f32.gmra.mrb[4].mxu1 %vm347_vm1, %v11967_v40  ;;  %10250 = vmatprep.mubr.msk.f32.mxu0 %vm347_vm1, %v11912_v31 }
  0x5f   : > { %10600 = vmatprep.mubr.msk.f32.mxu1 %vm347_vm1, %v11970_v41 }
  0x61   : > { %10251 = vmatmul.mubr.msk.f32.gmra.mrb[6].mxu0 %vm347_vm1, %v11923_v32 }
  0x62   : > { %10601 = vmatmul.mubr.msk.f32.gmra.mrb[6].mxu1 %vm347_vm1, %v11981_v42  ;;  %10255 = vmatprep.mubr.msk.f32.mxu0 %vm347_vm1, %v4819_v33  ;;  %v9113_v33 = vld [vmem:[%s13164_s2 + $0x30] sm:$0xf] }
  0x63   : > { %10605 = vmatprep.mubr.msk.f32.mxu1 %vm347_vm1, %v4984_v43 }
  0x65   : > { %10256 = vmatmul.mubr.msk.f32.vlgmr.msra.gmra.mrb[0].mxu0 %vm347_vm1, %v4820_v34  ;;  %v12397_v34 = vld [vmem:[%s11764_s26 + $0x80] sm:$0xff] }
  0x66   : > { %10606 = vmatmul.mubr.msk.f32.vlgmr.msra.gmra.mrb[0].mxu1 %vm347_vm1, %v4985_v44  ;;  %10268 = vmatpush3.msk.msra.mxu0 %vm372_vm0, %v8969_v36  ;;  %v9576_v36 = vld [vmem:[%s13164_s2 + $0x3c] sm:$0xf] }
  0x67   : > { %10618 = vmatpush3.msk.msra.mxu1 %vm372_vm0, %v9378_v37  ;;  %10258 = vmatprep.mubr.msk.f32.mxu0 %vm347_vm1, %v11935_v35  ;;  %v12530_v37 = vld [vmem:[%s11759_s7 + $0x7a] sm:$0xff] }
  0x68   : > { %10608 = vmatprep.mubr.msk.f32.mxu1 %vm347_vm1, %v11993_v45  ;;  %10281 = vmatprep.subr.msk.mxu0 %vm372_vm0, %v8987_v46 }
  0x69   : > { %10259 = vmatmul.mubr.msk.f32.gmra.mrb[2].mxu0 %vm347_vm1, %v11949_v38  ;;  %10631 = vmatprep.subr.msk.mxu1 %vm372_vm0, %v9396_v47 }
  0x6a   : > { %10609 = vmatmul.mubr.msk.f32.gmra.mrb[2].mxu1 %vm347_vm1, %v12007_v48  ;;  %10261 = vmatprep.mubr.msk.f32.mxu0 %vm347_vm1, %v11954_v39 }
  0x6b   : > { %10611 = vmatprep.mubr.msk.f32.mxu1 %vm347_vm1, %v12012_v49 }
  0x6d   : > { %10262 = vmatmul.mubr.msk.f32.gmra.mrb[4].mxu0 %vm347_vm1, %v11967_v40 }
  0x6e   : > { %10612 = vmatmul.mubr.msk.f32.gmra.mrb[4].mxu1 %vm347_vm1, %v12025_v50  ;;  %10264 = vmatprep.mubr.msk.f32.mxu0 %vm347_vm1, %v11970_v41 }
  0x6f   : > { %10614 = vmatprep.mubr.msk.f32.mxu1 %vm347_vm1, %v12028_v51 }
  0x71   : > { %10265 = vmatmul.mubr.msk.f32.gmra.mrb[6].mxu0 %vm347_vm1, %v11981_v42 }
  0x72   : > { %10615 = vmatmul.mubr.msk.f32.gmra.mrb[6].mxu1 %vm347_vm1, %v12039_v52  ;;  %10269 = vmatprep.mubr.msk.f32.mxu0 %vm347_vm1, %v4984_v43  ;;  %v9159_v43 = vld [vmem:[%s11759_s7 + $0x48] sm:$0xff] }
  0x73   : > { %10619 = vmatprep.mubr.msk.f32.mxu1 %vm347_vm1, %v5149_v53  ;;  %v9586_v53 = vld [vmem:[%s11759_s7 + $0x49] sm:$0xff] }
  0x75   : > { %10270 = vmatmul.mubr.msk.f32.vlgmr.msra.gmra.mrb[0].mxu0 %vm347_vm1, %v4985_v44  ;;  %v9568_v44 = vld [vmem:[%s11764_s26 + $0x48] sm:$0xff] }
  0x76   : > { %10620 = vmatmul.mubr.msk.f32.vlgmr.msra.gmra.mrb[0].mxu1 %vm347_vm1, %v5150_v54  ;;  %10282 = vmatpush3.msk.msra.mxu0 %vm372_vm0, %v8987_v46  ;;  %v9569_v46 = vld [vmem:[%s11764_s26 + $0x50] sm:$0xff] }
  0x77   : > { %10632 = vmatpush3.msk.msra.mxu1 %vm372_vm0, %v9396_v47  ;;  %10272 = vmatprep.mubr.msk.f32.mxu0 %vm347_vm1, %v11993_v45  ;;  %v9203_v47 = vld [vmem:[%s13164_s2 + $0x44] sm:$0xf]  ;;  %v9587_v54 = vld [vmem:[%s11759_s7 + $0x51] sm:$0xff] }
  0x78   : > { %10622 = vmatprep.mubr.msk.f32.mxu1 %vm347_vm1, %v12051_v55  ;;  %10295 = vmatprep.subr.msk.mxu0 %vm372_vm0, %v9005_v56 }
  0x79   : > { %10273 = vmatmul.mubr.msk.f32.gmra.mrb[2].mxu0 %vm347_vm1, %v12007_v48  ;;  %10645 = vmatprep.subr.msk.mxu1 %vm372_vm0, %v9414_v57 }
  0x7a   : > { %10623 = vmatmul.mubr.msk.f32.gmra.mrb[2].mxu1 %vm347_vm1, %v12065_v58  ;;  %10275 = vmatprep.mubr.msk.f32.mxu0 %vm347_vm1, %v12012_v49 }
  0x7b   : > { %10625 = vmatprep.mubr.msk.f32.mxu1 %vm347_vm1, %v12070_v59 }
  0x7d   : > { %10276 = vmatmul.mubr.msk.f32.gmra.mrb[4].mxu0 %vm347_vm1, %v12025_v50 }
  0x7e   : > { %10626 = vmatmul.mubr.msk.f32.gmra.mrb[4].mxu1 %vm347_vm1, %v12083_v60  ;;  %10278 = vmatprep.mubr.msk.f32.mxu0 %vm347_vm1, %v12028_v51 }
  0x7f   : > { %10628 = vmatprep.mubr.msk.f32.mxu1 %vm347_vm1, %v12086_v61 }
  0x81   : > { %10279 = vmatmul.mubr.msk.f32.gmra.mrb[6].mxu0 %vm347_vm1, %v12039_v52 }
  0x82   : > { %10629 = vmatmul.mubr.msk.f32.gmra.mrb[6].mxu1 %vm347_vm1, %v12097_v62  ;;  %10283 = vmatprep.mubr.msk.f32.mxu0 %vm347_vm1, %v11800_v9  ;;  %v9059_v9 = vld [vmem:[%s13164_s2 + $0x24] sm:$0xf] }
  0x83   : > { %10633 = vmatprep.mubr.msk.f32.mxu1 %vm347_vm1, %v11803_v10 }
  0x85   : > { %10284 = vmatmul.mubr.msk.f32.vlgmr.msra.gmra.mrb[0].mxu0 %vm347_vm1, %v11808_v11  ;;  %v12236_v11 = vld [vmem:[%s11764_s26 + $0x61] sm:$0xff] }
  0x86   : > { %10634 = vmatmul.mubr.msk.f32.vlgmr.msra.gmra.mrb[0].mxu1 %vm347_vm1, %v11813_v12  ;;  %10296 = vmatpush3.msk.msra.mxu0 %vm372_vm0, %v9005_v56  ;;  %v9630_v56 = vld [vmem:[%s13164_s2 + $0x48] sm:$0xf] }
  0x87   : > { %10646 = vmatpush3.msk.msra.mxu1 %vm372_vm0, %v9414_v57  ;;  %10286 = vmatprep.mubr.msk.f32.mxu0 %vm347_vm1, %v11816_v13  ;;  %v12678_v57 = vld [vmem:[%s11759_s7 + $0x91] sm:$0xff] }
  0x88   : > { %10636 = vmatprep.mubr.msk.f32.mxu1 %vm347_vm1, %v11823_v14  ;;  %10309 = vmatprep.subr.msk.mxu0 %vm372_vm0, %v9023_v63 }
  0x89   : > { %10287 = vmatmul.mubr.msk.f32.gmra.mrb[2].mxu0 %vm347_vm1, %v11839_v17  ;;  %10659 = vmatprep.subr.msk.mxu1 %vm372_vm0, %v9432_v0 }
  0x8a   : > { %10637 = vmatmul.mubr.msk.f32.gmra.mrb[2].mxu1 %vm347_vm1, %v11844_v18  ;;  %10289 = vmatprep.mubr.msk.f32.mxu0 %vm347_vm1, %v11847_v19 }
  0x8b   : > { %10639 = vmatprep.mubr.msk.f32.mxu1 %vm347_vm1, %v11851_v20 }
  0x8d   : > { %10290 = vmatmul.mubr.msk.f32.gmra.mrb[4].mxu0 %vm347_vm1, %v11860_v21 }
  0x8e   : > { %10640 = vmatmul.mubr.msk.f32.gmra.mrb[4].mxu1 %vm347_vm1, %v11865_v22  ;;  %10292 = vmatprep.mubr.msk.f32.mxu0 %vm347_vm1, %v12134_v1 }
  0x8f   : > { %10642 = vmatprep.mubr.msk.f32.mxu1 %vm347_vm1, %v12137_v2 }
  0x91   : > { %10293 = vmatmul.mubr.msk.f32.gmra.mrb[6].mxu0 %vm347_vm1, %v12146_v3 }
  0x92   : > { %10643 = vmatmul.mubr.msk.f32.gmra.mrb[6].mxu1 %vm347_vm1, %v12151_v4  ;;  %10297 = vmatprep.mubr.msk.f32.mxu0 %vm347_vm1, %v11803_v10  ;;  %v9468_v10 = vld [vmem:[%s13164_s2 + $0x24] sm:$0xf] }
  0x93   : > { %10647 = vmatprep.mubr.msk.f32.mxu1 %vm347_vm1, %v11877_v25 }
  0x95   : > { %10298 = vmatmul.mubr.msk.f32.vlgmr.msra.gmra.mrb[0].mxu0 %vm347_vm1, %v11813_v12  ;;  %v12247_v12 = vld [vmem:[%s11764_s26 + $0x69] sm:$0xff] }
  0x96   : > { %10648 = vmatmul.mubr.msk.f32.vlgmr.msra.gmra.mrb[0].mxu1 %vm347_vm1, %v11891_v28  ;;  %10310 = vmatpush3.msk.msra.mxu0 %vm372_vm0, %v9023_v63  ;;  %v12724_v63 = vld [vmem:[%s11764_s26 + $0x91] sm:$0xff] }
  0x97   : > { %10660 = vmatpush3.msk.msra.mxu1 %vm372_vm0, %v9432_v0  ;;  %10300 = vmatprep.mubr.msk.f32.mxu0 %vm347_vm1, %v11823_v14  ;;  %v12735_v0 = vld [vmem:[%s11764_s26 + $0x99] sm:$0xff] }
  0x98   : > { %10650 = vmatprep.mubr.msk.f32.mxu1 %vm347_vm1, %v11896_v29  ;;  %10323 = vmatprep.subr.msk.mxu0 %vm372_vm0, %v9041_v5 }
  0x99   : > { %10301 = vmatmul.mubr.msk.f32.gmra.mrb[2].mxu0 %vm347_vm1, %v11844_v18  ;;  %10673 = vmatprep.subr.msk.mxu1 %vm372_vm0, %v9450_v6 }
  0x9a   : > { %10651 = vmatmul.mubr.msk.f32.gmra.mrb[2].mxu1 %vm347_vm1, %v11909_v30  ;;  %10303 = vmatprep.mubr.msk.f32.mxu0 %vm347_vm1, %v11851_v20 }
  0x9b   : > { %10653 = vmatprep.mubr.msk.f32.mxu1 %vm347_vm1, %v11912_v31 }
  0x9d   : > { %10304 = vmatmul.mubr.msk.f32.gmra.mrb[4].mxu0 %vm347_vm1, %v11865_v22 }
  0x9e   : > { %10654 = vmatmul.mubr.msk.f32.gmra.mrb[4].mxu1 %vm347_vm1, %v11923_v32  ;;  %10306 = vmatprep.mubr.msk.f32.mxu0 %vm347_vm1, %v12137_v2 }
  0x9f   : > { %10656 = vmatprep.mubr.msk.f32.mxu1 %vm347_vm1, %v12188_v7 }
  0xa1   : > { %10307 = vmatmul.mubr.msk.f32.gmra.mrb[6].mxu0 %vm347_vm1, %v12151_v4 }
  0xa2   : > { %10657 = vmatmul.mubr.msk.f32.gmra.mrb[6].mxu1 %vm347_vm1, %v12199_v8  ;;  %10311 = vmatprep.mubr.msk.f32.mxu0 %vm347_vm1, %v11877_v25  ;;  %v9095_v25 = vld [vmem:[%s13164_s2 + $0x2c] sm:$0xf] }
  0xa3   : > { %10661 = vmatprep.mubr.msk.f32.mxu1 %vm347_vm1, %v11935_v35 }
  0xa5   : > { %10312 = vmatmul.mubr.msk.f32.vlgmr.msra.gmra.mrb[0].mxu0 %vm347_vm1, %v11891_v28  ;;  %v12343_v28 = vld [vmem:[%s11764_s26 + $0x6a] sm:$0xff] }
  0xa6   : > { %10662 = vmatmul.mubr.msk.f32.vlgmr.msra.gmra.mrb[0].mxu1 %vm347_vm1, %v11949_v38  ;;  %10324 = vmatpush3.msk.msra.mxu0 %vm372_vm0, %v9041_v5  ;;  %v12770_v5 = vld [vmem:[%s11759_s7 + $0x92] sm:$0xff] }
  0xa7   : > { %10674 = vmatpush3.msk.msra.mxu1 %vm372_vm0, %v9450_v6  ;;  %10314 = vmatprep.mubr.msk.f32.mxu0 %vm347_vm1, %v11896_v29  ;;  %v12781_v6 = vld [vmem:[%s11759_s7 + $0x9a] sm:$0xff] }
  0xa8   : > { %10664 = vmatprep.mubr.msk.f32.mxu1 %vm347_vm1, %v11954_v39  ;;  %10337 = vmatprep.subr.msk.mxu0 %vm372_vm0, %v9059_v9 }
  0xa9   : > { %10315 = vmatmul.mubr.msk.f32.gmra.mrb[2].mxu0 %vm347_vm1, %v11909_v30  ;;  %10687 = vmatprep.subr.msk.mxu1 %vm372_vm0, %v9468_v10 }
  0xaa   : > { %10665 = vmatmul.mubr.msk.f32.gmra.mrb[2].mxu1 %vm347_vm1, %v11967_v40  ;;  %10317 = vmatprep.mubr.msk.f32.mxu0 %vm347_vm1, %v11912_v31 }
  0xab   : > { %10667 = vmatprep.mubr.msk.f32.mxu1 %vm347_vm1, %v11970_v41 }
  0xad   : > { %10318 = vmatmul.mubr.msk.f32.gmra.mrb[4].mxu0 %vm347_vm1, %v11923_v32 }
  0xae   : > { %10668 = vmatmul.mubr.msk.f32.gmra.mrb[4].mxu1 %vm347_vm1, %v11981_v42  ;;  %10320 = vmatprep.mubr.msk.f32.mxu0 %vm347_vm1, %v12188_v7 }
  0xaf   : > { %10670 = vmatprep.mubr.msk.f32.mxu1 %vm347_vm1, %v12236_v11 }
  0xb1   : > { %10321 = vmatmul.mubr.msk.f32.gmra.mrb[6].mxu0 %vm347_vm1, %v12199_v8 }
  0xb2   : > { %10671 = vmatmul.mubr.msk.f32.gmra.mrb[6].mxu1 %vm347_vm1, %v12247_v12  ;;  %10325 = vmatprep.mubr.msk.f32.mxu0 %vm347_vm1, %v11935_v35  ;;  %v9131_v35 = vld [vmem:[%s13164_s2 + $0x34] sm:$0xf] }
  0xb3   : > { %10675 = vmatprep.mubr.msk.f32.mxu1 %vm347_vm1, %v11993_v45 }
  0xb5   : > { %10326 = vmatmul.mubr.msk.f32.vlgmr.msra.gmra.mrb[0].mxu0 %vm347_vm1, %v11949_v38  ;;  %v12541_v38 = vld [vmem:[%s11759_s7 + $0x82] sm:$0xff] }
  0xb6   : > { %10676 = vmatmul.mubr.msk.f32.vlgmr.msra.gmra.mrb[0].mxu1 %vm347_vm1, %v12007_v48  ;;  %10338 = vmatpush3.msk.msra.mxu0 %vm372_vm0, %v9059_v9  ;;  %v9275_v9 = vld [vmem:[%s13164_s2 + $0x54] sm:$0xf] }
  0xb7   : > { %10688 = vmatpush3.msk.msra.mxu1 %vm372_vm0, %v9468_v10  ;;  %10328 = vmatprep.mubr.msk.f32.mxu0 %vm347_vm1, %v11954_v39  ;;  %v9684_v10 = vld [vmem:[%s13164_s2 + $0x54] sm:$0xf] }
  0xb8   : > { %10678 = vmatprep.mubr.msk.f32.mxu1 %vm347_vm1, %v12012_v49  ;;  %10351 = vmatprep.subr.msk.mxu0 %vm372_vm0, %v9077_v15 }
  0xb9   : > { %10329 = vmatmul.mubr.msk.f32.gmra.mrb[2].mxu0 %vm347_vm1, %v11967_v40  ;;  %10701 = vmatprep.subr.msk.mxu1 %vm372_vm0, %v9486_v16 }
  0xba   : > { %10679 = vmatmul.mubr.msk.f32.gmra.mrb[2].mxu1 %vm347_vm1, %v12025_v50  ;;  %10331 = vmatprep.mubr.msk.f32.mxu0 %vm347_vm1, %v11970_v41 }
  0xbb   : > { %10681 = vmatprep.mubr.msk.f32.mxu1 %vm347_vm1, %v12028_v51 }
  0xbd   : > { %10332 = vmatmul.mubr.msk.f32.gmra.mrb[4].mxu0 %vm347_vm1, %v11981_v42 }
  0xbe   : > { %10682 = vmatmul.mubr.msk.f32.gmra.mrb[4].mxu1 %vm347_vm1, %v12039_v52  ;;  %10334 = vmatprep.mubr.msk.f32.mxu0 %vm347_vm1, %v12236_v11 }
  0xbf   : > { %10684 = vmatprep.mubr.msk.f32.mxu1 %vm347_vm1, %v12284_v23 }
  0xc1   : > { %10335 = vmatmul.mubr.msk.f32.gmra.mrb[6].mxu0 %vm347_vm1, %v12247_v12 }
  0xc2   : > { %10685 = vmatmul.mubr.msk.f32.gmra.mrb[6].mxu1 %vm347_vm1, %v12295_v24  ;;  %10339 = vmatprep.mubr.msk.f32.mxu0 %vm347_vm1, %v11993_v45  ;;  %v9160_v45 = vld [vmem:[%s11759_s7 + $0x50] sm:$0xff] }
  0xc3   : > { %10689 = vmatprep.mubr.msk.f32.mxu1 %vm347_vm1, %v12051_v55  ;;  %v9221_v55 = vld [vmem:[%s13164_s2 + $0x48] sm:$0xf] }
  0xc5   : > { %10340 = vmatmul.mubr.msk.f32.vlgmr.msra.gmra.mrb[0].mxu0 %vm347_vm1, %v12007_v48  ;;  %v9612_v48 = vld [vmem:[%s13164_s2 + $0x44] sm:$0xf] }
  0xc6   : > { %10690 = vmatmul.mubr.msk.f32.vlgmr.msra.gmra.mrb[0].mxu1 %vm347_vm1, %v12065_v58  ;;  %10352 = vmatpush3.msk.msra.mxu0 %vm372_vm0, %v9077_v15  ;;  %v12689_v58 = vld [vmem:[%s11759_s7 + $0x99] sm:$0xff] }
  0xc7   : > { %10702 = vmatpush3.msk.msra.mxu1 %vm372_vm0, %v9486_v16  ;;  %10342 = vmatprep.mubr.msk.f32.mxu0 %vm347_vm1, %v12012_v49  ;;  %v9249_v15 = vld [vmem:[%s11759_s7 + $0x60] sm:$0xff] }
  0xc8   : > { %10692 = vmatprep.mubr.msk.f32.mxu1 %vm347_vm1, %v12070_v59  ;;  %10365 = vmatprep.subr.msk.mxu0 %vm372_vm0, %v9095_v25  ;;  %v9658_v16 = vld [vmem:[%s11764_s26 + $0x60] sm:$0xff] }
  0xc9   : > { %10343 = vmatmul.mubr.msk.f32.gmra.mrb[2].mxu0 %vm347_vm1, %v12025_v50  ;;  %10715 = vmatprep.subr.msk.mxu1 %vm372_vm0, %v9504_v26 }
  0xca   : > { %10693 = vmatmul.mubr.msk.f32.gmra.mrb[2].mxu1 %vm347_vm1, %v12083_v60  ;;  %10345 = vmatprep.mubr.msk.f32.mxu0 %vm347_vm1, %v12028_v51 }
  0xcb   : > { %10695 = vmatprep.mubr.msk.f32.mxu1 %vm347_vm1, %v12086_v61 }
  0xcd   : > { %10346 = vmatmul.mubr.msk.f32.gmra.mrb[4].mxu0 %vm347_vm1, %v12039_v52 }
  0xce   : > { %10696 = vmatmul.mubr.msk.f32.gmra.mrb[4].mxu1 %vm347_vm1, %v12097_v62  ;;  %10348 = vmatprep.mubr.msk.f32.mxu0 %vm347_vm1, %v12284_v23 }
  0xcf   : > { %10698 = vmatprep.mubr.msk.f32.mxu1 %vm347_vm1, %v12332_v27 }
  0xd1   : > { %10349 = vmatmul.mubr.msk.f32.gmra.mrb[6].mxu0 %vm347_vm1, %v12295_v24 }
  0xd2   : > { %10699 = vmatmul.mubr.msk.f32.gmra.mrb[6].mxu1 %vm347_vm1, %v12343_v28  ;;  %10353 = vmatprep.mubr.msk.f32.mxu0 %vm347_vm1, %v11816_v13  ;;  %v9522_v13 = vld [vmem:[%s13164_s2 + $0x30] sm:$0xf] }
  0xd3   : > { %10703 = vmatprep.mubr.msk.f32.mxu1 %vm347_vm1, %v11823_v14 }
  0xd5   : > { %10354 = vmatmul.mubr.msk.f32.vlgmr.msra.gmra.mrb[0].mxu0 %vm347_vm1, %v11839_v17  ;;  %v12380_v17 = vld [vmem:[%s11759_s7 + $0x78] sm:$0xff] }
  0xd6   : > { %10704 = vmatmul.mubr.msk.f32.vlgmr.msra.gmra.mrb[0].mxu1 %vm347_vm1, %v11844_v18  ;;  %10366 = vmatpush3.msk.msra.mxu0 %vm372_vm0, %v9095_v25  ;;  %v9293_v25 = vld [vmem:[%s13164_s2 + $0x58] sm:$0xf] }
  0xd7   : > { %10716 = vmatpush3.msk.msra.mxu1 %vm372_vm0, %v9504_v26  ;;  %10356 = vmatprep.mubr.msk.f32.mxu0 %vm347_vm1, %v11847_v19  ;;  %v12383_v19 = vld [vmem:[%s11764_s26 + $0x78] sm:$0xff] }
  0xd8   : > { %10706 = vmatprep.mubr.msk.f32.mxu1 %vm347_vm1, %v11851_v20  ;;  %10379 = vmatprep.subr.msk.mxu0 %vm372_vm0, %v9113_v33  ;;  %v9702_v26 = vld [vmem:[%s13164_s2 + $0x58] sm:$0xf] }
  0xd9   : > { %10357 = vmatmul.mubr.msk.f32.gmra.mrb[2].mxu0 %vm347_vm1, %v11860_v21  ;;  %10729 = vmatprep.subr.msk.mxu1 %vm372_vm0, %v9522_v13  ;;  %v12392_v21 = vld [vmem:[%s11759_s7 + $0x80] sm:$0xff] }
  0xda   : > { %10707 = vmatmul.mubr.msk.f32.gmra.mrb[2].mxu1 %vm347_vm1, %v11865_v22  ;;  %10359 = vmatprep.mubr.msk.f32.mxu0 %vm347_vm1, %v12134_v1 }
  0xdb   : > { %10709 = vmatprep.mubr.msk.f32.mxu1 %vm347_vm1, %v12137_v2 }
  0xdd   : > { %10360 = vmatmul.mubr.msk.f32.gmra.mrb[4].mxu0 %vm347_vm1, %v12146_v3 }
  0xde   : > { %10710 = vmatmul.mubr.msk.f32.gmra.mrb[4].mxu1 %vm347_vm1, %v12151_v4  ;;  %10362 = vmatprep.mubr.msk.f32.mxu0 %vm347_vm1, %v12380_v17 }
  0xdf   : > { %10712 = vmatprep.mubr.msk.f32.mxu1 %vm347_vm1, %v12383_v19 }
  0xe1   : > { %10363 = vmatmul.mubr.msk.f32.gmra.mrb[6].mxu0 %vm347_vm1, %v12392_v21 }
  0xe2   : > { %10713 = vmatmul.mubr.msk.f32.gmra.mrb[6].mxu1 %vm347_vm1, %v12397_v34  ;;  %10367 = vmatprep.mubr.msk.f32.mxu0 %vm347_vm1, %v11823_v14  ;;  %v9540_v14 = vld [vmem:[%s13164_s2 + $0x34] sm:$0xf] }
  0xe3   : > { %10717 = vmatprep.mubr.msk.f32.mxu1 %vm347_vm1, %v11896_v29 }
  0xe5   : > { %10368 = vmatmul.mubr.msk.f32.vlgmr.msra.gmra.mrb[0].mxu0 %vm347_vm1, %v11844_v18  ;;  %v12434_v18 = vld [vmem:[%s11759_s7 + $0x79] sm:$0xff] }
  0xe6   : > { %10718 = vmatmul.mubr.msk.f32.vlgmr.msra.gmra.mrb[0].mxu1 %vm347_vm1, %v11909_v30  ;;  %10380 = vmatpush3.msk.msra.mxu0 %vm372_vm0, %v9113_v33  ;;  %v9256_v33 = vld [vmem:[%s11759_s7 + $0xb0] sm:$0xff] }
  0xe7   : > { %10730 = vmatpush3.msk.msra.mxu1 %vm372_vm0, %v9522_v13  ;;  %10370 = vmatprep.mubr.msk.f32.mxu0 %vm347_vm1, %v11851_v20  ;;  %v12445_v20 = vld [vmem:[%s11759_s7 + $0x81] sm:$0xff]  ;;  %v9665_v13 = vld [vmem:[%s11764_s26 + $0xb0] sm:$0xff] }
  0xe8   : > { %10720 = vmatprep.mubr.msk.f32.mxu1 %vm347_vm1, %v11912_v31  ;;  %10393 = vmatprep.subr.msk.mxu0 %vm372_vm0, %v9131_v35 }
  0xe9   : > { %10371 = vmatmul.mubr.msk.f32.gmra.mrb[2].mxu0 %vm347_vm1, %v11865_v22  ;;  %10743 = vmatprep.subr.msk.mxu1 %vm372_vm0, %v9540_v14  ;;  %v9149_v22 = vld [vmem:[%s13164_s2 + $0x38] sm:$0xf] }
  0xea   : > { %10721 = vmatmul.mubr.msk.f32.gmra.mrb[2].mxu1 %vm347_vm1, %v11923_v32  ;;  %10373 = vmatprep.mubr.msk.f32.mxu0 %vm347_vm1, %v12137_v2 }
  0xeb   : > { %10723 = vmatprep.mubr.msk.f32.mxu1 %vm347_vm1, %v12188_v7 }
  0xed   : > { %10374 = vmatmul.mubr.msk.f32.gmra.mrb[4].mxu0 %vm347_vm1, %v12151_v4 }
  0xee   : > { %10724 = vmatmul.mubr.msk.f32.gmra.mrb[4].mxu1 %vm347_vm1, %v12199_v8  ;;  %10376 = vmatprep.mubr.msk.f32.mxu0 %vm347_vm1, %v12383_v19 }
  0xef   : > { %10726 = vmatprep.mubr.msk.f32.mxu1 %vm347_vm1, %v12434_v18 }
  0xf1   : > { %10377 = vmatmul.mubr.msk.f32.gmra.mrb[6].mxu0 %vm347_vm1, %v12397_v34 }
  0xf2   : > { %10727 = vmatmul.mubr.msk.f32.gmra.mrb[6].mxu1 %vm347_vm1, %v12445_v20  ;;  %10381 = vmatprep.mubr.msk.f32.mxu0 %vm347_vm1, %v11896_v29  ;;  %v9558_v29 = vld [vmem:[%s13164_s2 + $0x38] sm:$0xf] }
  0xf3   : > { %10731 = vmatprep.mubr.msk.f32.mxu1 %vm347_vm1, %v11954_v39 }
  0xf5   : > { %10382 = vmatmul.mubr.msk.f32.vlgmr.msra.gmra.mrb[0].mxu0 %vm347_vm1, %v11909_v30  ;;  %v12482_v30 = vld [vmem:[%s11764_s26 + $0x79] sm:$0xff] }
  0xf6   : > { %10732 = vmatmul.mubr.msk.f32.vlgmr.msra.gmra.mrb[0].mxu1 %vm347_vm1, %v11967_v40  ;;  %10394 = vmatpush3.msk.msra.mxu0 %vm372_vm0, %v9131_v35  ;;  %v9311_v35 = vld [vmem:[%s13164_s2 + $0x5c] sm:$0xf] }
  0xf7   : > { %10744 = vmatpush3.msk.msra.mxu1 %vm372_vm0, %v9540_v14  ;;  %10384 = vmatprep.mubr.msk.f32.mxu0 %vm347_vm1, %v11912_v31  ;;  %v12493_v31 = vld [vmem:[%s11764_s26 + $0x81] sm:$0xff]  ;;  %v9720_v14 = vld [vmem:[%s13164_s2 + $0x5c] sm:$0xf] }
  0xf8   : > { %10734 = vmatprep.mubr.msk.f32.mxu1 %vm347_vm1, %v11970_v41  ;;  %10407 = vmatprep.subr.msk.mxu0 %vm372_vm0, %v9149_v22 }
  0xf9   : > { %10385 = vmatmul.mubr.msk.f32.gmra.mrb[2].mxu0 %vm347_vm1, %v11923_v32  ;;  %10757 = vmatprep.subr.msk.mxu1 %vm372_vm0, %v9558_v29  ;;  %v9167_v32 = vld [vmem:[%s13164_s2 + $0x3c] sm:$0xf] }
  0xfa   : > { %10735 = vmatmul.mubr.msk.f32.gmra.mrb[2].mxu1 %vm347_vm1, %v11981_v42  ;;  %10387 = vmatprep.mubr.msk.f32.mxu0 %vm347_vm1, %v12188_v7 }
  0xfb   : > { %10737 = vmatprep.mubr.msk.f32.mxu1 %vm347_vm1, %v12236_v11 }
  0xfd   : > { %10388 = vmatmul.mubr.msk.f32.gmra.mrb[4].mxu0 %vm347_vm1, %v12199_v8 }
  0xfe   : > { %10738 = vmatmul.mubr.msk.f32.gmra.mrb[4].mxu1 %vm347_vm1, %v12247_v12  ;;  %10390 = vmatprep.mubr.msk.f32.mxu0 %vm347_vm1, %v12434_v18 }
  0xff   : > { %10740 = vmatprep.mubr.msk.f32.mxu1 %vm347_vm1, %v12482_v30 }
 0x101   : > { %10391 = vmatmul.mubr.msk.f32.gmra.mrb[6].mxu0 %vm347_vm1, %v12445_v20 }
 0x102   : > { %10741 = vmatmul.mubr.msk.f32.gmra.mrb[6].mxu1 %vm347_vm1, %v12493_v31  ;;  %10395 = vmatprep.mubr.msk.f32.mxu0 %vm347_vm1, %v11954_v39  ;;  %v9185_v39 = vld [vmem:[%s13164_s2 + $0x40] sm:$0xf] }
 0x103   : > { %10745 = vmatprep.mubr.msk.f32.mxu1 %vm347_vm1, %v12012_v49 }
 0x105   : > { %10396 = vmatmul.mubr.msk.f32.vlgmr.msra.gmra.mrb[0].mxu0 %vm347_vm1, %v11967_v40  ;;  %v9594_v40 = vld [vmem:[%s13164_s2 + $0x40] sm:$0xf] }
 0x106   : > { %10746 = vmatmul.mubr.msk.f32.vlgmr.msra.gmra.mrb[0].mxu1 %vm347_vm1, %v12025_v50  ;;  %10408 = vmatpush3.msk.msra.mxu0 %vm372_vm0, %v9149_v22  ;;  %v9694_v22 = vld [vmem:[%s11764_s26 + $0x61] sm:$0xff] }
 0x107   : > { %10758 = vmatpush3.msk.msra.mxu1 %vm372_vm0, %v9558_v29  ;;  %10398 = vmatprep.mubr.msk.f32.mxu0 %vm347_vm1, %v11970_v41  ;;  %v12578_v41 = vld [vmem:[%s11764_s26 + $0x7a] sm:$0xff]  ;;  %v9695_v29 = vld [vmem:[%s11764_s26 + $0x69] sm:$0xff] }
 0x108   : > { %10748 = vmatprep.mubr.msk.f32.mxu1 %vm347_vm1, %v12028_v51  ;;  %10421 = vmatprep.subr.msk.mxu0 %vm372_vm0, %v9167_v32 }
 0x109   : > { %10399 = vmatmul.mubr.msk.f32.gmra.mrb[2].mxu0 %vm347_vm1, %v11981_v42  ;;  %10771 = vmatprep.subr.msk.mxu1 %vm372_vm0, %v9576_v36  ;;  %v12589_v42 = vld [vmem:[%s11764_s26 + $0x82] sm:$0xff] }
 0x10a   : > { %10749 = vmatmul.mubr.msk.f32.gmra.mrb[2].mxu1 %vm347_vm1, %v12039_v52  ;;  %10401 = vmatprep.mubr.msk.f32.mxu0 %vm347_vm1, %v12236_v11 }
 0x10b   : > { %10751 = vmatprep.mubr.msk.f32.mxu1 %vm347_vm1, %v12284_v23 }
 0x10d   : > { %10402 = vmatmul.mubr.msk.f32.gmra.mrb[4].mxu0 %vm347_vm1, %v12247_v12 }
 0x10e   : > { %10752 = vmatmul.mubr.msk.f32.gmra.mrb[4].mxu1 %vm347_vm1, %v12295_v24  ;;  %10404 = vmatprep.mubr.msk.f32.mxu0 %vm347_vm1, %v12482_v30 }
 0x10f   : > { %10754 = vmatprep.mubr.msk.f32.mxu1 %vm347_vm1, %v12530_v37 }
 0x111   : > { %10405 = vmatmul.mubr.msk.f32.gmra.mrb[6].mxu0 %vm347_vm1, %v12493_v31 }
 0x112   : > { %10755 = vmatmul.mubr.msk.f32.gmra.mrb[6].mxu1 %vm347_vm1, %v12541_v38  ;;  %10409 = vmatprep.mubr.msk.f32.mxu0 %vm347_vm1, %v12012_v49  ;;  %v12626_v49 = vld [vmem:[%s11759_s7 + $0x90] sm:$0xff] }
 0x113   : > { %10759 = vmatprep.mubr.msk.f32.mxu1 %vm347_vm1, %v12070_v59  ;;  %v9604_v59 = vld [vmem:[%s11764_s26 + $0x49] sm:$0xff] }
 0x115   : > { %10410 = vmatmul.mubr.msk.f32.vlgmr.msra.gmra.mrb[0].mxu0 %vm347_vm1, %v12025_v50  ;;  %v12629_v50 = vld [vmem:[%s11764_s26 + $0x90] sm:$0xff] }
 0x116   : > { %10760 = vmatmul.mubr.msk.f32.vlgmr.msra.gmra.mrb[0].mxu1 %vm347_vm1, %v12083_v60  ;;  %10422 = vmatpush3.msk.msra.mxu0 %vm372_vm0, %v9167_v32  ;;  %v9605_v60 = vld [vmem:[%s11764_s26 + $0x51] sm:$0xff]  ;;  %v9329_v32 = vld [vmem:[%s13164_s2 + $0x60] sm:$0xf] }
 0x117   : > { %10772 = vmatpush3.msk.msra.mxu1 %vm372_vm0, %v9576_v36  ;;  %10412 = vmatprep.mubr.msk.f32.mxu0 %vm347_vm1, %v12028_v51  ;;  %v12638_v51 = vld [vmem:[%s11759_s7 + $0x98] sm:$0xff]  ;;  %v9738_v36 = vld [vmem:[%s13164_s2 + $0x60] sm:$0xf] }
 0x118   : > { %10762 = vmatprep.mubr.msk.f32.mxu1 %vm347_vm1, %v12086_v61  ;;  %10435 = vmatprep.subr.msk.mxu0 %vm372_vm0, %v9185_v39  ;;  %v9239_v61 = vld [vmem:[%s13164_s2 + $0x4c] sm:$0xf] }
 0x119   : > { %10413 = vmatmul.mubr.msk.f32.gmra.mrb[2].mxu0 %vm347_vm1, %v12039_v52  ;;  %10785 = vmatprep.subr.msk.mxu1 %vm372_vm0, %v9594_v40  ;;  %v12643_v52 = vld [vmem:[%s11764_s26 + $0x98] sm:$0xff] }
 0x11a   : > { %10763 = vmatmul.mubr.msk.f32.gmra.mrb[2].mxu1 %vm347_vm1, %v12097_v62  ;;  %10415 = vmatprep.mubr.msk.f32.mxu0 %vm347_vm1, %v12284_v23  ;;  %v9648_v62 = vld [vmem:[%s13164_s2 + $0x4c] sm:$0xf] }
 0x11b   : > { %10765 = vmatprep.mubr.msk.f32.mxu1 %vm347_vm1, %v12332_v27 }
 0x11d   : > { %10416 = vmatmul.mubr.msk.f32.gmra.mrb[4].mxu0 %vm347_vm1, %v12295_v24 }
 0x11e   : > { %10766 = vmatmul.mubr.msk.f32.gmra.mrb[4].mxu1 %vm347_vm1, %v12343_v28  ;;  %10418 = vmatprep.mubr.msk.f32.mxu0 %vm347_vm1, %v12530_v37 }
 0x11f   : > { %10768 = vmatprep.mubr.msk.f32.mxu1 %vm347_vm1, %v12578_v41 }
 0x121   : > { %10419 = vmatmul.mubr.msk.f32.gmra.mrb[6].mxu0 %vm347_vm1, %v12541_v38 }
 0x122   : > { %10769 = vmatmul.mubr.msk.f32.gmra.mrb[6].mxu1 %vm347_vm1, %v12589_v42  ;;  %10423 = vmatprep.mubr.msk.f32.mxu0 %vm347_vm1, %v9159_v43  ;;  %v9718_v43 = vld [vmem:[%s11759_s7 + $0xaa] sm:$0xff] }
 0x123   : > { %10773 = vmatprep.mubr.msk.f32.mxu1 %vm347_vm1, %v9568_v44 }
 0x125   : > { %10424 = vmatmul.mubr.msk.f32.vlgmr.msra.gmra.mrb[0].mxu0 %vm347_vm1, %v9160_v45  ;;  %v9736_v45 = vld [vmem:[%s11764_s26 + $0xaa] sm:$0xff] }
 0x126   : > { %10774 = vmatmul.mubr.msk.f32.vlgmr.msra.gmra.mrb[0].mxu1 %vm347_vm1, %v9569_v46  ;;  %10436 = vmatpush3.msk.msra.mxu0 %vm372_vm0, %v9185_v39  ;;  %v9712_v39 = vld [vmem:[%s11759_s7 + $0x62] sm:$0xff] }
 0x127   : > { %10786 = vmatpush3.msk.msra.mxu1 %vm372_vm0, %v9594_v40  ;;  %10426 = vmatprep.mubr.msk.f32.mxu0 %vm347_vm1, %v12134_v1  ;;  %v9622_v1 = vld [vmem:[%s11759_s7 + $0x4a] sm:$0xff] }
 0x128   : > { %10776 = vmatprep.mubr.msk.f32.mxu1 %vm347_vm1, %v12137_v2  ;;  %10449 = vmatprep.subr.msk.mxu0 %vm372_vm0, %v9203_v47  ;;  %v9713_v40 = vld [vmem:[%s11759_s7 + $0x6a] sm:$0xff] }
 0x129   : > { %10427 = vmatmul.mubr.msk.f32.gmra.mrb[2].mxu0 %vm347_vm1, %v12146_v3  ;;  %10799 = vmatprep.subr.msk.mxu1 %vm372_vm0, %v9612_v48  ;;  %v9257_v3 = vld [vmem:[%s13164_s2 + $0x50] sm:$0xf] }
 0x12a   : > { %10777 = vmatmul.mubr.msk.f32.gmra.mrb[2].mxu1 %vm347_vm1, %v12151_v4  ;;  %10429 = vmatprep.mubr.msk.f32.mxu0 %vm347_vm1, %v12380_v17 }
 0x12b   : > { %10779 = vmatprep.mubr.msk.f32.mxu1 %vm347_vm1, %v12383_v19 }
 0x12d   : > { %10430 = vmatmul.mubr.msk.f32.gmra.mrb[4].mxu0 %vm347_vm1, %v12392_v21 }
 0x12e   : > { %10780 = vmatmul.mubr.msk.f32.gmra.mrb[4].mxu1 %vm347_vm1, %v12397_v34  ;;  %10432 = vmatprep.mubr.msk.f32.mxu0 %vm347_vm1, %v12626_v49 }
 0x12f   : > { %10782 = vmatprep.mubr.msk.f32.mxu1 %vm347_vm1, %v12629_v50 }
 0x131   : > { %10433 = vmatmul.mubr.msk.f32.gmra.mrb[6].mxu0 %vm347_vm1, %v12638_v51 }
 0x132   : > { %10783 = vmatmul.mubr.msk.f32.gmra.mrb[6].mxu1 %vm347_vm1, %v12643_v52  ;;  %10437 = vmatprep.mubr.msk.f32.mxu0 %vm347_vm1, %v9568_v44  ;;  %v9731_v44 = vld [vmem:[%s11764_s26 + $0x6a] sm:$0xff] }
 0x133   : > { %10787 = vmatprep.mubr.msk.f32.mxu1 %vm347_vm1, %v9586_v53 }
 0x135   : > { %10438 = vmatmul.mubr.msk.f32.vlgmr.msra.gmra.mrb[0].mxu0 %vm347_vm1, %v9569_v46 }
 0x136   : > { %10788 = vmatmul.mubr.msk.f32.vlgmr.msra.gmra.mrb[0].mxu1 %vm347_vm1, %v9587_v54  ;;  %10450 = vmatpush3.msk.msra.mxu0 %vm372_vm0, %v9203_v47 }
 0x137   : > { %10800 = vmatpush3.msk.msra.mxu1 %vm372_vm0, %v9612_v48  ;;  %10440 = vmatprep.mubr.msk.f32.mxu0 %vm347_vm1, %v12137_v2  ;;  %v9623_v2 = vld [vmem:[%s11759_s7 + $0x52] sm:$0xff] }
 0x138   : > { %10790 = vmatprep.mubr.msk.f32.mxu1 %vm347_vm1, %v12188_v7  ;;  %10463 = vmatprep.subr.msk.mxu0 %vm372_vm0, %v9221_v55 }
 0x139   : > { %10441 = vmatmul.mubr.msk.f32.gmra.mrb[2].mxu0 %vm347_vm1, %v12151_v4  ;;  %10813 = vmatprep.subr.msk.mxu1 %vm372_vm0, %v9630_v56  ;;  %v9666_v4 = vld [vmem:[%s13164_s2 + $0x50] sm:$0xf] }
 0x13a   : > { %10791 = vmatmul.mubr.msk.f32.gmra.mrb[2].mxu1 %vm347_vm1, %v12199_v8  ;;  %10443 = vmatprep.mubr.msk.f32.mxu0 %vm347_vm1, %v12383_v19 }
 0x13b   : > { %10793 = vmatprep.mubr.msk.f32.mxu1 %vm347_vm1, %v12434_v18 }
 0x13d   : > { %10444 = vmatmul.mubr.msk.f32.gmra.mrb[4].mxu0 %vm347_vm1, %v12397_v34 }
 0x13e   : > { %10794 = vmatmul.mubr.msk.f32.gmra.mrb[4].mxu1 %vm347_vm1, %v12445_v20  ;;  %10446 = vmatprep.mubr.msk.f32.mxu0 %vm347_vm1, %v12629_v50 }
 0x13f   : > { %10796 = vmatprep.mubr.msk.f32.mxu1 %vm347_vm1, %v12678_v57 }
 0x141   : > { %10447 = vmatmul.mubr.msk.f32.gmra.mrb[6].mxu0 %vm347_vm1, %v12643_v52 }
 0x142   : > { %10797 = vmatmul.mubr.msk.f32.gmra.mrb[6].mxu1 %vm347_vm1, %v12689_v58  ;;  %10451 = vmatprep.mubr.msk.f32.mxu0 %vm347_vm1, %v9586_v53 }
 0x143   : > { %10801 = vmatprep.mubr.msk.f32.mxu1 %vm347_vm1, %v9604_v59 }
 0x145   : > { %10452 = vmatmul.mubr.msk.f32.vlgmr.msra.gmra.mrb[0].mxu0 %vm347_vm1, %v9587_v54 }
 0x146   : > { %10802 = vmatmul.mubr.msk.f32.vlgmr.msra.gmra.mrb[0].mxu1 %vm347_vm1, %v9605_v60  ;;  %10464 = vmatpush3.msk.msra.mxu0 %vm372_vm0, %v9221_v55 }
 0x147   : > { %10814 = vmatpush3.msk.msra.mxu1 %vm372_vm0, %v9630_v56  ;;  %10454 = vmatprep.mubr.msk.f32.mxu0 %vm347_vm1, %v12188_v7  ;;  %v9640_v7 = vld [vmem:[%s11764_s26 + $0x4a] sm:$0xff] }
 0x148   : > { %10804 = vmatprep.mubr.msk.f32.mxu1 %vm347_vm1, %v12236_v11  ;;  %10477 = vmatprep.subr.msk.mxu0 %vm372_vm0, %v9239_v61 }
 0x149   : > { %10455 = vmatmul.mubr.msk.f32.gmra.mrb[2].mxu0 %vm347_vm1, %v12199_v8  ;;  %10827 = vmatprep.subr.msk.mxu1 %vm372_vm0, %v9648_v62  ;;  %v9641_v8 = vld [vmem:[%s11764_s26 + $0x52] sm:$0xff] }
 0x14a   : > { %10805 = vmatmul.mubr.msk.f32.gmra.mrb[2].mxu1 %vm347_vm1, %v12247_v12  ;;  %10457 = vmatprep.mubr.msk.f32.mxu0 %vm347_vm1, %v12434_v18 }
 0x14b   : > { %10807 = vmatprep.mubr.msk.f32.mxu1 %vm347_vm1, %v12482_v30 }
 0x14d   : > { %10458 = vmatmul.mubr.msk.f32.gmra.mrb[4].mxu0 %vm347_vm1, %v12445_v20 }
 0x14e   : > { %10808 = vmatmul.mubr.msk.f32.gmra.mrb[4].mxu1 %vm347_vm1, %v12493_v31  ;;  %10460 = vmatprep.mubr.msk.f32.mxu0 %vm347_vm1, %v12678_v57 }
 0x14f   : > { %10810 = vmatprep.mubr.msk.f32.mxu1 %vm347_vm1, %v12724_v63 }
 0x151   : > { %10461 = vmatmul.mubr.msk.f32.gmra.mrb[6].mxu0 %vm347_vm1, %v12689_v58 }
 0x152   : > { %10811 = vmatmul.mubr.msk.f32.gmra.mrb[6].mxu1 %vm347_vm1, %v12735_v0  ;;  %10465 = vmatprep.mubr.msk.f32.mxu0 %vm347_vm1, %v9604_v59 }
 0x153   : > { %10815 = vmatprep.mubr.msk.f32.mxu1 %vm347_vm1, %v9622_v1 }
 0x155   : > { %10466 = vmatmul.mubr.msk.f32.vlgmr.msra.gmra.mrb[0].mxu0 %vm347_vm1, %v9605_v60 }
 0x156   : > { %10816 = vmatmul.mubr.msk.f32.vlgmr.msra.gmra.mrb[0].mxu1 %vm347_vm1, %v9623_v2  ;;  %10478 = vmatpush3.msk.msra.mxu0 %vm372_vm0, %v9239_v61 }
 0x157   : > { %10828 = vmatpush3.msk.msra.mxu1 %vm372_vm0, %v9648_v62  ;;  %10468 = vmatprep.mubr.msk.f32.mxu0 %vm347_vm1, %v12236_v11  ;;  %v12816_v11 = vld [vmem:[%s11764_s26 + $0x92] sm:$0xff] }
 0x158   : > { %10818 = vmatprep.mubr.msk.f32.mxu1 %vm347_vm1, %v12284_v23  ;;  %10491 = vmatprep.subr.msk.mxu0 %vm372_vm0, %v9257_v3 }
 0x159   : > { %10469 = vmatmul.mubr.msk.f32.gmra.mrb[2].mxu0 %vm347_vm1, %v12247_v12  ;;  %10841 = vmatprep.subr.msk.mxu1 %vm372_vm0, %v9666_v4  ;;  %v12827_v12 = vld [vmem:[%s11764_s26 + $0x9a] sm:$0xff] }
 0x15a   : > { %10819 = vmatmul.mubr.msk.f32.gmra.mrb[2].mxu1 %vm347_vm1, %v12295_v24  ;;  %10471 = vmatprep.mubr.msk.f32.mxu0 %vm347_vm1, %v12482_v30 }
 0x15b   : > { %10821 = vmatprep.mubr.msk.f32.mxu1 %vm347_vm1, %v12530_v37 }
 0x15d   : > { %10472 = vmatmul.mubr.msk.f32.gmra.mrb[4].mxu0 %vm347_vm1, %v12493_v31 }
 0x15e   : > { %10822 = vmatmul.mubr.msk.f32.gmra.mrb[4].mxu1 %vm347_vm1, %v12541_v38  ;;  %10474 = vmatprep.mubr.msk.f32.mxu0 %vm347_vm1, %v12724_v63 }
 0x15f   : > { %10824 = vmatprep.mubr.msk.f32.mxu1 %vm347_vm1, %v12770_v5 }
 0x161   : > { %10475 = vmatmul.mubr.msk.f32.gmra.mrb[6].mxu0 %vm347_vm1, %v12735_v0 }
 0x162   : > { %10825 = vmatmul.mubr.msk.f32.gmra.mrb[6].mxu1 %vm347_vm1, %v12781_v6  ;;  %10479 = vmatprep.mubr.msk.f32.mxu0 %vm347_vm1, %v9622_v1 }
 0x163   : > { %10829 = vmatprep.mubr.msk.f32.mxu1 %vm347_vm1, %v9640_v7 }
 0x165   : > { %10480 = vmatmul.mubr.msk.f32.vlgmr.msra.gmra.mrb[0].mxu0 %vm347_vm1, %v9623_v2 }
 0x166   : > { %10830 = vmatmul.mubr.msk.f32.vlgmr.msra.gmra.mrb[0].mxu1 %vm347_vm1, %v9641_v8  ;;  %10492 = vmatpush3.msk.msra.mxu0 %vm372_vm0, %v9257_v3 }
 0x167   : > { %10842 = vmatpush3.msk.msra.mxu1 %vm372_vm0, %v9666_v4  ;;  %10482 = vmatprep.mubr.msk.f32.mxu0 %vm347_vm1, %v12284_v23  ;;  %v9250_v23 = vld [vmem:[%s11759_s7 + $0x68] sm:$0xff] }
 0x168   : > { %10832 = vmatprep.mubr.msk.f32.mxu1 %vm347_vm1, %v12332_v27  ;;  %10505 = vmatprep.subr.msk.mxu0 %vm372_vm0, %v9275_v9  ;;  %v9255_v27 = vld [vmem:[%s11759_s7 + $0xa8] sm:$0xff] }
 0x169   : > { %10483 = vmatmul.mubr.msk.f32.gmra.mrb[2].mxu0 %vm347_vm1, %v12295_v24  ;;  %10855 = vmatprep.subr.msk.mxu1 %vm372_vm0, %v9684_v10  ;;  %v9659_v24 = vld [vmem:[%s11764_s26 + $0x68] sm:$0xff] }
 0x16a   : > { %10833 = vmatmul.mubr.msk.f32.gmra.mrb[2].mxu1 %vm347_vm1, %v12343_v28  ;;  %10485 = vmatprep.mubr.msk.f32.mxu0 %vm347_vm1, %v12530_v37  ;;  %v9664_v28 = vld [vmem:[%s11764_s26 + $0xa8] sm:$0xff] }
 0x16b   : > { %10835 = vmatprep.mubr.msk.f32.mxu1 %vm347_vm1, %v12578_v41 }
 0x16d   : > { %10486 = vmatmul.mubr.msk.f32.gmra.mrb[4].mxu0 %vm347_vm1, %v12541_v38 }
 0x16e   : > { %10836 = vmatmul.mubr.msk.f32.gmra.mrb[4].mxu1 %vm347_vm1, %v12589_v42  ;;  %10488 = vmatprep.mubr.msk.f32.mxu0 %vm347_vm1, %v12770_v5 }
 0x16f   : > { %10838 = vmatprep.mubr.msk.f32.mxu1 %vm347_vm1, %v12816_v11 }
 0x171   : > { %10489 = vmatmul.mubr.msk.f32.gmra.mrb[6].mxu0 %vm347_vm1, %v12781_v6 }
 0x172   : > { %10839 = vmatmul.mubr.msk.f32.gmra.mrb[6].mxu1 %vm347_vm1, %v12827_v12  ;;  %10493 = vmatprep.mubr.msk.f32.mxu0 %vm347_vm1, %v9249_v15 }
 0x173   : > { %10843 = vmatprep.mubr.msk.f32.mxu1 %vm347_vm1, %v9658_v16 }
 0x175   : > { %10494 = vmatmul.mubr.msk.f32.vlgmr.msra.gmra.mrb[0].mxu0 %vm347_vm1, %v9250_v23 }
 0x176   : > { %10844 = vmatmul.mubr.msk.f32.vlgmr.msra.gmra.mrb[0].mxu1 %vm347_vm1, %v9659_v24  ;;  %10506 = vmatpush3.msk.msra.mxu0 %vm372_vm0, %v9275_v9 }
 0x177   : > { %10856 = vmatpush3.msk.msra.mxu1 %vm372_vm0, %v9684_v10  ;;  %10496 = vmatprep.mubr.msk.f32.mxu0 %vm347_vm1, %v12380_v17  ;;  %v9676_v17 = vld [vmem:[%s11759_s7 + $0x61] sm:$0xff] }
 0x178   : > { %10846 = vmatprep.mubr.msk.f32.mxu1 %vm347_vm1, %v12383_v19  ;;  %10519 = vmatprep.subr.msk.mxu0 %vm372_vm0, %v9293_v25 }
 0x179   : > { %10497 = vmatmul.mubr.msk.f32.gmra.mrb[2].mxu0 %vm347_vm1, %v12392_v21  ;;  %10869 = vmatprep.subr.msk.mxu1 %vm372_vm0, %v9702_v26  ;;  %v9677_v21 = vld [vmem:[%s11759_s7 + $0x69] sm:$0xff] }
 0x17a   : > { %10847 = vmatmul.mubr.msk.f32.gmra.mrb[2].mxu1 %vm347_vm1, %v12397_v34  ;;  %10499 = vmatprep.mubr.msk.f32.mxu0 %vm347_vm1, %v12626_v49 }
 0x17b   : > { %10849 = vmatprep.mubr.msk.f32.mxu1 %vm347_vm1, %v12629_v50 }
 0x17d   : > { %10500 = vmatmul.mubr.msk.f32.gmra.mrb[4].mxu0 %vm347_vm1, %v12638_v51 }
 0x17e   : > { %10850 = vmatmul.mubr.msk.f32.gmra.mrb[4].mxu1 %vm347_vm1, %v12643_v52  ;;  %10502 = vmatprep.mubr.msk.f32.mxu0 %vm347_vm1, %v9255_v27 }
 0x17f   : > { %10852 = vmatprep.mubr.msk.f32.mxu1 %vm347_vm1, %v9664_v28 }
 0x181   : > { %10503 = vmatmul.mubr.msk.f32.gmra.mrb[6].mxu0 %vm347_vm1, %v9256_v33 }
 0x182   : > { %10853 = vmatmul.mubr.msk.f32.gmra.mrb[6].mxu1 %vm347_vm1, %v9665_v13  ;;  %10507 = vmatprep.mubr.msk.f32.mxu0 %vm347_vm1, %v9658_v16 }
 0x183   : > { %10857 = vmatprep.mubr.msk.f32.mxu1 %vm347_vm1, %v9676_v17 }
 0x185   : > { %10508 = vmatmul.mubr.msk.f32.vlgmr.msra.gmra.mrb[0].mxu0 %vm347_vm1, %v9659_v24 }
 0x186   : > { %10858 = vmatmul.mubr.msk.f32.vlgmr.msra.gmra.mrb[0].mxu1 %vm347_vm1, %v9677_v21  ;;  %10520 = vmatpush3.msk.msra.mxu0 %vm372_vm0, %v9293_v25 }
 0x187   : > { %10870 = vmatpush3.msk.msra.mxu1 %vm372_vm0, %v9702_v26  ;;  %10510 = vmatprep.mubr.msk.f32.mxu0 %vm347_vm1, %v12383_v19  ;;  %v9682_v19 = vld [vmem:[%s11759_s7 + $0xa9] sm:$0xff] }
 0x188   : > { %10860 = vmatprep.mubr.msk.f32.mxu1 %vm347_vm1, %v12434_v18  ;;  %10533 = vmatprep.subr.msk.mxu0 %vm372_vm0, %v9311_v35 }
 0x189   : > { %10511 = vmatmul.mubr.msk.f32.gmra.mrb[2].mxu0 %vm347_vm1, %v12397_v34  ;;  %10883 = vmatprep.subr.msk.mxu1 %vm372_vm0, %v9720_v14  ;;  %v9683_v34 = vld [vmem:[%s11759_s7 + $0xb1] sm:$0xff] }
 0x18a   : > { %10861 = vmatmul.mubr.msk.f32.gmra.mrb[2].mxu1 %vm347_vm1, %v12445_v20  ;;  %10513 = vmatprep.mubr.msk.f32.mxu0 %vm347_vm1, %v12629_v50 }
 0x18b   : > { %10863 = vmatprep.mubr.msk.f32.mxu1 %vm347_vm1, %v12678_v57 }
 0x18d   : > { %10514 = vmatmul.mubr.msk.f32.gmra.mrb[4].mxu0 %vm347_vm1, %v12643_v52 }
 0x18e   : > { %10864 = vmatmul.mubr.msk.f32.gmra.mrb[4].mxu1 %vm347_vm1, %v12689_v58  ;;  %10516 = vmatprep.mubr.msk.f32.mxu0 %vm347_vm1, %v9664_v28 }
 0x18f   : > { %10866 = vmatprep.mubr.msk.f32.mxu1 %vm347_vm1, %v9682_v19 }
 0x191   : > { %10517 = vmatmul.mubr.msk.f32.gmra.mrb[6].mxu0 %vm347_vm1, %v9665_v13 }
 0x192   : > { %10867 = vmatmul.mubr.msk.f32.gmra.mrb[6].mxu1 %vm347_vm1, %v9683_v34  ;;  %10521 = vmatprep.mubr.msk.f32.mxu0 %vm347_vm1, %v9676_v17 }
 0x193   : > { %10871 = vmatprep.mubr.msk.f32.mxu1 %vm347_vm1, %v9694_v22 }
 0x195   : > { %10522 = vmatmul.mubr.msk.f32.vlgmr.msra.gmra.mrb[0].mxu0 %vm347_vm1, %v9677_v21 }
 0x196   : > { %10872 = vmatmul.mubr.msk.f32.vlgmr.msra.gmra.mrb[0].mxu1 %vm347_vm1, %v9695_v29  ;;  %10534 = vmatpush3.msk.msra.mxu0 %vm372_vm0, %v9311_v35 }
 0x197   : > { %10884 = vmatpush3.msk.msra.mxu1 %vm372_vm0, %v9720_v14  ;;  %10524 = vmatprep.mubr.msk.f32.mxu0 %vm347_vm1, %v12434_v18  ;;  %v9700_v18 = vld [vmem:[%s11764_s26 + $0xa9] sm:$0xff] }
 0x198   : > { %10874 = vmatprep.mubr.msk.f32.mxu1 %vm347_vm1, %v12482_v30  ;;  %10547 = vmatprep.subr.msk.mxu0 %vm372_vm0, %v9329_v32 }
 0x199   : > { %10525 = vmatmul.mubr.msk.f32.gmra.mrb[2].mxu0 %vm347_vm1, %v12445_v20  ;;  %10897 = vmatprep.subr.msk.mxu1 %vm372_vm0, %v9738_v36  ;;  %v9701_v20 = vld [vmem:[%s11764_s26 + $0xb1] sm:$0xff] }
 0x19a   : > { %10875 = vmatmul.mubr.msk.f32.gmra.mrb[2].mxu1 %vm347_vm1, %v12493_v31  ;;  %10527 = vmatprep.mubr.msk.f32.mxu0 %vm347_vm1, %v12678_v57 }
 0x19b   : > { %10877 = vmatprep.mubr.msk.f32.mxu1 %vm347_vm1, %v12724_v63 }
 0x19d   : > { %10528 = vmatmul.mubr.msk.f32.gmra.mrb[4].mxu0 %vm347_vm1, %v12689_v58 }
 0x19e   : > { %10878 = vmatmul.mubr.msk.f32.gmra.mrb[4].mxu1 %vm347_vm1, %v12735_v0  ;;  %10530 = vmatprep.mubr.msk.f32.mxu0 %vm347_vm1, %v9682_v19 }
 0x19f   : > { %10880 = vmatprep.mubr.msk.f32.mxu1 %vm347_vm1, %v9700_v18 }
 0x1a1   : > { %10531 = vmatmul.mubr.msk.f32.gmra.mrb[6].mxu0 %vm347_vm1, %v9683_v34 }
 0x1a2   : > { %10881 = vmatmul.mubr.msk.f32.gmra.mrb[6].mxu1 %vm347_vm1, %v9701_v20  ;;  %10535 = vmatprep.mubr.msk.f32.mxu0 %vm347_vm1, %v9694_v22 }
 0x1a3   : > { %10885 = vmatprep.mubr.msk.f32.mxu1 %vm347_vm1, %v9712_v39 }
 0x1a5   : > { %10536 = vmatmul.mubr.msk.f32.vlgmr.msra.gmra.mrb[0].mxu0 %vm347_vm1, %v9695_v29 }
 0x1a6   : > { %10886 = vmatmul.mubr.msk.f32.vlgmr.msra.gmra.mrb[0].mxu1 %vm347_vm1, %v9713_v40  ;;  %10548 = vmatpush3.msk.msra.mxu0 %vm372_vm0, %v9329_v32 }
 0x1a7   : > { %10898 = vmatpush3.msk.msra.mxu1 %vm372_vm0, %v9738_v36  ;;  %10538 = vmatprep.mubr.msk.f32.mxu0 %vm347_vm1, %v12482_v30  ;;  %v9719_v30 = vld [vmem:[%s11759_s7 + $0xb2] sm:$0xff]  ;;  %s9748_s7 = sshll.u32 %s11567_s24, 1  ;;  %s9760_s24 = sshll.u32 %s11752_s13, 9 }
 0x1a8   : > { %10888 = vmatprep.mubr.msk.f32.mxu1 %vm347_vm1, %v12530_v37  ;;  %s8656_s9 = ssub.s32 8, %s9748_s7  ;;  %s13018_s15 = scalar_lea.hbm %s13165_s3, %s9760_s24 }
 0x1a9   : > { %10539 = vmatmul.mubr.msk.f32.gmra.mrb[2].mxu0 %vm347_vm1, %v12493_v31  ;;  %v9730_v31 = vld [vmem:[%s11764_s26 + $0x62] sm:$0xff]  ;;  %p8657_p6 = scmp.lt.s32.totalorder %s8656_s9, 2  ;;  %s13190_s13 = sand.u32 1, %s11559_s22  }
 0x1aa   : > { %10889 = vmatmul.mubr.msk.f32.gmra.mrb[2].mxu1 %vm347_vm1, %v12541_v38  ;;  %10541 = vmatprep.mubr.msk.f32.mxu0 %vm347_vm1, %v12724_v63  ;;  %s13025_s17 = scalar_lea.sflag [#allocation5], %s13190_s13  ;;  %s11409_s7 = sshll.u32 %s11587_s6, 4  ;;  %s11410_s7 = int_to_ptr.vmem [resolvable:$false] %s11409_s7 }
 0x1ab   : > { %10891 = vmatprep.mubr.msk.f32.mxu1 %vm347_vm1, %v12770_v5  ;;  %s13213_s9 = smov (!%p8657_p6, %s8656_s9), 2 }
 0x1ac   : > { %s9749_s10 = sshll.u32 %s13213_s9, 4  ;;  %s11411_s9 = scalar_lea.vmem %s11410_s7, 1024 }
 0x1ad   : > { %10542 = vmatmul.mubr.msk.f32.gmra.mrb[4].mxu0 %vm347_vm1, %v12735_v0  ;;  %v8662_v53 = vstv %s9749_s10 }
 0x1ae   : > { %10892 = vmatmul.mubr.msk.f32.gmra.mrb[4].mxu1 %vm347_vm1, %v12781_v6  ;;  %10544 = vmatprep.mubr.msk.f32.mxu0 %vm347_vm1, %v9700_v18 }
 0x1af   : > { %10894 = vmatprep.mubr.msk.f32.mxu1 %vm347_vm1, %v9718_v43 }
 0x1b1   : > { %10545 = vmatmul.mubr.msk.f32.gmra.mrb[6].mxu0 %vm347_vm1, %v9701_v20 }
 0x1b2   : > { %10895 = vmatmul.mubr.msk.f32.gmra.mrb[6].mxu1 %vm347_vm1, %v9719_v30  ;;  %10549 = vmatprep.mubr.msk.f32.mxu0 %vm347_vm1, %v9712_v39 }
 0x1b3   : > { %10899 = vmatprep.mubr.msk.f32.mxu1 %vm347_vm1, %v9730_v31 }
 0x1b5   : > { %10550 = vmatmul.mubr.msk.f32.vlgmr.msra.gmra.mrb[0].mxu0 %vm347_vm1, %v9713_v40 }
 0x1b6   : > { %10900 = vmatmul.mubr.msk.f32.vlgmr.msra.gmra.mrb[0].mxu1 %vm347_vm1, %v9731_v44  ;;  %10552 = vmatprep.mubr.msk.f32.mxu0 %vm347_vm1, %v12530_v37  ;;  %v9737_v37 = vld [vmem:[%s11764_s26 + $0xb2] sm:$0xff]  ;;  %s8737_s26 = sshll.u32 %s11766_s18, 4  ;;  %s13020_s26 = int_to_ptr.vmem [resolvable:$true] %s8737_s26 }
 0x1b7   : > { %10902 = vmatprep.mubr.msk.f32.mxu1 %vm347_vm1, %v12578_v41  ;;  %s11405_s27 = scalar_lea.vmem %s13020_s26, 512  ;;  %p11412_p11 = scmp.lt.s32.totalorder %s13020_s26, %s11410_s7 }
 0x1b8   : > { %p11406_p8 = scmp.ne.s32.totalorder %s13020_s26, %s11405_s27  ;;  %p11413_p0 = scmp.lt.s32.totalorder %s11411_s9, %s11405_s27 }
 0x1b9   : > { %10553 = vmatmul.mubr.msk.f32.gmra.mrb[2].mxu0 %vm347_vm1, %v12541_v38  ;;  %v11586_v38 = vmov 0.0  }
 0x1ba   : > { %10903 = vmatmul.mubr.msk.f32.gmra.mrb[2].mxu1 %vm347_vm1, %v12589_v42  ;;  %10555 = vmatprep.mubr.msk.f32.mxu0 %vm347_vm1, %v12770_v5  ;;  %8680 = vst [vmem:[%s11766_s18 + $0x8] sm:$0xff] %v11586_v38  ;;  %8682 = vst [vmem:[%s11766_s18 + $0x18] sm:$0xff] %v11586_v38  ;;  %v8642_v42 = vlaneseq  ;;  %p11407_p9 = pnand %p11406_p8, %p11699_p5  ;;  %p11414_p1 = por %p11413_p0, %p11412_p11 }
 0x1bb   : > { %10905 = vmatprep.mubr.msk.f32.mxu1 %vm347_vm1, %v12816_v11 }
 0x1bc   : > { %v8643_v50 = vshrl.u32 %v8642_v42, 7  ;;  %p11408_p10 = pneg %p11407_p9 }
 0x1bd   : > { %10556 = vmatmul.mubr.msk.f32.gmra.mrb[4].mxu0 %vm347_vm1, %v12781_v6 }
 0x1be   : > { %10906 = vmatmul.mubr.msk.f32.gmra.mrb[4].mxu1 %vm347_vm1, %v12827_v12  ;;  %10558 = vmatprep.mubr.msk.f32.mxu0 %vm347_vm1, %v9718_v43  ;;  %vm8663_vm2 = vcmp.lt.s32.totalorder %v8643_v50, %v8662_v53  ;;  %v8660_v0 = vadd.s32 16, %v8643_v50  ;;  %p11415_p3 = pnand %p11414_p1, %p11408_p10 }
 0x1bf   : > { %10908 = vmatprep.mubr.msk.f32.mxu1 %vm347_vm1, %v9736_v45 }
 0x1c0   : > { %vm8665_vm3 = vcmp.lt.s32.totalorder %v8660_v0, %v8662_v53 }
 0x1c1   : > { %10559 = vmatmul.mubr.msk.f32.gmra.mrb[6].mxu0 %vm347_vm1, %v9719_v30 }
 0x1c2   : > { %10909 = vmatmul.mubr.msk.f32.gmra.mrb[6].mxu1 %vm347_vm1, %v9737_v37 }
 0x288   : > { %v10551_v41 = vpop.f32.mrb[0].mxu0 }
 0x289   : > { %v10901_v46 = vpop.f32.mrb[0].mxu1  ;;  %v4434_v47 = vpop.f32.mrb[1].mxu0 }
 0x28a   : > { %v8559_v48 = vpop.f32.mrb[1].mxu1 }
 0x28c   : > { %v10554_v49 = vpop.f32.mrb[2].mxu0 }
 0x28d   : > { %v10904_v51 = vpop.f32.mrb[2].mxu1  ;;  %v4444_v52 = vpop.f32.mrb[3].mxu0 }
 0x28e   : > { %v8630_v54 = vmax.f32 %v4434_v47, %v4444_v52  ;;  %v8569_v55 = vpop.f32.mrb[3].mxu1 }
 0x28f   : > { %v8634_v56 = vmax.f32 %v8559_v48, %v8569_v55 }
 0x290   : > { %v10557_v57 = vpop.f32.mrb[4].mxu0 }
 0x291   : > { %v8638_v58 = vmax.f32 %v8630_v54, %v8634_v56  ;;  %v10907_v59 = vpop.f32.mrb[4].mxu1  ;;  %v4454_v60 = vpop.f32.mrb[5].mxu0 }
 0x292   : > { %v8579_v61 = vpop.f32.mrb[5].mxu1 }
 0x293   : > { %v8675_v62 = vsel %vm8663_vm2, %v8638_v58, 0.0 }
 0x294   : > { %8679 = vst [vmem:[%s11766_s18] sm:$0xff] %v8675_v62  ;;  %v10560_v63 = vpop.f32.mrb[6].mxu0  ;;  %v8696_v8 = vmul.f32 %v8675_v62, %v8675_v62 }
 0x295   : > { %v10910_v1 = vpop.f32.mrb[6].mxu1  ;;  %v4464_v2 = vpop.f32.mrb[7].mxu0 }
 0x296   : > { %v8632_v3 = vmax.f32 %v4454_v60, %v4464_v2  ;;  %v8589_v4 = vpop.f32.mrb[7].mxu1 }
 0x297   : > { %v8636_v5 = vmax.f32 %v8579_v61, %v8589_v4 }
 0x299   : > { %v8640_v6 = vmax.f32 %v8632_v3, %v8636_v5 }
 0x29b   : > { %v8677_v7 = vsel %vm8665_vm3, %v8640_v6, 0.0 }
 0x29c   : > { %8681 = vst [vmem:[%s11766_s18 + $0x10] sm:$0xff] %v8677_v7  ;;  %v8685_v9 = vadd.f32 %v8677_v7, %v8675_v62  ;;  %v8698_v10 = vmul.f32 %v8677_v7, %v8677_v7 }
 0x29d   : > { %11418 = shalt.err (!%p11415_p3)
}
 0x29e   : > { %s11419_s18 = scalar_lea.hbm %s13018_s15, 512  ;;  %s11423_s16 = scalar_lea.hbm %s13165_s3, 4096 }
 0x29f   : > { %p11420_p2 = scmp.ne.s32.totalorder %s13018_s15, %s11419_s18  ;;  %p11424_p8 = scmp.lt.u32.totalorder %s13018_s15, %s13165_s3 }
 0x2a0   : > { %p11425_p9 = scmp.lt.u32.totalorder %s11423_s16, %s11419_s18  ;;  %p11427_p11 = scmp.lt.u32.totalorder %s11419_s18, %s13018_s15 }
 0x2a1   : > { %p11421_p4 = pnand %p11420_p2, %p11699_p5 }
 0x2a2   : > { %p11426_p10 = por %p11425_p9, %p11424_p8 }
 0x2a3   : > { %p11422_p6 = pneg %p11421_p4 }
 0x2a4   : > { %p11428_p0 = por %p11427_p11, %p11426_p10 }
 0x2a6   : > { %p11429_p1 = pnand %p11428_p0, %p11422_p6 }
 0x2a8   : > { %11432 = shalt.err (!%p11429_p1)
}
 0x2a9   : > { %s11588_s27 = smov 128   ;;  %s11589_s6 = smov 8   ;;  %v8687_v11 = vrot.slane %v8685_v9, 4  ;;  %v8701_v12 = vadd.f32 %v8698_v10, %v8696_v8  ;;  %v8683_v33 = vld [vmem:[%s11768_s30] sm:$0xff]  ;;  %v8695_v21 = vld [vmem:[%s11770_s11] sm:$0xff] }
 0x2aa   : > { %11296 = dma.vmem_to_hbm [thread:$0]  (%p11699_p5), %s13020_s26, 512, %s13018_s15, %s13025_s17, %s11588_s27, %s11588_s27, %s11589_s6  }
 0x2ab   : > { %v8688_v15 = vadd.f32 %v8687_v11, %v8685_v9  ;;  %v8703_v16 = vrot.slane %v8701_v12, 4  ;;  %s13191_s7 = sadd.s32 4294967295, %s11583_s28   ;;  %s9756_s12 = sshll.u32 %s11571_s25, 7 }
 0x2ac   : > { %s13051_s9 = sand.u32 1, %s13191_s7   ;;  %s8753_s26 = sshll.u32 %s11768_s30, 4  ;;  %s13063_s26 = int_to_ptr.vmem [resolvable:$true] %s8753_s26 }
 0x2ad   : > { %v8689_v23 = vrot.slane %v8688_v15, 2  ;;  %v8704_v24 = vadd.f32 %v8703_v16, %v8701_v12  ;;  %s8766_s15 = sshll.u32 %s11770_s11, 4  ;;  %s13061_s10 = scalar_lea.hbm %s13166_s4, %s9756_s12  ;;  %s13071_s15 = int_to_ptr.vmem [resolvable:$true] %s8766_s15 }
 0x2ae   : > { %s13069_s16 = scalar_lea.hbm %s13167_s5, %s9756_s12  ;;  %s8717_s8 = scalar_lea.sflag [#allocation7], %s13051_s9 }
 0x2af   : > { %v8705_v25 = vrot.slane %v8704_v24, 2  ;;  %v8690_v26 = vadd.f32 %v8689_v23, %v8688_v15  ;;  %s11433_s13 = scalar_lea.vmem %s13063_s26, 128  ;;  %s11590_s27 = smov [#allocation6]  }
 0x2b0   : > { %p11434_p5 = scmp.ne.s32.totalorder %s13063_s26, %s11433_s13  ;;  %s11437_s6 = sshll.u32 %s11590_s27, 4  ;;  %s11438_s6 = int_to_ptr.vmem [resolvable:$false] %s11437_s6 }
 0x2b1   : > { %v8691_v27 = vrot.slane %v8690_v26, 1  ;;  %v8706_v28 = vadd.f32 %v8705_v25, %v8704_v24  ;;  %s11439_s7 = scalar_lea.vmem %s11438_s6, 256  ;;  %p11440_p4 = scmp.lt.s32.totalorder %s13063_s26, %s11438_s6 }
 0x2b2   : > { %p11435_p3 = pnand %p11434_p5, %p11734_p12  ;;  %p11441_p6 = scmp.lt.s32.totalorder %s11439_s7, %s11433_s13 }
 0x2b3   : > { %v8692_v13 = vadd.f32 %v8691_v27, %v8690_v26  ;;  %v8707_v17 = vrot.slane %v8706_v28, 1 }
 0x2b4   : > { %p11436_p2 = pneg %p11435_p3  ;;  %p11442_p8 = por %p11441_p6, %p11440_p4 }
 0x2b5   : > { %v8693_v35 = vadd.f32 %v8692_v13, %v8683_v33  ;;  %v8708_v14 = vadd.f32 %v8707_v17, %v8706_v28 }
 0x2b6   : > { %p11443_p9 = pnand %p11442_p8, %p11436_p2 }
 0x2b7   : > { %8694 = vst [vmem:[%s11768_s30] sm:$0xff] %v8693_v35  ;;  %v8709_v19 = vadd.f32 %v8708_v14, %v8695_v21 }
 0x2b8   : > { %11446 = shalt.err (!%p11443_p9)
}
 0x2b9   : > { %s11447_s30 = scalar_lea.hbm %s13061_s10, 128  ;;  %s11451_s18 = scalar_lea.hbm %s13166_s4, 256 }
 0x2ba   : > { %p11448_p10 = scmp.ne.s32.totalorder %s13061_s10, %s11447_s30  ;;  %p11452_p1 = scmp.lt.u32.totalorder %s13061_s10, %s13166_s4 }
 0x2bb   : > { %p11453_p5 = scmp.lt.u32.totalorder %s11451_s18, %s11447_s30  ;;  %p11455_p2 = scmp.lt.u32.totalorder %s11447_s30, %s13061_s10 }
 0x2bc   : > { %p11449_p11 = pnand %p11448_p10, %p11734_p12 }
 0x2bd   : > { %p11454_p3 = por %p11453_p5, %p11452_p1 }
 0x2be   : > { %p11450_p0 = pneg %p11449_p11 }
 0x2bf   : > { %p11456_p4 = por %p11455_p2, %p11454_p3 }
 0x2c1   : > { %p11457_p6 = pnand %p11456_p4, %p11450_p0 }
 0x2c3   : > { %11460 = shalt.err (!%p11457_p6)
}
 0x2c4   : > { %11297 = dma.vmem_to_hbm [thread:$0]  (%p11734_p12), %s13063_s26, 128, %s13061_s10, %s8717_s8   ;;  %8710 = vst [vmem:[%s11770_s11] sm:$0xff] %v8709_v19 }
 0x2c5   : > { %s11461_s13 = scalar_lea.vmem %s13071_s15, 128  ;;  %s11591_s27 = smov [#allocation8]  }
 0x2c6   : > { %p11462_p8 = scmp.ne.s32.totalorder %s13071_s15, %s11461_s13  ;;  %s11465_s6 = sshll.u32 %s11591_s27, 4  ;;  %s11466_s6 = int_to_ptr.vmem [resolvable:$false] %s11465_s6 }
 0x2c7   : > { %s11467_s7 = scalar_lea.vmem %s11466_s6, 256  ;;  %p11468_p11 = scmp.lt.s32.totalorder %s13071_s15, %s11466_s6 }
 0x2c8   : > { %p11463_p9 = pnand %p11462_p8, %p11734_p12  ;;  %p11469_p0 = scmp.lt.s32.totalorder %s11467_s7, %s11461_s13 }
 0x2ca   : > { %p11464_p10 = pneg %p11463_p9  ;;  %p11470_p1 = por %p11469_p0, %p11468_p11 }
 0x2cc   : > { %p11471_p5 = pnand %p11470_p1, %p11464_p10 }
 0x2ce   : > { %11474 = shalt.err (!%p11471_p5)
}
 0x2cf   : > { %s11475_s11 = scalar_lea.hbm %s13069_s16, 128  ;;  %s11479_s30 = scalar_lea.hbm %s13167_s5, 256 }
 0x2d0   : > { %p11476_p3 = scmp.ne.s32.totalorder %s13069_s16, %s11475_s11  ;;  %p11480_p6 = scmp.lt.u32.totalorder %s13069_s16, %s13167_s5 }
 0x2d1   : > { %p11481_p8 = scmp.lt.u32.totalorder %s11479_s30, %s11475_s11  ;;  %p11483_p10 = scmp.lt.u32.totalorder %s11475_s11, %s13069_s16 }
 0x2d2   : > { %p11477_p2 = pnand %p11476_p3, %p11734_p12 }
 0x2d3   : > { %p11482_p9 = por %p11481_p8, %p11480_p6 }
 0x2d4   : > { %p11478_p4 = pneg %p11477_p2 }
 0x2d5   : > { %p11484_p11 = por %p11483_p10, %p11482_p9 }
 0x2d7   : > { %p11485_p0 = pnand %p11484_p11, %p11478_p4 }
 0x2d9   : > { %11488 = shalt.err (!%p11485_p0)
}
 0x2da   : > { %11298 = dma.vmem_to_hbm [thread:$0]  (%p11734_p12), %s13071_s15, 128, %s13069_s16, %s8717_s8  }
 0x2db PF: > { %s13192_s18 = sld [smem:[#allocation11_spill]]  ;;  %p11312_p1 = scmp.ge.s32.totalorder %s11583_s28, 2 }
 0x2dd   : > { %p11303_p5 = pnand %p11312_p1, %p11713_p7 }
 0x2e1   : > { %s8778_s24 = sand.u32 1, %s13192_s18  }
 0x2e2   : > { %s8779_s13 = scalar_lea.sflag [#allocation5], %s8778_s24 }
 0x2e3   : > { %11534 = dma.done.wait (!%p11303_p5), %s8779_s13, 512  }
 0x2e4   : > { %11536 = vsyncadd (!%p11303_p5), %s8779_s13, 4294966784  ;;  %s13194_s27 = sadd.s32 4294967294, %s11583_s28   ;;  %p11306_p3 = pnand %p11312_p1, %p11740_p13 }
 0x2e5   : > { %s8787_s21 = sand.u32 1, %s13194_s27  }
 0x2e6   : > { %s8788_s9 = scalar_lea.sflag [#allocation7], %s8787_s21 }
 0x2e7   : > { %11538 = dma.done.wait (!%p11306_p3), %s8788_s9, 256  }
 0x2e8   : > { %11540 = vsyncadd (!%p11306_p3), %s8788_s9, 4294967040  ;;  %s22_s28 = sadd.s32 1, %s11583_s28   ;;  %s13195_s15 = sld [smem:[#allocation17_spill]] }
 0x2e9   : > { %p19_p12 = scmp.ge.s32.totalorder %s22_s28, 10   ;;  %s13196_s24 = sld [smem:[#allocation12_spill]] }
 0x2ea   : > { %s13197_s25 = sld [smem:[#allocation13_spill]]  ;;  %s13198_s26 = sld [smem:[#allocation14_spill]] }
 0x2eb   : > { %s13199_s27 = sld [smem:[#allocation15_spill]]  ;;  %s13200_s18 = smov %s11547_s19 }
 0x2ec   : > { %s13201_s19 = smov %s11551_s20  ;;  %s13202_s20 = smov %s11727_s29 }
 0x2ed   : > { %s13203_s21 = smov %s11559_s22  ;;  %s13204_s22 = smov %s11563_s23 }
 0x2ee   : > { %s13205_s23 = smov %s13195_s15  ;;  %21 = sbr.rel (!%p19_p12) target bundleno = 9 (0x9), region = 138 }
 0x2f5   :  { %8802 = vsyncpa [#allocation5], 1 }
 0x2f6   :  { %8804 = vsyncpa [#allocation5 + $0x1], 1 }
 0x2f7   :  { %8805 = vsyncpa [#allocation7], 1 }
 0x2f8   :  { %8807 = vsyncpa [#allocation7 + $0x1], 1 }

</bundles_post_ra>
